<compile_context>
chip_gen: v5e
topology: v5e:2x2
jax: 0.10.0
libtpu: 0.0.40
codegen_flags: <defaults>
</compile_context>

<pallas_src>
import functools

import jax
import jax.numpy as jnp
from jax.experimental import pallas as pl
from jax.experimental.pallas import tpu as pltpu

NEG_SLOPE = 0.01  # nn.LeakyReLU default
_HIGH = jax.lax.Precision.HIGHEST


def _leaky(v):
    return jnp.where(v >= 0, v, NEG_SLOPE * v)


def dnn_sym_kernel(x_ref, w1_ref, b1_ref, w2_ref, b2_ref,
                   wf1_ref, bf1_ref, wf2_ref, bf2_ref, wo_ref, bo_ref,
                   out_ref, *, group_ids):
    """Batched DnnSymNew forward, batch on the lane dim.

    x_ref   : (3, N, B)       transposed positions (block of B frames)
    w1_ref  : (G, E0, 3)      per-group embed layer 1    b1_ref : (G, E0, 1)
    w2_ref  : (G, E1, E0)     per-group embed layer 2    b2_ref : (G, E1, 1)
    wf1_ref : (L0, 3*E1)      fitting layer 1 (columns permuted: [c*E1+e] <-> [3e+c])
    bf1_ref : (L0, 1)
    wf2_ref : (L1, L0)        bf2_ref: (L1, 1)
    wo_ref  : (3, L1)         bo_ref : (3, 1)
    out_ref : (3, B)
    group_ids : static tuple, length N, neighbor -> group index
    """
    x = x_ref[...]                                   # (3, N, B)
    n_nbr = x.shape[1]
    bsz = x.shape[2]
    e1 = w2_ref.shape[1]

    # d accumulators, one per cartesian coordinate: d_acc[c][e, b] = d_b[e, c]
    d_acc = [jnp.zeros((e1, bsz), jnp.float32) for _ in range(3)]

    for n in range(n_nbr):                           # static unroll, N small
        gid = group_ids[n]                           # static Python int
        w1 = w1_ref[gid]                             # (E0, 3)
        b1 = b1_ref[gid]                             # (E0, 1)
        w2 = w2_ref[gid]                             # (E1, E0)
        b2 = b2_ref[gid]                             # (E1, 1)

        xc0 = x[0, n:n + 1, :]                       # (1, B)
        xc1 = x[1, n:n + 1, :]
        xc2 = x[2, n:n + 1, :]

        # Embedding layer 1: unrolled 3-term FMA (lane-dense VPU work).
        h = (w1[:, 0:1] * xc0 + w1[:, 1:2] * xc1 + w1[:, 2:3] * xc2 + b1)
        h = _leaky(h)                                # (E0, B)

        # Embedding layer 2: MXU matmul.
        g = jnp.dot(w2, h, preferred_element_type=jnp.float32,
                    precision=_HIGH) + b2
        g = _leaky(g)                                # (E1, B)

        # d contribution: d[e, c] += x[n, c] * g[n, e]  (per frame b).
        d_acc[0] = d_acc[0] + xc0 * g
        d_acc[1] = d_acc[1] + xc1 * g
        d_acc[2] = d_acc[2] + xc2 * g

    # dcat[c*E1 + e, b] = d_b[e, c]; wf1 columns were permuted to match.
    dcat = jnp.concatenate(d_acc, axis=0)            # (3*E1, B)

    h1 = _leaky(jnp.dot(wf1_ref[...], dcat, preferred_element_type=jnp.float32,
                        precision=_HIGH) + bf1_ref[...])          # (L0, B)
    h2 = _leaky(jnp.dot(wf2_ref[...], h1, preferred_element_type=jnp.float32,
                        precision=_HIGH) + bf2_ref[...])          # (L1, B)
    out_ref[...] = jnp.dot(wo_ref[...], h2, preferred_element_type=jnp.float32,
                           precision=_HIGH) + bo_ref[...]         # (3, B)


def init_params(key, atom_num, embedding_dim, linear_layers):
    """Deterministic synthetic parameters matching the PyTorch module shapes."""
    assert len(embedding_dim) == 2 and len(linear_layers) == 2, \
        "this script instantiates the 2-layer embed / 2-layer fitting variant"
    E0, E1 = embedding_dim
    L0, L1 = linear_layers

    def lin(k, out_f, in_f):
        kw, kb = jax.random.split(k)
        w = 0.1 * jax.random.normal(kw, (out_f, in_f), jnp.float32)
        b = 0.1 * jax.random.normal(kb, (out_f,), jnp.float32)
        return w, b

    params = {'embed': {}}
    for i in range(atom_num):
        for j in range(i, atom_num):
            key, k1, k2 = jax.random.split(key, 3)
            W1, b1 = lin(k1, E0, 3)
            W2, b2 = lin(k2, E1, E0)
            params['embed'][(i, j)] = dict(W1=W1, b1=b1, W2=W2, b2=b2)

    key, k1, k2, k3 = jax.random.split(key, 4)
    params['Wf1'], params['bf1'] = lin(k1, L0, E1 * 3)
    params['Wf2'], params['bf2'] = lin(k2, L1, L0)
    params['Wout'], params['bout'] = lin(k3, 3, L1)
    return params


def prepare_packed_params(params, atom, atom_list):
    """One-time (outside the hot path) weight packing / layout permutation."""
    n_nbr = len(atom_list)
    pair_keys = []
    group_ids = []
    for n in range(n_nbr):
        a, b = atom, atom_list[n]
        key = (a, b) if a <= b else (b, a)
        if key not in pair_keys:
            pair_keys.append(key)
        group_ids.append(pair_keys.index(key))

    W1 = jnp.stack([params['embed'][k]['W1'] for k in pair_keys])          # (G, E0, 3)
    b1 = jnp.stack([params['embed'][k]['b1'] for k in pair_keys])[..., None]  # (G, E0, 1)
    W2 = jnp.stack([params['embed'][k]['W2'] for k in pair_keys])          # (G, E1, E0)
    b2 = jnp.stack([params['embed'][k]['b2'] for k in pair_keys])[..., None]  # (G, E1, 1)

    L0 = params['Wf1'].shape[0]
    E1 = W2.shape[1]
    # PyTorch flattens d (E1, 3) row-major: dflat[3e + c].  The kernel builds
    # dcat[c*E1 + e], so permute Wf1's columns accordingly.
    Wf1_perm = params['Wf1'].reshape(L0, E1, 3).transpose(0, 2, 1).reshape(L0, 3 * E1)

    packed = dict(
        W1=W1, b1=b1, W2=W2, b2=b2,
        Wf1=Wf1_perm, bf1=params['bf1'][:, None],
        Wf2=params['Wf2'], bf2=params['bf2'][:, None],
        Wout=params['Wout'], bout=params['bout'][:, None],
    )
    return packed, tuple(group_ids)


@functools.partial(jax.jit, static_argnums=(2, 3))
def dnn_sym_forward_batched(xb, packed, group_ids, block_b):
    """xb: (B, N, 3) batch of neighborhoods -> (B, 3) core-atom displacements."""
    b_total, n_nbr, _ = xb.shape
    assert b_total % block_b == 0, "batch must be a multiple of block_b"

    xT = jnp.transpose(xb, (2, 1, 0))                # (3, N, B) — lane-dense batch

    kernel = functools.partial(dnn_sym_kernel, group_ids=group_ids)

    def const_spec(shape):
        return pl.BlockSpec(shape, lambda i: (0,) * len(shape))

    out = pl.pallas_call(
        kernel,
        out_shape=jax.ShapeDtypeStruct((3, b_total), jnp.float32),
        grid=(b_total // block_b,),
        in_specs=[
            pl.BlockSpec((3, n_nbr, block_b), lambda i: (0, 0, i)),
            const_spec(packed['W1'].shape), const_spec(packed['b1'].shape),
            const_spec(packed['W2'].shape), const_spec(packed['b2'].shape),
            const_spec(packed['Wf1'].shape), const_spec(packed['bf1'].shape),
            const_spec(packed['Wf2'].shape), const_spec(packed['bf2'].shape),
            const_spec(packed['Wout'].shape), const_spec(packed['bout'].shape),
        ],
        out_specs=pl.BlockSpec((3, block_b), lambda i: (0, i)),
        compiler_params=pltpu.CompilerParams(
            dimension_semantics=("parallel",)),
    )(xT, packed['W1'], packed['b1'], packed['W2'], packed['b2'],
      packed['Wf1'], packed['bf1'], packed['Wf2'], packed['bf2'],
      packed['Wout'], packed['bout'])

    return out.T                                     # (B, 3)


def reference_forward(xb, params, atom, atom_list):
    """Pure-JAX replica of the PyTorch forward (per frame), vmapped over batch."""
    def single(x):
        gs = []
        for n in range(len(atom_list)):
            a, b = atom, atom_list[n]
            key = (a, b) if a <= b else (b, a)
            p = params['embed'][key]
            h = _leaky(jnp.dot(p['W1'], x[n], precision=_HIGH) + p['b1'])
            gs.append(_leaky(jnp.dot(p['W2'], h, precision=_HIGH) + p['b2']))
        g = jnp.stack(gs)                            # (N, E1)
        d = jnp.dot(g.T, x, precision=_HIGH)         # (E1, 3)
        dflat = d.reshape(-1)                        # row-major == torch view(-1)
        h1 = _leaky(jnp.dot(params['Wf1'], dflat, precision=_HIGH) + params['bf1'])
        h2 = _leaky(jnp.dot(params['Wf2'], h1, precision=_HIGH) + params['bf2'])
        return jnp.dot(params['Wout'], h2, precision=_HIGH) + params['bout']
    return jax.vmap(single)(xb)                      # (B, 3)


if __name__ == "__main__":
    # Small configuration consistent with the module:
    #   2 atom types, core atom 0, 5 neighbors, embed [16, 32], fitting [64, 32]
    atom_num = 2
    atom = 0
    atom_list = [0, 1, 1, 0, 0]
    embedding_dim = [16, 32]
    linear_layers = [64, 32]
    N = len(atom_list)

    B_total = 512      # batch of independent neighborhoods (frames)
    block_b = 256      # frames per grid step (fills MXU rows on v6e/v7x)

    key = jax.random.PRNGKey(0)
    key, kx = jax.random.split(key)
    xb = jax.random.normal(kx, (B_total, N, 3), jnp.float32)

    params = init_params(key, atom_num, embedding_dim, linear_layers)
    packed, group_ids = prepare_packed_params(params, atom, atom_list)

    out = dnn_sym_forward_batched(xb, packed, group_ids, block_b)
    out = jax.block_until_ready(out)

    ref = reference_forward(xb, params, atom, atom_list)
    assert out.shape == (B_total, 3)
    max_err = jnp.max(jnp.abs(out - ref))
    assert jnp.allclose(out, ref, atol=1e-4, rtol=1e-4), max_err

    print("KERNEL_OK")
</pallas_src>

<mosaic_0001>
module attributes {stable_mosaic.version = 11 : i64} {
  func.func @dnn_sym_kernel(%arg0: i32, %arg1: memref<3x5x256xf32, #tpu.memory_space<vmem>>, %arg2: memref<2x16x3xf32, #tpu.memory_space<vmem>>, %arg3: memref<2x16x1xf32, #tpu.memory_space<vmem>>, %arg4: memref<2x32x16xf32, #tpu.memory_space<vmem>>, %arg5: memref<2x32x1xf32, #tpu.memory_space<vmem>>, %arg6: memref<64x96xf32, #tpu.memory_space<vmem>>, %arg7: memref<64x1xf32, #tpu.memory_space<vmem>>, %arg8: memref<32x64xf32, #tpu.memory_space<vmem>>, %arg9: memref<32x1xf32, #tpu.memory_space<vmem>>, %arg10: memref<3x32xf32, #tpu.memory_space<vmem>>, %arg11: memref<3x1xf32, #tpu.memory_space<vmem>>, %arg12: memref<3x256xf32, #tpu.memory_space<vmem>>) attributes {dimension_semantics = [#tpu.dimension_semantics<parallel>], iteration_bounds = array<i64: 2>, scalar_prefetch = 0 : i64, scratch_operands = 0 : i64, tpu.core_type = #tpu.core_type<tc>, window_params = [{transform_indices = @transform_0, window_bounds = array<i64: 3, 5, 256>}, {pipeline_mode = #tpu.pipeline_mode<synchronous>, transform_indices = @transform_1, window_bounds = array<i64: 2, 16, 3>}, {pipeline_mode = #tpu.pipeline_mode<synchronous>, transform_indices = @transform_2, window_bounds = array<i64: 2, 16, 1>}, {pipeline_mode = #tpu.pipeline_mode<synchronous>, transform_indices = @transform_3, window_bounds = array<i64: 2, 32, 16>}, {pipeline_mode = #tpu.pipeline_mode<synchronous>, transform_indices = @transform_4, window_bounds = array<i64: 2, 32, 1>}, {pipeline_mode = #tpu.pipeline_mode<synchronous>, transform_indices = @transform_5, window_bounds = array<i64: 64, 96>}, {pipeline_mode = #tpu.pipeline_mode<synchronous>, transform_indices = @transform_6, window_bounds = array<i64: 64, 1>}, {pipeline_mode = #tpu.pipeline_mode<synchronous>, transform_indices = @transform_7, window_bounds = array<i64: 32, 64>}, {pipeline_mode = #tpu.pipeline_mode<synchronous>, transform_indices = @transform_8, window_bounds = array<i64: 32, 1>}, {pipeline_mode = #tpu.pipeline_mode<synchronous>, transform_indices = @transform_9, window_bounds = array<i64: 3, 32>}, {pipeline_mode = #tpu.pipeline_mode<synchronous>, transform_indices = @transform_10, window_bounds = array<i64: 3, 1>}, {transform_indices = @transform_11, window_bounds = array<i64: 3, 256>}]} {
    %c0 = arith.constant 0 : index
    %c0_0 = arith.constant 0 : index
    %c0_1 = arith.constant 0 : index
    %0 = vector.load %arg1[%c0, %c0_0, %c0_1] : memref<3x5x256xf32, #tpu.memory_space<vmem>>, vector<3x5x256xf32>
    %cst = arith.constant 0.000000e+00 : f32
    %1 = vector.broadcast %cst : f32 to vector<32x256xf32>
    %cst_2 = arith.constant 0.000000e+00 : f32
    %2 = vector.broadcast %cst_2 : f32 to vector<32x256xf32>
    %cst_3 = arith.constant 0.000000e+00 : f32
    %3 = vector.broadcast %cst_3 : f32 to vector<32x256xf32>
    %c0_4 = arith.constant 0 : index
    %c0_5 = arith.constant 0 : index
    %c0_6 = arith.constant 0 : index
    %4 = vector.load %arg2[%c0_4, %c0_5, %c0_6] : memref<2x16x3xf32, #tpu.memory_space<vmem>>, vector<1x16x3xf32>
    %5 = vector.shape_cast %4 : vector<1x16x3xf32> to vector<16x3xf32>
    %c0_7 = arith.constant 0 : index
    %c0_8 = arith.constant 0 : index
    %c0_9 = arith.constant 0 : index
    %6 = vector.load %arg3[%c0_7, %c0_8, %c0_9] : memref<2x16x1xf32, #tpu.memory_space<vmem>>, vector<1x16x1xf32>
    %7 = vector.shape_cast %6 : vector<1x16x1xf32> to vector<16x1xf32>
    %c0_10 = arith.constant 0 : index
    %c0_11 = arith.constant 0 : index
    %c0_12 = arith.constant 0 : index
    %8 = vector.load %arg4[%c0_10, %c0_11, %c0_12] : memref<2x32x16xf32, #tpu.memory_space<vmem>>, vector<1x32x16xf32>
    %9 = vector.shape_cast %8 : vector<1x32x16xf32> to vector<32x16xf32>
    %c0_13 = arith.constant 0 : index
    %c0_14 = arith.constant 0 : index
    %c0_15 = arith.constant 0 : index
    %10 = vector.load %arg5[%c0_13, %c0_14, %c0_15] : memref<2x32x1xf32, #tpu.memory_space<vmem>>, vector<1x32x1xf32>
    %11 = vector.shape_cast %10 : vector<1x32x1xf32> to vector<32x1xf32>
    %12 = vector.extract_strided_slice %0 {offsets = [0, 0, 0], sizes = [1, 1, 256], strides = [1, 1, 1]} : vector<3x5x256xf32> to vector<1x1x256xf32>
    %13 = vector.shape_cast %12 : vector<1x1x256xf32> to vector<1x256xf32>
    %14 = vector.extract_strided_slice %0 {offsets = [1, 0, 0], sizes = [1, 1, 256], strides = [1, 1, 1]} : vector<3x5x256xf32> to vector<1x1x256xf32>
    %15 = vector.shape_cast %14 : vector<1x1x256xf32> to vector<1x256xf32>
    %16 = vector.extract_strided_slice %0 {offsets = [2, 0, 0], sizes = [1, 1, 256], strides = [1, 1, 1]} : vector<3x5x256xf32> to vector<1x1x256xf32>
    %17 = vector.shape_cast %16 : vector<1x1x256xf32> to vector<1x256xf32>
    %18 = vector.extract_strided_slice %5 {offsets = [0, 0], sizes = [16, 1], strides = [1, 1]} : vector<16x3xf32> to vector<16x1xf32>
    %19 = vector.broadcast %18 : vector<16x1xf32> to vector<16x256xf32>
    %20 = vector.broadcast %13 : vector<1x256xf32> to vector<16x256xf32>
    %21 = arith.mulf %19, %20 : vector<16x256xf32>
    %22 = vector.extract_strided_slice %5 {offsets = [0, 1], sizes = [16, 1], strides = [1, 1]} : vector<16x3xf32> to vector<16x1xf32>
    %23 = vector.broadcast %22 : vector<16x1xf32> to vector<16x256xf32>
    %24 = vector.broadcast %15 : vector<1x256xf32> to vector<16x256xf32>
    %25 = arith.mulf %23, %24 : vector<16x256xf32>
    %26 = arith.addf %21, %25 : vector<16x256xf32>
    %27 = vector.extract_strided_slice %5 {offsets = [0, 2], sizes = [16, 1], strides = [1, 1]} : vector<16x3xf32> to vector<16x1xf32>
    %28 = vector.broadcast %27 : vector<16x1xf32> to vector<16x256xf32>
    %29 = vector.broadcast %17 : vector<1x256xf32> to vector<16x256xf32>
    %30 = arith.mulf %28, %29 : vector<16x256xf32>
    %31 = arith.addf %26, %30 : vector<16x256xf32>
    %32 = vector.broadcast %7 : vector<16x1xf32> to vector<16x256xf32>
    %33 = arith.addf %31, %32 : vector<16x256xf32>
    %cst_16 = arith.constant 0.000000e+00 : f32
    %34 = vector.broadcast %cst_16 : f32 to vector<16x256xf32>
    %35 = arith.cmpf oge, %33, %34 : vector<16x256xf32>
    %cst_17 = arith.constant 0.00999999977 : f32
    %36 = vector.broadcast %cst_17 : f32 to vector<16x256xf32>
    %37 = arith.mulf %36, %33 : vector<16x256xf32>
    %38 = arith.select %35, %33, %37 : vector<16x256xi1>, vector<16x256xf32>
    %cst_18 = arith.constant dense<0.000000e+00> : vector<32x256xf32>
    %39 = tpu.matmul %9, %38, %cst_18 {dimension_numbers = #tpu.dot_dimension_numbers<[1], [0], [0], [1], [0, 0, 1, 1], [], []>, precision = #tpu.contract_precision<fp32>} : vector<32x16xf32>, vector<16x256xf32>, vector<32x256xf32> -> vector<32x256xf32>
    %40 = vector.broadcast %11 : vector<32x1xf32> to vector<32x256xf32>
    %41 = arith.addf %39, %40 : vector<32x256xf32>
    %cst_19 = arith.constant 0.000000e+00 : f32
    %42 = vector.broadcast %cst_19 : f32 to vector<32x256xf32>
    %43 = arith.cmpf oge, %41, %42 : vector<32x256xf32>
    %cst_20 = arith.constant 0.00999999977 : f32
    %44 = vector.broadcast %cst_20 : f32 to vector<32x256xf32>
    %45 = arith.mulf %44, %41 : vector<32x256xf32>
    %46 = arith.select %43, %41, %45 : vector<32x256xi1>, vector<32x256xf32>
    %47 = vector.broadcast %13 : vector<1x256xf32> to vector<32x256xf32>
    %48 = arith.mulf %47, %46 : vector<32x256xf32>
    %49 = arith.addf %1, %48 : vector<32x256xf32>
    %50 = vector.broadcast %15 : vector<1x256xf32> to vector<32x256xf32>
    %51 = arith.mulf %50, %46 : vector<32x256xf32>
    %52 = arith.addf %2, %51 : vector<32x256xf32>
    %53 = vector.broadcast %17 : vector<1x256xf32> to vector<32x256xf32>
    %54 = arith.mulf %53, %46 : vector<32x256xf32>
    %55 = arith.addf %3, %54 : vector<32x256xf32>
    %c1 = arith.constant 1 : index
    %c0_21 = arith.constant 0 : index
    %c0_22 = arith.constant 0 : index
    %56 = vector.load %arg2[%c1, %c0_21, %c0_22] : memref<2x16x3xf32, #tpu.memory_space<vmem>>, vector<1x16x3xf32>
    %57 = vector.shape_cast %56 : vector<1x16x3xf32> to vector<16x3xf32>
    %c1_23 = arith.constant 1 : index
    %c0_24 = arith.constant 0 : index
    %c0_25 = arith.constant 0 : index
    %58 = vector.load %arg3[%c1_23, %c0_24, %c0_25] : memref<2x16x1xf32, #tpu.memory_space<vmem>>, vector<1x16x1xf32>
    %59 = vector.shape_cast %58 : vector<1x16x1xf32> to vector<16x1xf32>
    %c1_26 = arith.constant 1 : index
    %c0_27 = arith.constant 0 : index
    %c0_28 = arith.constant 0 : index
    %60 = vector.load %arg4[%c1_26, %c0_27, %c0_28] : memref<2x32x16xf32, #tpu.memory_space<vmem>>, vector<1x32x16xf32>
    %61 = vector.shape_cast %60 : vector<1x32x16xf32> to vector<32x16xf32>
    %c1_29 = arith.constant 1 : index
    %c0_30 = arith.constant 0 : index
    %c0_31 = arith.constant 0 : index
    %62 = vector.load %arg5[%c1_29, %c0_30, %c0_31] : memref<2x32x1xf32, #tpu.memory_space<vmem>>, vector<1x32x1xf32>
    %63 = vector.shape_cast %62 : vector<1x32x1xf32> to vector<32x1xf32>
    %64 = vector.extract_strided_slice %0 {offsets = [0, 1, 0], sizes = [1, 1, 256], strides = [1, 1, 1]} : vector<3x5x256xf32> to vector<1x1x256xf32>
    %65 = vector.shape_cast %64 : vector<1x1x256xf32> to vector<1x256xf32>
    %66 = vector.extract_strided_slice %0 {offsets = [1, 1, 0], sizes = [1, 1, 256], strides = [1, 1, 1]} : vector<3x5x256xf32> to vector<1x1x256xf32>
    %67 = vector.shape_cast %66 : vector<1x1x256xf32> to vector<1x256xf32>
    %68 = vector.extract_strided_slice %0 {offsets = [2, 1, 0], sizes = [1, 1, 256], strides = [1, 1, 1]} : vector<3x5x256xf32> to vector<1x1x256xf32>
    %69 = vector.shape_cast %68 : vector<1x1x256xf32> to vector<1x256xf32>
    %70 = vector.extract_strided_slice %57 {offsets = [0, 0], sizes = [16, 1], strides = [1, 1]} : vector<16x3xf32> to vector<16x1xf32>
    %71 = vector.broadcast %70 : vector<16x1xf32> to vector<16x256xf32>
    %72 = vector.broadcast %65 : vector<1x256xf32> to vector<16x256xf32>
    %73 = arith.mulf %71, %72 : vector<16x256xf32>
    %74 = vector.extract_strided_slice %57 {offsets = [0, 1], sizes = [16, 1], strides = [1, 1]} : vector<16x3xf32> to vector<16x1xf32>
    %75 = vector.broadcast %74 : vector<16x1xf32> to vector<16x256xf32>
    %76 = vector.broadcast %67 : vector<1x256xf32> to vector<16x256xf32>
    %77 = arith.mulf %75, %76 : vector<16x256xf32>
    %78 = arith.addf %73, %77 : vector<16x256xf32>
    %79 = vector.extract_strided_slice %57 {offsets = [0, 2], sizes = [16, 1], strides = [1, 1]} : vector<16x3xf32> to vector<16x1xf32>
    %80 = vector.broadcast %79 : vector<16x1xf32> to vector<16x256xf32>
    %81 = vector.broadcast %69 : vector<1x256xf32> to vector<16x256xf32>
    %82 = arith.mulf %80, %81 : vector<16x256xf32>
    %83 = arith.addf %78, %82 : vector<16x256xf32>
    %84 = vector.broadcast %59 : vector<16x1xf32> to vector<16x256xf32>
    %85 = arith.addf %83, %84 : vector<16x256xf32>
    %cst_32 = arith.constant 0.000000e+00 : f32
    %86 = vector.broadcast %cst_32 : f32 to vector<16x256xf32>
    %87 = arith.cmpf oge, %85, %86 : vector<16x256xf32>
    %cst_33 = arith.constant 0.00999999977 : f32
    %88 = vector.broadcast %cst_33 : f32 to vector<16x256xf32>
    %89 = arith.mulf %88, %85 : vector<16x256xf32>
    %90 = arith.select %87, %85, %89 : vector<16x256xi1>, vector<16x256xf32>
    %cst_34 = arith.constant dense<0.000000e+00> : vector<32x256xf32>
    %91 = tpu.matmul %61, %90, %cst_34 {dimension_numbers = #tpu.dot_dimension_numbers<[1], [0], [0], [1], [0, 0, 1, 1], [], []>, precision = #tpu.contract_precision<fp32>} : vector<32x16xf32>, vector<16x256xf32>, vector<32x256xf32> -> vector<32x256xf32>
    %92 = vector.broadcast %63 : vector<32x1xf32> to vector<32x256xf32>
    %93 = arith.addf %91, %92 : vector<32x256xf32>
    %cst_35 = arith.constant 0.000000e+00 : f32
    %94 = vector.broadcast %cst_35 : f32 to vector<32x256xf32>
    %95 = arith.cmpf oge, %93, %94 : vector<32x256xf32>
    %cst_36 = arith.constant 0.00999999977 : f32
    %96 = vector.broadcast %cst_36 : f32 to vector<32x256xf32>
    %97 = arith.mulf %96, %93 : vector<32x256xf32>
    %98 = arith.select %95, %93, %97 : vector<32x256xi1>, vector<32x256xf32>
    %99 = vector.broadcast %65 : vector<1x256xf32> to vector<32x256xf32>
    %100 = arith.mulf %99, %98 : vector<32x256xf32>
    %101 = arith.addf %49, %100 : vector<32x256xf32>
    %102 = vector.broadcast %67 : vector<1x256xf32> to vector<32x256xf32>
    %103 = arith.mulf %102, %98 : vector<32x256xf32>
    %104 = arith.addf %52, %103 : vector<32x256xf32>
    %105 = vector.broadcast %69 : vector<1x256xf32> to vector<32x256xf32>
    %106 = arith.mulf %105, %98 : vector<32x256xf32>
    %107 = arith.addf %55, %106 : vector<32x256xf32>
    %c1_37 = arith.constant 1 : index
    %c0_38 = arith.constant 0 : index
    %c0_39 = arith.constant 0 : index
    %108 = vector.load %arg2[%c1_37, %c0_38, %c0_39] : memref<2x16x3xf32, #tpu.memory_space<vmem>>, vector<1x16x3xf32>
    %109 = vector.shape_cast %108 : vector<1x16x3xf32> to vector<16x3xf32>
    %c1_40 = arith.constant 1 : index
    %c0_41 = arith.constant 0 : index
    %c0_42 = arith.constant 0 : index
    %110 = vector.load %arg3[%c1_40, %c0_41, %c0_42] : memref<2x16x1xf32, #tpu.memory_space<vmem>>, vector<1x16x1xf32>
    %111 = vector.shape_cast %110 : vector<1x16x1xf32> to vector<16x1xf32>
    %c1_43 = arith.constant 1 : index
    %c0_44 = arith.constant 0 : index
    %c0_45 = arith.constant 0 : index
    %112 = vector.load %arg4[%c1_43, %c0_44, %c0_45] : memref<2x32x16xf32, #tpu.memory_space<vmem>>, vector<1x32x16xf32>
    %113 = vector.shape_cast %112 : vector<1x32x16xf32> to vector<32x16xf32>
    %c1_46 = arith.constant 1 : index
    %c0_47 = arith.constant 0 : index
    %c0_48 = arith.constant 0 : index
    %114 = vector.load %arg5[%c1_46, %c0_47, %c0_48] : memref<2x32x1xf32, #tpu.memory_space<vmem>>, vector<1x32x1xf32>
    %115 = vector.shape_cast %114 : vector<1x32x1xf32> to vector<32x1xf32>
    %116 = vector.extract_strided_slice %0 {offsets = [0, 2, 0], sizes = [1, 1, 256], strides = [1, 1, 1]} : vector<3x5x256xf32> to vector<1x1x256xf32>
    %117 = vector.shape_cast %116 : vector<1x1x256xf32> to vector<1x256xf32>
    %118 = vector.extract_strided_slice %0 {offsets = [1, 2, 0], sizes = [1, 1, 256], strides = [1, 1, 1]} : vector<3x5x256xf32> to vector<1x1x256xf32>
    %119 = vector.shape_cast %118 : vector<1x1x256xf32> to vector<1x256xf32>
    %120 = vector.extract_strided_slice %0 {offsets = [2, 2, 0], sizes = [1, 1, 256], strides = [1, 1, 1]} : vector<3x5x256xf32> to vector<1x1x256xf32>
    %121 = vector.shape_cast %120 : vector<1x1x256xf32> to vector<1x256xf32>
    %122 = vector.extract_strided_slice %109 {offsets = [0, 0], sizes = [16, 1], strides = [1, 1]} : vector<16x3xf32> to vector<16x1xf32>
    %123 = vector.broadcast %122 : vector<16x1xf32> to vector<16x256xf32>
    %124 = vector.broadcast %117 : vector<1x256xf32> to vector<16x256xf32>
    %125 = arith.mulf %123, %124 : vector<16x256xf32>
    %126 = vector.extract_strided_slice %109 {offsets = [0, 1], sizes = [16, 1], strides = [1, 1]} : vector<16x3xf32> to vector<16x1xf32>
    %127 = vector.broadcast %126 : vector<16x1xf32> to vector<16x256xf32>
    %128 = vector.broadcast %119 : vector<1x256xf32> to vector<16x256xf32>
    %129 = arith.mulf %127, %128 : vector<16x256xf32>
    %130 = arith.addf %125, %129 : vector<16x256xf32>
    %131 = vector.extract_strided_slice %109 {offsets = [0, 2], sizes = [16, 1], strides = [1, 1]} : vector<16x3xf32> to vector<16x1xf32>
    %132 = vector.broadcast %131 : vector<16x1xf32> to vector<16x256xf32>
    %133 = vector.broadcast %121 : vector<1x256xf32> to vector<16x256xf32>
    %134 = arith.mulf %132, %133 : vector<16x256xf32>
    %135 = arith.addf %130, %134 : vector<16x256xf32>
    %136 = vector.broadcast %111 : vector<16x1xf32> to vector<16x256xf32>
    %137 = arith.addf %135, %136 : vector<16x256xf32>
    %cst_49 = arith.constant 0.000000e+00 : f32
    %138 = vector.broadcast %cst_49 : f32 to vector<16x256xf32>
    %139 = arith.cmpf oge, %137, %138 : vector<16x256xf32>
    %cst_50 = arith.constant 0.00999999977 : f32
    %140 = vector.broadcast %cst_50 : f32 to vector<16x256xf32>
    %141 = arith.mulf %140, %137 : vector<16x256xf32>
    %142 = arith.select %139, %137, %141 : vector<16x256xi1>, vector<16x256xf32>
    %cst_51 = arith.constant dense<0.000000e+00> : vector<32x256xf32>
    %143 = tpu.matmul %113, %142, %cst_51 {dimension_numbers = #tpu.dot_dimension_numbers<[1], [0], [0], [1], [0, 0, 1, 1], [], []>, precision = #tpu.contract_precision<fp32>} : vector<32x16xf32>, vector<16x256xf32>, vector<32x256xf32> -> vector<32x256xf32>
    %144 = vector.broadcast %115 : vector<32x1xf32> to vector<32x256xf32>
    %145 = arith.addf %143, %144 : vector<32x256xf32>
    %cst_52 = arith.constant 0.000000e+00 : f32
    %146 = vector.broadcast %cst_52 : f32 to vector<32x256xf32>
    %147 = arith.cmpf oge, %145, %146 : vector<32x256xf32>
    %cst_53 = arith.constant 0.00999999977 : f32
    %148 = vector.broadcast %cst_53 : f32 to vector<32x256xf32>
    %149 = arith.mulf %148, %145 : vector<32x256xf32>
    %150 = arith.select %147, %145, %149 : vector<32x256xi1>, vector<32x256xf32>
    %151 = vector.broadcast %117 : vector<1x256xf32> to vector<32x256xf32>
    %152 = arith.mulf %151, %150 : vector<32x256xf32>
    %153 = arith.addf %101, %152 : vector<32x256xf32>
    %154 = vector.broadcast %119 : vector<1x256xf32> to vector<32x256xf32>
    %155 = arith.mulf %154, %150 : vector<32x256xf32>
    %156 = arith.addf %104, %155 : vector<32x256xf32>
    %157 = vector.broadcast %121 : vector<1x256xf32> to vector<32x256xf32>
    %158 = arith.mulf %157, %150 : vector<32x256xf32>
    %159 = arith.addf %107, %158 : vector<32x256xf32>
    %c0_54 = arith.constant 0 : index
    %c0_55 = arith.constant 0 : index
    %c0_56 = arith.constant 0 : index
    %160 = vector.load %arg2[%c0_54, %c0_55, %c0_56] : memref<2x16x3xf32, #tpu.memory_space<vmem>>, vector<1x16x3xf32>
    %161 = vector.shape_cast %160 : vector<1x16x3xf32> to vector<16x3xf32>
    %c0_57 = arith.constant 0 : index
    %c0_58 = arith.constant 0 : index
    %c0_59 = arith.constant 0 : index
    %162 = vector.load %arg3[%c0_57, %c0_58, %c0_59] : memref<2x16x1xf32, #tpu.memory_space<vmem>>, vector<1x16x1xf32>
    %163 = vector.shape_cast %162 : vector<1x16x1xf32> to vector<16x1xf32>
    %c0_60 = arith.constant 0 : index
    %c0_61 = arith.constant 0 : index
    %c0_62 = arith.constant 0 : index
    %164 = vector.load %arg4[%c0_60, %c0_61, %c0_62] : memref<2x32x16xf32, #tpu.memory_space<vmem>>, vector<1x32x16xf32>
    %165 = vector.shape_cast %164 : vector<1x32x16xf32> to vector<32x16xf32>
    %c0_63 = arith.constant 0 : index
    %c0_64 = arith.constant 0 : index
    %c0_65 = arith.constant 0 : index
    %166 = vector.load %arg5[%c0_63, %c0_64, %c0_65] : memref<2x32x1xf32, #tpu.memory_space<vmem>>, vector<1x32x1xf32>
    %167 = vector.shape_cast %166 : vector<1x32x1xf32> to vector<32x1xf32>
    %168 = vector.extract_strided_slice %0 {offsets = [0, 3, 0], sizes = [1, 1, 256], strides = [1, 1, 1]} : vector<3x5x256xf32> to vector<1x1x256xf32>
    %169 = vector.shape_cast %168 : vector<1x1x256xf32> to vector<1x256xf32>
    %170 = vector.extract_strided_slice %0 {offsets = [1, 3, 0], sizes = [1, 1, 256], strides = [1, 1, 1]} : vector<3x5x256xf32> to vector<1x1x256xf32>
    %171 = vector.shape_cast %170 : vector<1x1x256xf32> to vector<1x256xf32>
    %172 = vector.extract_strided_slice %0 {offsets = [2, 3, 0], sizes = [1, 1, 256], strides = [1, 1, 1]} : vector<3x5x256xf32> to vector<1x1x256xf32>
    %173 = vector.shape_cast %172 : vector<1x1x256xf32> to vector<1x256xf32>
    %174 = vector.extract_strided_slice %161 {offsets = [0, 0], sizes = [16, 1], strides = [1, 1]} : vector<16x3xf32> to vector<16x1xf32>
    %175 = vector.broadcast %174 : vector<16x1xf32> to vector<16x256xf32>
    %176 = vector.broadcast %169 : vector<1x256xf32> to vector<16x256xf32>
    %177 = arith.mulf %175, %176 : vector<16x256xf32>
    %178 = vector.extract_strided_slice %161 {offsets = [0, 1], sizes = [16, 1], strides = [1, 1]} : vector<16x3xf32> to vector<16x1xf32>
    %179 = vector.broadcast %178 : vector<16x1xf32> to vector<16x256xf32>
    %180 = vector.broadcast %171 : vector<1x256xf32> to vector<16x256xf32>
    %181 = arith.mulf %179, %180 : vector<16x256xf32>
    %182 = arith.addf %177, %181 : vector<16x256xf32>
    %183 = vector.extract_strided_slice %161 {offsets = [0, 2], sizes = [16, 1], strides = [1, 1]} : vector<16x3xf32> to vector<16x1xf32>
    %184 = vector.broadcast %183 : vector<16x1xf32> to vector<16x256xf32>
    %185 = vector.broadcast %173 : vector<1x256xf32> to vector<16x256xf32>
    %186 = arith.mulf %184, %185 : vector<16x256xf32>
    %187 = arith.addf %182, %186 : vector<16x256xf32>
    %188 = vector.broadcast %163 : vector<16x1xf32> to vector<16x256xf32>
    %189 = arith.addf %187, %188 : vector<16x256xf32>
    %cst_66 = arith.constant 0.000000e+00 : f32
    %190 = vector.broadcast %cst_66 : f32 to vector<16x256xf32>
    %191 = arith.cmpf oge, %189, %190 : vector<16x256xf32>
    %cst_67 = arith.constant 0.00999999977 : f32
    %192 = vector.broadcast %cst_67 : f32 to vector<16x256xf32>
    %193 = arith.mulf %192, %189 : vector<16x256xf32>
    %194 = arith.select %191, %189, %193 : vector<16x256xi1>, vector<16x256xf32>
    %cst_68 = arith.constant dense<0.000000e+00> : vector<32x256xf32>
    %195 = tpu.matmul %165, %194, %cst_68 {dimension_numbers = #tpu.dot_dimension_numbers<[1], [0], [0], [1], [0, 0, 1, 1], [], []>, precision = #tpu.contract_precision<fp32>} : vector<32x16xf32>, vector<16x256xf32>, vector<32x256xf32> -> vector<32x256xf32>
    %196 = vector.broadcast %167 : vector<32x1xf32> to vector<32x256xf32>
    %197 = arith.addf %195, %196 : vector<32x256xf32>
    %cst_69 = arith.constant 0.000000e+00 : f32
    %198 = vector.broadcast %cst_69 : f32 to vector<32x256xf32>
    %199 = arith.cmpf oge, %197, %198 : vector<32x256xf32>
    %cst_70 = arith.constant 0.00999999977 : f32
    %200 = vector.broadcast %cst_70 : f32 to vector<32x256xf32>
    %201 = arith.mulf %200, %197 : vector<32x256xf32>
    %202 = arith.select %199, %197, %201 : vector<32x256xi1>, vector<32x256xf32>
    %203 = vector.broadcast %169 : vector<1x256xf32> to vector<32x256xf32>
    %204 = arith.mulf %203, %202 : vector<32x256xf32>
    %205 = arith.addf %153, %204 : vector<32x256xf32>
    %206 = vector.broadcast %171 : vector<1x256xf32> to vector<32x256xf32>
    %207 = arith.mulf %206, %202 : vector<32x256xf32>
    %208 = arith.addf %156, %207 : vector<32x256xf32>
    %209 = vector.broadcast %173 : vector<1x256xf32> to vector<32x256xf32>
    %210 = arith.mulf %209, %202 : vector<32x256xf32>
    %211 = arith.addf %159, %210 : vector<32x256xf32>
    %c0_71 = arith.constant 0 : index
    %c0_72 = arith.constant 0 : index
    %c0_73 = arith.constant 0 : index
    %212 = vector.load %arg2[%c0_71, %c0_72, %c0_73] : memref<2x16x3xf32, #tpu.memory_space<vmem>>, vector<1x16x3xf32>
    %213 = vector.shape_cast %212 : vector<1x16x3xf32> to vector<16x3xf32>
    %c0_74 = arith.constant 0 : index
    %c0_75 = arith.constant 0 : index
    %c0_76 = arith.constant 0 : index
    %214 = vector.load %arg3[%c0_74, %c0_75, %c0_76] : memref<2x16x1xf32, #tpu.memory_space<vmem>>, vector<1x16x1xf32>
    %215 = vector.shape_cast %214 : vector<1x16x1xf32> to vector<16x1xf32>
    %c0_77 = arith.constant 0 : index
    %c0_78 = arith.constant 0 : index
    %c0_79 = arith.constant 0 : index
    %216 = vector.load %arg4[%c0_77, %c0_78, %c0_79] : memref<2x32x16xf32, #tpu.memory_space<vmem>>, vector<1x32x16xf32>
    %217 = vector.shape_cast %216 : vector<1x32x16xf32> to vector<32x16xf32>
    %c0_80 = arith.constant 0 : index
    %c0_81 = arith.constant 0 : index
    %c0_82 = arith.constant 0 : index
    %218 = vector.load %arg5[%c0_80, %c0_81, %c0_82] : memref<2x32x1xf32, #tpu.memory_space<vmem>>, vector<1x32x1xf32>
    %219 = vector.shape_cast %218 : vector<1x32x1xf32> to vector<32x1xf32>
    %220 = vector.extract_strided_slice %0 {offsets = [0, 4, 0], sizes = [1, 1, 256], strides = [1, 1, 1]} : vector<3x5x256xf32> to vector<1x1x256xf32>
    %221 = vector.shape_cast %220 : vector<1x1x256xf32> to vector<1x256xf32>
    %222 = vector.extract_strided_slice %0 {offsets = [1, 4, 0], sizes = [1, 1, 256], strides = [1, 1, 1]} : vector<3x5x256xf32> to vector<1x1x256xf32>
    %223 = vector.shape_cast %222 : vector<1x1x256xf32> to vector<1x256xf32>
    %224 = vector.extract_strided_slice %0 {offsets = [2, 4, 0], sizes = [1, 1, 256], strides = [1, 1, 1]} : vector<3x5x256xf32> to vector<1x1x256xf32>
    %225 = vector.shape_cast %224 : vector<1x1x256xf32> to vector<1x256xf32>
    %226 = vector.extract_strided_slice %213 {offsets = [0, 0], sizes = [16, 1], strides = [1, 1]} : vector<16x3xf32> to vector<16x1xf32>
    %227 = vector.broadcast %226 : vector<16x1xf32> to vector<16x256xf32>
    %228 = vector.broadcast %221 : vector<1x256xf32> to vector<16x256xf32>
    %229 = arith.mulf %227, %228 : vector<16x256xf32>
    %230 = vector.extract_strided_slice %213 {offsets = [0, 1], sizes = [16, 1], strides = [1, 1]} : vector<16x3xf32> to vector<16x1xf32>
    %231 = vector.broadcast %230 : vector<16x1xf32> to vector<16x256xf32>
    %232 = vector.broadcast %223 : vector<1x256xf32> to vector<16x256xf32>
    %233 = arith.mulf %231, %232 : vector<16x256xf32>
    %234 = arith.addf %229, %233 : vector<16x256xf32>
    %235 = vector.extract_strided_slice %213 {offsets = [0, 2], sizes = [16, 1], strides = [1, 1]} : vector<16x3xf32> to vector<16x1xf32>
    %236 = vector.broadcast %235 : vector<16x1xf32> to vector<16x256xf32>
    %237 = vector.broadcast %225 : vector<1x256xf32> to vector<16x256xf32>
    %238 = arith.mulf %236, %237 : vector<16x256xf32>
    %239 = arith.addf %234, %238 : vector<16x256xf32>
    %240 = vector.broadcast %215 : vector<16x1xf32> to vector<16x256xf32>
    %241 = arith.addf %239, %240 : vector<16x256xf32>
    %cst_83 = arith.constant 0.000000e+00 : f32
    %242 = vector.broadcast %cst_83 : f32 to vector<16x256xf32>
    %243 = arith.cmpf oge, %241, %242 : vector<16x256xf32>
    %cst_84 = arith.constant 0.00999999977 : f32
    %244 = vector.broadcast %cst_84 : f32 to vector<16x256xf32>
    %245 = arith.mulf %244, %241 : vector<16x256xf32>
    %246 = arith.select %243, %241, %245 : vector<16x256xi1>, vector<16x256xf32>
    %cst_85 = arith.constant dense<0.000000e+00> : vector<32x256xf32>
    %247 = tpu.matmul %217, %246, %cst_85 {dimension_numbers = #tpu.dot_dimension_numbers<[1], [0], [0], [1], [0, 0, 1, 1], [], []>, precision = #tpu.contract_precision<fp32>} : vector<32x16xf32>, vector<16x256xf32>, vector<32x256xf32> -> vector<32x256xf32>
    %248 = vector.broadcast %219 : vector<32x1xf32> to vector<32x256xf32>
    %249 = arith.addf %247, %248 : vector<32x256xf32>
    %cst_86 = arith.constant 0.000000e+00 : f32
    %250 = vector.broadcast %cst_86 : f32 to vector<32x256xf32>
    %251 = arith.cmpf oge, %249, %250 : vector<32x256xf32>
    %cst_87 = arith.constant 0.00999999977 : f32
    %252 = vector.broadcast %cst_87 : f32 to vector<32x256xf32>
    %253 = arith.mulf %252, %249 : vector<32x256xf32>
    %254 = arith.select %251, %249, %253 : vector<32x256xi1>, vector<32x256xf32>
    %255 = vector.broadcast %221 : vector<1x256xf32> to vector<32x256xf32>
    %256 = arith.mulf %255, %254 : vector<32x256xf32>
    %257 = arith.addf %205, %256 : vector<32x256xf32>
    %258 = vector.broadcast %223 : vector<1x256xf32> to vector<32x256xf32>
    %259 = arith.mulf %258, %254 : vector<32x256xf32>
    %260 = arith.addf %208, %259 : vector<32x256xf32>
    %261 = vector.broadcast %225 : vector<1x256xf32> to vector<32x256xf32>
    %262 = arith.mulf %261, %254 : vector<32x256xf32>
    %263 = arith.addf %211, %262 : vector<32x256xf32>
    %264 = tpu.concatenate %257, %260, %263 in 0 : vector<32x256xf32>, vector<32x256xf32>, vector<32x256xf32> -> vector<96x256xf32>
    %c0_88 = arith.constant 0 : index
    %c0_89 = arith.constant 0 : index
    %265 = vector.load %arg6[%c0_88, %c0_89] : memref<64x96xf32, #tpu.memory_space<vmem>>, vector<64x96xf32>
    %cst_90 = arith.constant dense<0.000000e+00> : vector<64x256xf32>
    %266 = tpu.matmul %265, %264, %cst_90 {dimension_numbers = #tpu.dot_dimension_numbers<[1], [0], [0], [1], [0, 0, 1, 1], [], []>, precision = #tpu.contract_precision<fp32>} : vector<64x96xf32>, vector<96x256xf32>, vector<64x256xf32> -> vector<64x256xf32>
    %c0_91 = arith.constant 0 : index
    %c0_92 = arith.constant 0 : index
    %267 = vector.load %arg7[%c0_91, %c0_92] : memref<64x1xf32, #tpu.memory_space<vmem>>, vector<64x1xf32>
    %268 = vector.broadcast %267 : vector<64x1xf32> to vector<64x256xf32>
    %269 = arith.addf %266, %268 : vector<64x256xf32>
    %cst_93 = arith.constant 0.000000e+00 : f32
    %270 = vector.broadcast %cst_93 : f32 to vector<64x256xf32>
    %271 = arith.cmpf oge, %269, %270 : vector<64x256xf32>
    %cst_94 = arith.constant 0.00999999977 : f32
    %272 = vector.broadcast %cst_94 : f32 to vector<64x256xf32>
    %273 = arith.mulf %272, %269 : vector<64x256xf32>
    %274 = arith.select %271, %269, %273 : vector<64x256xi1>, vector<64x256xf32>
    %c0_95 = arith.constant 0 : index
    %c0_96 = arith.constant 0 : index
    %275 = vector.load %arg8[%c0_95, %c0_96] : memref<32x64xf32, #tpu.memory_space<vmem>>, vector<32x64xf32>
    %cst_97 = arith.constant dense<0.000000e+00> : vector<32x256xf32>
    %276 = tpu.matmul %275, %274, %cst_97 {dimension_numbers = #tpu.dot_dimension_numbers<[1], [0], [0], [1], [0, 0, 1, 1], [], []>, precision = #tpu.contract_precision<fp32>} : vector<32x64xf32>, vector<64x256xf32>, vector<32x256xf32> -> vector<32x256xf32>
    %c0_98 = arith.constant 0 : index
    %c0_99 = arith.constant 0 : index
    %277 = vector.load %arg9[%c0_98, %c0_99] : memref<32x1xf32, #tpu.memory_space<vmem>>, vector<32x1xf32>
    %278 = vector.broadcast %277 : vector<32x1xf32> to vector<32x256xf32>
    %279 = arith.addf %276, %278 : vector<32x256xf32>
    %cst_100 = arith.constant 0.000000e+00 : f32
    %280 = vector.broadcast %cst_100 : f32 to vector<32x256xf32>
    %281 = arith.cmpf oge, %279, %280 : vector<32x256xf32>
    %cst_101 = arith.constant 0.00999999977 : f32
    %282 = vector.broadcast %cst_101 : f32 to vector<32x256xf32>
    %283 = arith.mulf %282, %279 : vector<32x256xf32>
    %284 = arith.select %281, %279, %283 : vector<32x256xi1>, vector<32x256xf32>
    %c0_102 = arith.constant 0 : index
    %c0_103 = arith.constant 0 : index
    %285 = vector.load %arg10[%c0_102, %c0_103] : memref<3x32xf32, #tpu.memory_space<vmem>>, vector<3x32xf32>
    %cst_104 = arith.constant dense<0.000000e+00> : vector<3x256xf32>
    %286 = tpu.matmul %285, %284, %cst_104 {dimension_numbers = #tpu.dot_dimension_numbers<[1], [0], [0], [1], [0, 0, 1, 1], [], []>, precision = #tpu.contract_precision<fp32>} : vector<3x32xf32>, vector<32x256xf32>, vector<3x256xf32> -> vector<3x256xf32>
    %c0_105 = arith.constant 0 : index
    %c0_106 = arith.constant 0 : index
    %287 = vector.load %arg11[%c0_105, %c0_106] : memref<3x1xf32, #tpu.memory_space<vmem>>, vector<3x1xf32>
    %288 = vector.broadcast %287 : vector<3x1xf32> to vector<3x256xf32>
    %289 = arith.addf %286, %288 : vector<3x256xf32>
    %c0_107 = arith.constant 0 : index
    %c0_108 = arith.constant 0 : index
    %290 = vector.load %arg12[%c0_107, %c0_108] : memref<3x256xf32, #tpu.memory_space<vmem>>, vector<3x256xf32>
    tpu.vector_store %arg12[%c0_107, %c0_108], %289 {strides = array<i32>} : memref<3x256xf32, #tpu.memory_space<vmem>>, vector<3x256xf32>,
    return
  }
  func.func @transform_0(%arg0: i32) -> (i32, i32, i32) {
    %c0_i32 = arith.constant 0 : i32
    %c0_i32_0 = arith.constant 0 : i32
    %c0_i32_1 = arith.constant 0 : i32
    return %c0_i32, %c0_i32_0, %arg0 : i32, i32, i32
  }
  func.func @transform_1(%arg0: i32) -> (i32, i32, i32) {
    %c0_i32 = arith.constant 0 : i32
    %c0_i32_0 = arith.constant 0 : i32
    %c0_i32_1 = arith.constant 0 : i32
    %c0_i32_2 = arith.constant 0 : i32
    return %c0_i32, %c0_i32_0, %c0_i32_1 : i32, i32, i32
  }
  func.func @transform_2(%arg0: i32) -> (i32, i32, i32) {
    %c0_i32 = arith.constant 0 : i32
    %c0_i32_0 = arith.constant 0 : i32
    %c0_i32_1 = arith.constant 0 : i32
    %c0_i32_2 = arith.constant 0 : i32
    return %c0_i32, %c0_i32_0, %c0_i32_1 : i32, i32, i32
  }
  func.func @transform_3(%arg0: i32) -> (i32, i32, i32) {
    %c0_i32 = arith.constant 0 : i32
    %c0_i32_0 = arith.constant 0 : i32
    %c0_i32_1 = arith.constant 0 : i32
    %c0_i32_2 = arith.constant 0 : i32
    return %c0_i32, %c0_i32_0, %c0_i32_1 : i32, i32, i32
  }
  func.func @transform_4(%arg0: i32) -> (i32, i32, i32) {
    %c0_i32 = arith.constant 0 : i32
    %c0_i32_0 = arith.constant 0 : i32
    %c0_i32_1 = arith.constant 0 : i32
    %c0_i32_2 = arith.constant 0 : i32
    return %c0_i32, %c0_i32_0, %c0_i32_1 : i32, i32, i32
  }
  func.func @transform_5(%arg0: i32) -> (i32, i32) {
    %c0_i32 = arith.constant 0 : i32
    %c0_i32_0 = arith.constant 0 : i32
    %c0_i32_1 = arith.constant 0 : i32
    return %c0_i32, %c0_i32_0 : i32, i32
  }
  func.func @transform_6(%arg0: i32) -> (i32, i32) {
    %c0_i32 = arith.constant 0 : i32
    %c0_i32_0 = arith.constant 0 : i32
    %c0_i32_1 = arith.constant 0 : i32
    return %c0_i32, %c0_i32_0 : i32, i32
  }
  func.func @transform_7(%arg0: i32) -> (i32, i32) {
    %c0_i32 = arith.constant 0 : i32
    %c0_i32_0 = arith.constant 0 : i32
    %c0_i32_1 = arith.constant 0 : i32
    return %c0_i32, %c0_i32_0 : i32, i32
  }
  func.func @transform_8(%arg0: i32) -> (i32, i32) {
    %c0_i32 = arith.constant 0 : i32
    %c0_i32_0 = arith.constant 0 : i32
    %c0_i32_1 = arith.constant 0 : i32
    return %c0_i32, %c0_i32_0 : i32, i32
  }
  func.func @transform_9(%arg0: i32) -> (i32, i32) {
    %c0_i32 = arith.constant 0 : i32
    %c0_i32_0 = arith.constant 0 : i32
    %c0_i32_1 = arith.constant 0 : i32
    return %c0_i32, %c0_i32_0 : i32, i32
  }
  func.func @transform_10(%arg0: i32) -> (i32, i32) {
    %c0_i32 = arith.constant 0 : i32
    %c0_i32_0 = arith.constant 0 : i32
    %c0_i32_1 = arith.constant 0 : i32
    return %c0_i32, %c0_i32_0 : i32, i32
  }
  func.func @transform_11(%arg0: i32) -> (i32, i32) {
    %c0_i32 = arith.constant 0 : i32
    %c0_i32_0 = arith.constant 0 : i32
    return %c0_i32, %arg0 : i32, i32
  }
}

</mosaic_0001>

<bundles_post_ra>
// kernel: dnn_sym_forward_batched.1
= control target key start
LH: loop header
LB: loop body
LE: loop exit
PB: predicated region body
PF: predicated region fallthrough
CT: control target
= control target key end

     0   :  { %s9143_s0 = inlined_call_operand.vmem [shape: f32[3,5,512], index: 0, kind: input, shape index: {}]   ;;  %s9144_s1 = inlined_call_operand.vmem [shape: f32[2,16,3], index: 1, kind: input, shape index: {}]   ;;  %s9145_s2 = inlined_call_operand.vmem [shape: f32[2,16,1], index: 2, kind: input, shape index: {}]   ;;  %s9146_s3 = inlined_call_operand.vmem [shape: f32[2,32,16], index: 3, kind: input, shape index: {}]   ;;  %s9147_s4 = inlined_call_operand.vmem [shape: f32[2,32,1], index: 4, kind: input, shape index: {}]   ;;  %s9148_s5 = inlined_call_operand.vmem [shape: f32[64,96], index: 5, kind: input, shape index: {}]   ;;  %s9149_s6 = inlined_call_operand.vmem [shape: f32[64,1], index: 6, kind: input, shape index: {}]   ;;  %s9150_s7 = inlined_call_operand.vmem [shape: f32[32,64], index: 7, kind: input, shape index: {}]   ;;  %s9151_s8 = inlined_call_operand.vmem [shape: f32[32,1], index: 8, kind: input, shape index: {}]   ;;  %s9152_s9 = inlined_call_operand.vmem [shape: f32[3,32], index: 9, kind: input, shape index: {}]   ;;  %s9153_s10 = inlined_call_operand.vmem [shape: f32[3,1], index: 10, kind: input, shape index: {}]   ;;  %s9154_s11 = inlined_call_operand.hbm [shape: f32[3,512], index: 11, kind: output, shape index: {}]  }
   0x1   :  { %9268 = sst [smem:[#allocation53_spill]] %s9143_s0 }
   0x2   :  { %16 = vsyncpa [#allocation4], 0 }
   0x3   :  { %18 = vsyncpa [#allocation4 + $0x1], 0  ;;  %s6225_s17 = smov 0   ;;  %s6227_s18 = smov 0  }
   0x4   :  { %s6229_s19 = smov 0   ;;  %s6231_s20 = smov 0  }
   0x5 LB: > { %s6013_s21 = sadd.s32 4294967295, %s6160_s20   ;;  %s6014_s22 = sadd.s32 4294967294, %s6160_s20   ;;  %s6160_s20 = sphi %s6231_s20, %s9496_s20   ;;  %s6156_s19 = sphi %s6229_s19, %s9495_s19   ;;  %s6152_s18 = sphi %s6227_s18, %s9494_s18   ;;  %s6148_s17 = sphi %s6225_s17, %s9493_s17  }
   0x6   : > { %s6248_s23 = sadd.s32 1, %s6160_s20   ;;  %s31_s24 = sadd.s32 1, %s6156_s19 }
   0x7   : > { %s28_s25 = ssub.s32 %s6160_s20, %s6248_s23  ;;  %p38_p0 = scmp.ne.s32.totalorder %s6156_s19, %s6152_s18 }
   0x8   : > { %p29_p1 = scmp.eq.s32.totalorder %s28_s25, 0  ;;  %p39_p2 = scmp.eq.s32.totalorder %s6160_s20, 0 }
   0x9   : > { %p278_p3 = scmp.eq.s32.totalorder %s6013_s21, 1  ;;  %p283_p4 = scmp.ne.s32.totalorder %s6152_s18, %s6148_s17 }
   0xa   : > { %s6261_s26 = scalar_select %p29_p1, %s6156_s19, %s31_s24  }
   0xb   : > { %p40_p5 = por %p39_p2, %p38_p0  ;;  %p6263_p6 = por %p278_p3, %p38_p0 }
   0xc   : > { %p284_p7 = scmp.eq.s32.totalorder %s6014_s22, 1  ;;  %p6016_p9 = scmp.ge.s32.totalorder %s6160_s20, 2 }
   0xe   : > { %p6267_p8 = por %p284_p7, %p283_p4  ;;  %330 = sbr.rel (%p6016_p9) target bundleno = 35 (0x23), region = 56 }
  0x13   : > { %333 = sbr.rel (!%p40_p5) target bundleno = 35 (0x23), region = 60  ;;  %s335_s29 = sand.u32 (%p40_p5), 1, %s6156_s19  }
  0x14   : > { %s6038_s30 = sshll.u32 (%p40_p5), %s6160_s20, 4  ;;  %s6040_s12 = smul.u32 (%p40_p5), 48, %s335_s29 }
  0x15   : > { %s9271_s0 = sld [smem:[#allocation53_spill]] (%p40_p5) }
  0x16   : > { %s337_s16 = scalar_lea.vmem (%p40_p5), [#allocation2], %s6040_s12 }
  0x1b   : > { %s340_s15 = scalar_lea.vmem %s9271_s0, %s6038_s30 }
  0x1c   : > { %v353_v0 = vld [vmem:[%s340_s15] sm:$0xff]  ;;  %v355_v1 = vld [vmem:[%s340_s15 + $0x8] sm:$0xff] }
  0x1d   : > { %v357_v2 = vld [vmem:[%s340_s15 + $0x20] sm:$0xff]  ;;  %354 = vst [vmem:[%s337_s16] sm:$0xff] %v353_v0  ;;  %v359_v3 = vld [vmem:[%s340_s15 + $0x28] sm:$0xff] }
  0x1e   : > { %356 = vst [vmem:[%s337_s16 + $0x8] sm:$0xff] %v355_v1  ;;  %v361_v4 = vld [vmem:[%s340_s15 + $0x40] sm:$0xff]  ;;  %v363_v5 = vld [vmem:[%s340_s15 + $0x48] sm:$0xff] }
  0x1f   : > { %358 = vst [vmem:[%s337_s16 + $0x10] sm:$0xff] %v357_v2 }
  0x20   : > { %360 = vst [vmem:[%s337_s16 + $0x18] sm:$0xff] %v359_v3 }
  0x21   : > { %362 = vst [vmem:[%s337_s16 + $0x20] sm:$0xff] %v361_v4 }
  0x22   : > { %364 = vst [vmem:[%s337_s16 + $0x28] sm:$0xff] %v363_v5 }
  0x23 PF: > { %p6019_p10 = scmp.ge.s32.totalorder %s6160_s20, 1  ;;  %p369_p11 = scmp.lt.s32.totalorder %s6160_s20, 3 }
  0x25   : > { %p370_p12 = pnand %p6019_p10, %p369_p11 }
  0x27   : > { %373 = sbr.rel (%p370_p12) target bundleno = 1522 (0x5f2), region = 83 }
  0x2c   : > { %v424_v6 = vld [vmem:[%s9144_s1 + $0x8] sm:$0xff]  ;;  %v423_v7 = vld [vmem:[%s9144_s1] sm:$0xff]  ;;  %v6162_v8 = vmov 0   ;;  %v6163_v9 = vmov 2   ;;  %v6164_v10 = vmov 1   ;;  %v6022_v12 = vld [vmem:[%s9144_s1 + $0x18] sm:$0xff] }
  0x2d   : > { %6086 = vset.pattern.permute.xlu1 %v6162_v8  ;;  %6084 = vset.pattern.permute.xlu0 %v6162_v8  ;;  %v426_v11 = vld [vmem:[%s9145_s2 + $0x8] sm:$0xff]  ;;  %v425_v13 = vld [vmem:[%s9145_s2] sm:$0xff]  ;;  %v6021_v14 = vld [vmem:[%s9144_s1 + $0x10] sm:$0xff]  ;;  %s6342_s22 = sand.u32 1, %s6152_s18   ;;  %vm533_vm0 = vcmask 130048   ;;  %s6039_s25 = sshll.u32 %s6013_s21, 3 }
  0x2e   : > { %442 = vperm.xlu0 %6084, %v424_v6   ;;  %437 = vperm.xlu1 %6086, %v423_v7   ;;  %v6024_v15 = vld [vmem:[%s9145_s2 + $0x18] sm:$0xff]  ;;  %v6023_v16 = vld [vmem:[%s9145_s2 + $0x10] sm:$0xff]  ;;  %v432_v20 = vld [vmem:[%s9147_s4 + $0x8] sm:$0xff]  ;;  %s6041_s24 = smul.u32 48, %s6342_s22  ;;  %s6020_s16 = sshll.u32 %s6342_s22, 3 }
  0x2f   : > { %6088 = vset.pattern.permute.xlu2 %v6163_v9  ;;  %v434_v17 = vld [vmem:[%s9147_s4 + $0x18] sm:$0xff]  ;;  %v6031_v19 = vld [vmem:[%s9147_s4 + $0x30] sm:$0xff]  ;;  %v6030_v21 = vld [vmem:[%s9147_s4 + $0x28] sm:$0xff]  ;;  %s5944_s30 = scalar_lea.hbm %s9154_s11, %s6039_s25  ;;  %s414_s12 = scalar_lea.vmem [#allocation3], %s6020_s16 }
  0x30   : > { %474 = vperm.xlu2 %6088, %v424_v6   ;;  %v6032_v18 = vld [vmem:[%s9147_s4 + $0x38] sm:$0xff]  ;;  %v431_v22 = vld [vmem:[%s9147_s4] sm:$0xff]  ;;  %v3692_v25 = vld [vmem:[%s9149_s6 + $0x30] sm:$0xff]  ;;  %s378_s15 = scalar_lea.vmem [#allocation2], %s6041_s24  ;;  %s5946_s13 = sshll.u32 %s414_s12, 4  ;;  %s5947_s13 = int_to_ptr.vmem [resolvable:$true] %s5946_s13 }
  0x31   : > { %v3693_v23 = vld [vmem:[%s9149_s6 + $0x38] sm:$0xff]  ;;  %v3690_v24 = vld [vmem:[%s9149_s6 + $0x20] sm:$0xff]  ;;  %v3687_v26 = vld [vmem:[%s9149_s6 + $0x8] sm:$0xff]  ;;  %s5948_s14 = sshll.u32 %s5944_s30, 4  ;;  %s5933_s21 = scalar_lea.sflag [#allocation4], %s6342_s22  ;;  %s5949_s14 = int_to_ptr.hbm [resolvable:$true] %s5948_s14 }
  0x32   : > { %v3689_v27 = vld [vmem:[%s9149_s6 + $0x18] sm:$0xff]  ;;  %v4825_v28 = vld [vmem:[%s9151_s8 + $0x10] sm:$0xff]  ;;  %v3686_v29 = vld [vmem:[%s9149_s6] sm:$0xff]  ;;  %s6118_s16 = scalar_lea.hbm %s9154_s11, 16 }
  0x33   : > { %v5545_v31 = vld [vmem:[%s9153_s10] sm:$0x7]  ;;  %v6356_v34 = vld [vmem:[%s378_s15 + $0x28] sm:$0x1f]  ;;  %v6373_v43 = vld [vmem:[%s378_s15 + $0x18] sm:$0x1f] }
  0x34   : > { %v427_v32 = vld [vmem:[%s9146_s3] sm:$0xff]  ;;  %v4824_v37 = vld [vmem:[%s9151_s8 + $0x8] sm:$0xff]  ;;  %v6366_v39 = vperm.slane %v6356_v34, 0  ;;  %v6378_v45 = vperm.slane %v6356_v34, 3  ;;  %v6384_v47 = vperm.slane %v6356_v34, 4  ;;  %v6404_v58 = vperm.slane %v6373_v43, 0 }
  0x35   : > { %v6354_v33 = vld [vmem:[%s378_s15 + $0x20] sm:$0x1f]  ;;  %v535_v35 = vsel %vm533_vm0, %v427_v32, 0  ;;  %v6368_v40 = vld [vmem:[%s378_s15 + $0x8] sm:$0x1f]  ;;  %v6409_v60 = vperm.slane %v6373_v43, 3 }
  0x36   : > { %6085 = vset.pattern.permute.xlu0 %v6164_v10  ;;  %6087 = vset.pattern.permute.xlu1 %v6164_v10  ;;  %v417_v36 = vld [vmem:[%s378_s15] sm:$0x1f]  ;;  %v6363_v38 = vperm.slane %v6354_v33, 0  ;;  %9273 = vst [vmem:[#allocation7_spill] sm:$0xff] %v6366_v39  ;;  %v6371_v41 = vperm.slane %v6354_v33, 3  ;;  %v6375_v44 = vand.u32 4294901760, %v535_v35 }
  0x37   : > { %456 = vperm.xlu0 %6085, %v424_v6   ;;  %452 = vperm.xlu1 %6087, %v423_v7   ;;  %v419_v42 = vld [vmem:[%s378_s15 + $0x10] sm:$0x1f]  ;;  %9275 = vst [vmem:[#allocation9_spill] sm:$0xff] %v6378_v45  ;;  %v6381_v46 = vperm.slane %v6354_v33, 4  ;;  %v6386_v48 = vperm.slane %v417_v36, 0  ;;  %v6389_v49 = vperm.slane %v6368_v40, 0 }
  0x38   : > { %470 = vperm.xlu2 %6088, %v423_v7   ;;  %9272 = vst [vmem:[#allocation6_spill] sm:$0xff] %v6363_v38  ;;  %v6391_v50 = vperm.slane %v417_v36, 3  ;;  %v6394_v51 = vperm.slane %v6368_v40, 3  ;;  %v6396_v52 = vperm.slane %v417_v36, 4  ;;  %v6399_v55 = vperm.slane %v6368_v40, 4  ;;  %s6112_s15 = sshra.s32 %s5949_s14, 4  ;;  %s6113_s15 = int_to_ptr.hbm [resolvable:$true] %s6112_s15 }
  0x39   : > { %9274 = vst [vmem:[#allocation8_spill] sm:$0xff] %v6371_v41  ;;  %v6401_v57 = vperm.slane %v419_v42, 0  ;;  %v6406_v59 = vperm.slane %v419_v42, 3  ;;  %v6411_v61 = vperm.slane %v419_v42, 4  ;;  %v6414_v62 = vperm.slane %v6373_v43, 4  ;;  %s6114_s24 = scalar_lea.hbm %s6113_s15, 8  ;;  %p6119_p2 = scmp.lt.s32.totalorder %s6113_s15, %s9154_s11 }
  0x3a   : > { %9276 = vst [vmem:[#allocation10_spill] sm:$0xff] %v6381_v46  ;;  %v6417_v63 = vsub.f32 %v535_v35, %v6375_v44  ;;  %p6115_p13 = scmp.ne.s32.totalorder %s6113_s15, %s6114_s24  ;;  %p6120_p3 = scmp.lt.s32.totalorder %s6118_s16, %s6114_s24 }
  0x3b   : > { %9277 = vst [vmem:[#allocation11_spill] sm:$0xff] %v6384_v47 }
  0x3c   : > { %9278 = vst [vmem:[#allocation12_spill] sm:$0xff] %v6386_v48  ;;  %p6116_p0 = pnand %p6115_p13, %p6263_p6  ;;  %p6121_p4 = por %p6120_p3, %p6119_p2 }
  0x3d   : > { %9279 = vst [vmem:[#allocation13_spill] sm:$0xff] %v6389_v49 }
  0x3e   : > { %9280 = vst [vmem:[#allocation14_spill] sm:$0xff] %v6391_v50  ;;  %p6117_p1 = pneg %p6116_p0 }
  0x3f   : > { %6089 = vset.pattern.permute.xlu1 %v6162_v8  ;;  %6091 = vset.pattern.permute.xlu0 %v6162_v8  ;;  %9281 = vst [vmem:[#allocation15_spill] sm:$0xff] %v6394_v51 }
  0x40   : > { %494 = vperm.xlu1 %6089, %v426_v11   ;;  %1145 = vperm.xlu0 %6091, %v6022_v12   ;;  %9282 = vst [vmem:[#allocation16_spill] sm:$0xff] %v6396_v52  ;;  %p6122_p5 = pnand %p6121_p4, %p6117_p1 }
  0x41   : > { %6090 = vset.pattern.permute.xlu2 %v6162_v8  ;;  %9283 = vst [vmem:[#allocation17_spill] sm:$0xff] %v6399_v55 }
  0x42   : > { %489 = vperm.xlu2 %6090, %v425_v13   ;;  %9284 = vst [vmem:[#allocation18_spill] sm:$0xff] %v6401_v57  ;;  %v6443_v13 = vperm.slane %v417_v36, 2 }
  0x43   : > { %9285 = vst [vmem:[#allocation19_spill] sm:$0xff] %v6404_v58 }
  0x44   : > { %9286 = vst [vmem:[#allocation20_spill] sm:$0xff] %v6406_v59 }
  0x45   : > { %9287 = vst [vmem:[#allocation21_spill] sm:$0xff] %v6409_v60 }
  0x46   : > { %9288 = vst [vmem:[#allocation22_spill] sm:$0xff] %v6411_v61 }
  0x47   : > { %9289 = vst [vmem:[#allocation23_spill] sm:$0xff] %v6414_v62 }
  0x48   : > { %6092 = vset.pattern.permute.xlu1 %v6164_v10  ;;  %6094 = vset.pattern.permute.xlu0 %v6163_v9  ;;  %9290 = vst [vmem:[#allocation24_spill] sm:$0xff] %v6443_v13 }
  0x49   : > { %1159 = vperm.xlu1 %6092, %v6022_v12   ;;  %1173 = vperm.xlu0 %6094, %v6021_v14  }
  0x4a   : > { %1140 = vperm.xlu2 %6090, %v6021_v14  }
  0x51   : > { %1155 = vperm.xlu1 %6092, %v6021_v14   ;;  %6097 = vset.pattern.permute.xlu0 %v6162_v8  ;;  %v6446_v14 = vperm.slane %v6368_v40, 2 }
  0x52   : > { %6093 = vset.pattern.permute.xlu2 %v6163_v9 }
  0x53   : > { %1177 = vperm.xlu2 %6093, %v6022_v12   ;;  %v6441_v12 = vperm.slane %v417_v36, 1  ;;  %9291 = vst [vmem:[#allocation25_spill] sm:$0xff] %v6446_v14 }
  0x59   : > { %6095 = vset.pattern.permute.xlu1 %v6162_v8 }
  0x5a   : > { %1197 = vperm.xlu1 %6095, %v6024_v15   ;;  %v6449_v15 = vand.u32 4294901760, %v6417_v63 }
  0x5b   : > { %6096 = vset.pattern.permute.xlu2 %v6162_v8 }
  0x5c   : > { %1192 = vperm.xlu2 %6096, %v6023_v16  }
  0x62   : > { %530 = vperm.xlu1 %6095, %v434_v17   ;;  %v6452_v17 = vperm.slane %v419_v42, 1 }
  0x64   : > { %1233 = vperm.xlu2 %6096, %v6032_v18   ;;  %v6454_v18 = vperm.slane %v419_v42, 2 }
  0x66   : > { %9292 = vst [vmem:[#allocation26_spill] sm:$0xff] %v6454_v18 }
  0x6a   : > { %1228 = vperm.xlu1 %6095, %v6031_v19   ;;  %v6457_v19 = vperm.slane %v6373_v43, 2 }
  0x6c   : > { %520 = vperm.xlu2 %6096, %v432_v20   ;;  %9293 = vst [vmem:[#allocation27_spill] sm:$0xff] %v6457_v19 }
  0x72   : > { %1223 = vperm.xlu1 %6095, %v6030_v21  }
  0x74   : > { %515 = vperm.xlu2 %6096, %v431_v22  }
  0x7a   : > { %3731 = vperm.xlu1 %6095, %v3693_v23  }
  0x7c   : > { %3726 = vperm.xlu2 %6096, %v3692_v25  }
  0x82   : > { %3716 = vperm.xlu1 %6095, %v3690_v24  }
  0x84   : > { %3711 = vperm.xlu2 %6096, %v3689_v27  }
  0x8a   : > { %3701 = vperm.xlu1 %6095, %v3687_v26   ;;  %v475_v30 = vpop.permute.xlu2 %474 }
  0x8b   : > { %v481_v0 = vmul.f32 %v6363_v38, %v475_v30  ;;  %v6421_v1 = vmul.f32 %v6366_v39, %v475_v30  ;;  %v6424_v2 = vmul.f32 %v6371_v41, %v475_v30  ;;  %v6427_v3 = vmul.f32 %v6378_v45, %v475_v30 }
  0x8c   : > { %3696 = vperm.xlu2 %6096, %v3686_v29   ;;  %v6430_v4 = vmul.f32 %v6381_v46, %v475_v30  ;;  %v6433_v5 = vmul.f32 %v6384_v47, %v475_v30 }
  0x92   : > { %4839 = vperm.xlu1 %6095, %v4825_v28   ;;  %v471_v53 = vpop.permute.xlu2 %470 }
  0x93   : > { %v479_v6 = vmul.f32 %v6363_v38, %v471_v53  ;;  %v480_v7 = vmul.f32 %v6366_v39, %v471_v53  ;;  %v2460_v8 = vmul.f32 %v6371_v41, %v471_v53  ;;  %v2461_v9 = vmul.f32 %v6378_v45, %v471_v53  ;;  %v428_v41 = vld [vmem:[%s9146_s3 + $0x8] sm:$0xff] }
  0x94   : > { %4834 = vperm.xlu2 %6096, %v4824_v37   ;;  %v3078_v10 = vmul.f32 %v6381_v46, %v471_v53  ;;  %v3079_v11 = vmul.f32 %v6384_v47, %v471_v53 }
  0x9a   : > { %5548 = vperm.xlu1 %6095, %v5545_v31  }
  0xa0   : > { %v438_v54 = vpop.permute.xlu1 %437  ;;  %v443_v56 = vpop.permute.xlu0 %442 }
  0xa1   : > { %v447_v16 = vmul.f32 %v6386_v48, %v438_v54  ;;  %v448_v20 = vmul.f32 %v6389_v49, %v438_v54  ;;  %v2444_v21 = vmul.f32 %v6391_v50, %v438_v54  ;;  %v2445_v22 = vmul.f32 %v6394_v51, %v438_v54 }
  0xa2   : > { %v3062_v23 = vmul.f32 %v6396_v52, %v438_v54  ;;  %v3063_v24 = vmul.f32 %v6399_v55, %v438_v54  ;;  %v449_v25 = vmul.f32 %v6386_v48, %v443_v56  ;;  %v450_v26 = vmul.f32 %v6389_v49, %v443_v56  ;;  %v490_v54 = vpop.permute.xlu2 %489 }
  0xa3   : > { %v2446_v27 = vmul.f32 %v6391_v50, %v443_v56  ;;  %v2447_v28 = vmul.f32 %v6394_v51, %v443_v56  ;;  %v3064_v29 = vmul.f32 %v6396_v52, %v443_v56  ;;  %v3065_v30 = vmul.f32 %v6399_v55, %v443_v56 }
  0xa9   : > { %v457_v31 = vpop.permute.xlu0 %456  ;;  %v453_v32 = vpop.permute.xlu1 %452 }
  0xaa   : > { %v463_v36 = vmul.f32 %v6401_v57, %v457_v31  ;;  %v464_v37 = vmul.f32 %v6404_v58, %v457_v31  ;;  %v2452_v42 = vmul.f32 %v6406_v59, %v457_v31  ;;  %v2453_v53 = vmul.f32 %v6409_v60, %v457_v31 }
  0xab   : > { %v3070_v51 = vmul.f32 %v6411_v61, %v457_v31  ;;  %v3071_v47 = vmul.f32 %v6414_v62, %v457_v31  ;;  %v461_v56 = vmul.f32 %v6401_v57, %v453_v32  ;;  %v462_v55 = vmul.f32 %v6404_v58, %v453_v32 }
  0xac   : > { %v467_v52 = vadd.f32 %v463_v36, %v449_v25  ;;  %v468_v45 = vadd.f32 %v464_v37, %v450_v26  ;;  %v2456_v35 = vadd.f32 %v2452_v42, %v2446_v27  ;;  %v2457_v46 = vadd.f32 %v2453_v53, %v2447_v28 }
  0xad   : > { %v3074_v50 = vadd.f32 %v3070_v51, %v3064_v29  ;;  %v3075_v39 = vadd.f32 %v3071_v47, %v3065_v30  ;;  %v465_v49 = vadd.f32 %v461_v56, %v447_v16  ;;  %v466_v38 = vadd.f32 %v462_v55, %v448_v20 }
  0xae   : > { %v2450_v48 = vmul.f32 %v6406_v59, %v453_v32  ;;  %v2451_v31 = vmul.f32 %v6409_v60, %v453_v32  ;;  %v3068_v57 = vmul.f32 %v6411_v61, %v453_v32  ;;  %v3069_v58 = vmul.f32 %v6414_v62, %v453_v32 }
  0xaf   : > { %v483_v25 = vadd.f32 %v479_v6, %v465_v49  ;;  %v484_v26 = vadd.f32 %v480_v7, %v466_v38  ;;  %v485_v27 = vadd.f32 %v481_v0, %v467_v52  ;;  %v538_v28 = vsel %vm533_vm0, %v428_v41, 0 }
  0xb0   : > { %v2454_v36 = vadd.f32 %v2450_v48, %v2444_v21  ;;  %v2455_v37 = vadd.f32 %v2451_v31, %v2445_v22  ;;  %v3072_v42 = vadd.f32 %v3068_v57, %v3062_v23  ;;  %v3073_v51 = vadd.f32 %v3069_v58, %v3063_v24 }
  0xb1   : > { %v497_v47 = vadd.f32 %v490_v54, %v483_v25  ;;  %v486_v55 = vadd.f32 %v6421_v1, %v468_v45  ;;  %v2466_v16 = vadd.f32 %v6424_v2, %v2456_v35  ;;  %v2467_v20 = vadd.f32 %v6427_v3, %v2457_v46  ;;  %v6503_v46 = vpop.permute.xlu2 %1140 }
  0xb2   : > { %v2464_v29 = vadd.f32 %v2460_v8, %v2454_v36  ;;  %v2465_v30 = vadd.f32 %v2461_v9, %v2455_v37  ;;  %v3082_v53 = vadd.f32 %v3078_v10, %v3072_v42  ;;  %v3083_v32 = vadd.f32 %v3079_v11, %v3073_v51  ;;  %v495_v49 = vpop.permute.xlu1 %494  ;;  %v6507_v3 = vpop.permute.xlu0 %1145 }
  0xb3   : > { %v499_v38 = vadd.f32 %v495_v49, %v485_v27  ;;  %v500_v52 = vadd.f32 %v495_v49, %v486_v55  ;;  %v6491_v0 = vadd.f32 %v2466_v16, %v495_v49  ;;  %v6493_v41 = vadd.f32 %v2467_v20, %v495_v49 }
  0xb4   : > { %v6495_v48 = vadd.f32 %v2464_v29, %v490_v54  ;;  %v6497_v57 = vadd.f32 %v2465_v30, %v490_v54  ;;  %v6499_v45 = vadd.f32 %v3082_v53, %v490_v54  ;;  %v6501_v58 = vadd.f32 %v3083_v32, %v490_v54 }
  0xb5   : > { %v3084_v1 = vadd.f32 %v6430_v4, %v3074_v50  ;;  %v3085_v2 = vadd.f32 %v6433_v5, %v3075_v39  ;;  %vm503_vm1 = vcmp.ge.f32.partialorder %v499_v38, 0.0  ;;  %v6510_v6 = vperm.slane %v6354_v33, 1 }
  0xb6   : > { %9294 = vst [vmem:[#allocation28_spill] sm:$0xff] %v6499_v45  ;;  %v507_v7 = vmul.f32 0.01, %v499_v38  ;;  %vm501_vm2 = vcmp.ge.f32.partialorder %v497_v47, 0.0  ;;  %v505_v8 = vmul.f32 0.01, %v497_v47  ;;  %v6520_v50 = vmul.f32 %v6441_v12, %v6503_v46 }
  0xb7   : > { %9295 = vst [vmem:[#allocation29_spill] sm:$0xff] %v6501_v58  ;;  %v6512_v9 = vand.u32 4294901760, %v538_v28  ;;  %v6514_v10 = vadd.f32 %v3084_v1, %v495_v49  ;;  %v6516_v11 = vadd.f32 %v3085_v2, %v495_v49  ;;  %v6523_v39 = vperm.slane %v6354_v33, 2 }
  0xb8   : > { %v498_v4 = vadd.f32 %v490_v54, %v484_v26  ;;  %v511_v5 = vsel %vm503_vm1, %v499_v38, %v507_v7  ;;  %v509_v21 = vsel %vm501_vm2, %v497_v47, %v505_v8  ;;  %vm504_vm3 = vcmp.ge.f32.partialorder %v500_v52, 0.0 }
  0xb9   : > { %9296 = vst [vmem:[#allocation30_spill] sm:$0xff] %v6512_v9  ;;  %v6527_v22 = vmul.f32 %v6443_v13, %v6503_v46  ;;  %v6529_v23 = vand.u32 4294901760, %v511_v5  ;;  %v6531_v24 = vand.u32 4294901760, %v509_v21  ;;  %v508_v35 = vmul.f32 0.01, %v500_v52  ;;  %v6562_v29 = vpop.permute.xlu2 %1177 }
  0xba   : > { %9297 = vst [vmem:[#allocation31_spill] sm:$0xff] %v6514_v10  ;;  %v1152_v56 = vmul.f32 %v6441_v12, %v6507_v3  ;;  %v1828_v33 = vmul.f32 %v6443_v13, %v6507_v3  ;;  %v1829_v54 = vmul.f32 %v6446_v14, %v6507_v3  ;;  %v6540_v31 = vsub.f32 %v538_v28, %v6512_v9 }
  0xbb   : > { %9298 = vst [vmem:[#allocation32_spill] sm:$0xff] %v6516_v11  ;;  %561 = vmatpush.msra.mxu0 %v6529_v23  ;;  %696 = vmatpush.msra.mxu3 %v6529_v23  ;;  %v6544_v25 = vpop.permute.xlu1 %1159  ;;  %v612_v26 = vsub.f32 %v511_v5, %v6529_v23  ;;  %v9300_v27 = vsub.f32 %v6417_v63, %v6449_v15  ;;  %vm502_vm4 = vcmp.ge.f32.partialorder %v498_v4, 0.0  ;;  %v506_v30 = vmul.f32 0.01, %v498_v4  ;;  %v6573_v7 = vpop.permute.xlu0 %1173 }
  0xbc   : > { %9299 = vst [vmem:[#allocation33_spill] sm:$0xff] %v6523_v39  ;;  %v618_v37 = vsub.f32 %v509_v21, %v6531_v24  ;;  %v512_v42 = vsel %vm504_vm3, %v500_v52, %v508_v35  ;;  %v1166_v28 = vmul.f32 %v6452_v17, %v6544_v25  ;;  %v1834_v51 = vmul.f32 %v6454_v18, %v6544_v25 }
  0xbd   : > { %v6550_v36 = vand.u32 4294901760, %v9300_v27  ;;  %v1835_v47 = vmul.f32 %v6457_v19, %v6544_v25  ;;  %563 = vmatpush.msra.mxu0 %v6531_v24  ;;  %656 = vmatpush.msra.mxu2 %v612_v26  ;;  %v613_v55 = vand.u32 4294901760, %v612_v26  ;;  %v6560_v16 = vand.u32 4294901760, %v512_v42 }
  0xbe   : > { %v619_v20 = vand.u32 4294901760, %v618_v37  ;;  %698 = vmatpush.msra.mxu3 %v6531_v24  ;;  %v1838_v53 = vadd.f32 %v1834_v51, %v1828_v33  ;;  %v6566_v49 = vperm.slane %v6356_v34, 2  ;;  %v1844_v38 = vmul.f32 %v6523_v39, %v6562_v29 }
  0xbf   : > { %v1839_v32 = vadd.f32 %v1835_v47, %v1829_v54  ;;  %569 = vmatmul.f32.vlgmr.msra.gmra.mxu0 %v6550_v36  ;;  %702 = vmatmul.f32.vlgmr.msra.gmra.mxu3 %v6449_v15  ;;  %v510_v52 = vsel %vm502_vm4, %v498_v4, %v506_v30  ;;  %v864_v1 = vsub.f32 %v512_v42, %v6560_v16  ;;  %v6576_v8 = vand.u32 4294901760, %v6540_v31  ;;  %v429_v42 = vld [vmem:[%s9146_s3 + $0x10] sm:$0xff] }
  0xc0   : > { %9301 = vst [vmem:[#allocation34_spill] sm:$0xff] %v6566_v49  ;;  %v614_v2 = vsub.f32 %v612_v26, %v613_v55  ;;  %v1827_v5 = vmul.f32 %v6446_v14, %v6503_v46  ;;  %659 = vmatpush.msra.mxu2 %v618_v37  ;;  %741 = vmatpush.msrb.mxu0 %v613_v55  ;;  %v6582_v35 = vand.u32 4294901760, %v510_v52  ;;  %vm2474_vm13 = vcmp.ge.f32.partialorder %v6491_v0, 0.0 }
  0xc1   : > { %v1184_v21 = vmul.f32 %v6510_v6, %v6562_v29  ;;  %v620_v33 = vsub.f32 %v618_v37, %v619_v20  ;;  %v1170_v4 = vadd.f32 %v1166_v28, %v1152_v56  ;;  %662 = vmatmul.f32.vlgmr.msra.gmra.mxu2 %v6417_v63  ;;  %v1845_v54 = vmul.f32 %v6566_v49, %v6562_v29  ;;  %v6617_v14 = vpop.permute.xlu2 %1192 }
  0xc2   : > { %v615_v26 = vand.u32 4294901760, %v614_v2  ;;  %v865_v27 = vand.u32 4294901760, %v864_v1  ;;  %813 = vmatpush.msrb.mxu2 %v6560_v16  ;;  %745 = vmatpush.msrb.mxu0 %v619_v20  ;;  %v870_v51 = vsub.f32 %v510_v52, %v6582_v35  ;;  %v1842_v37 = vmul.f32 %v6523_v39, %v6573_v7 }
  0xc3   : > { %v575_v56 = vsub.f32 %v6540_v31, %v6576_v8  ;;  %v6596_v47 = vpop.permute.xlu1 %1155  ;;  %v621_v55 = vand.u32 4294901760, %v620_v33  ;;  %v1843_v30 = vmul.f32 %v6566_v49, %v6573_v7  ;;  %v1848_v2 = vadd.f32 %v1844_v38, %v1838_v53  ;;  %v430_v33 = vld [vmem:[%s9146_s3 + $0x18] sm:$0xff] }
  0xc4   : > { %908 = vmatpush.msra.mxu0 %v864_v1  ;;  %616 = vmatpush.msra.mxu1 %v615_v26  ;;  %v866_v28 = vsub.f32 %v864_v1, %v865_v27  ;;  %v1164_v20 = vmul.f32 %v6452_v17, %v6596_v47  ;;  %v1832_v52 = vmul.f32 %v6454_v18, %v6596_v47  ;;  %v541_v1 = vsel %vm533_vm0, %v429_v42, 0 }
  0xc5   : > { %815 = vmatpush.msrb.mxu2 %v6582_v35  ;;  %v1833_v62 = vmul.f32 %v6457_v19, %v6596_v47  ;;  %v871_v53 = vand.u32 4294901760, %v870_v51  ;;  %v6611_v38 = vand.u32 4294901760, %v575_v56  ;;  %v1849_v60 = vadd.f32 %v1845_v54, %v1839_v32 }
  0xc6   : > { %v867_v26 = vand.u32 4294901760, %v866_v28  ;;  %911 = vmatpush.msra.mxu0 %v870_v51  ;;  %v1168_v61 = vadd.f32 %v1164_v20, %v6520_v50  ;;  %v1836_v59 = vadd.f32 %v1832_v52, %v6527_v22  ;;  %622 = vmatpush.msra.mxu1 %v621_v55  ;;  %v1182_v42 = vmul.f32 %v6510_v6, %v6573_v7 }
  0xc7   : > { %993 = vmatpush.msra.mxu2 %v865_v27  ;;  %v1837_v49 = vadd.f32 %v1833_v62, %v1827_v5  ;;  %v872_v19 = vsub.f32 %v870_v51, %v871_v53  ;;  %v6619_v27 = vand.u32 4294901760, %v541_v1  ;;  %v544_v56 = vsel %vm533_vm0, %v430_v33, 0  ;;  %577 = vmatmul.f32.gmra.mxu0 %v6611_v38 }
  0xc8   : > { %868 = vmatpush.msrb.mxu3 %v867_v26  ;;  %624 = vmatmul.f32.vlgmr.msra.gmra.mxu1 %v6375_v44  ;;  %v1846_v50 = vadd.f32 %v1842_v37, %v1836_v59  ;;  %v6624_v22 = vand.u32 4294901760, %v544_v56  ;;  %v1186_v54 = vadd.f32 %v1182_v42, %v1168_v61  ;;  %v1188_v28 = vadd.f32 %v1184_v21, %v1170_v4  ;;  %v433_v59 = vld [vmem:[%s9147_s4 + $0x10] sm:$0xff] }
  0xc9   : > { %997 = vmatpush.msra.mxu2 %v871_v53  ;;  %9302 = vst [vmem:[#allocation35_spill] sm:$0xff] %v6619_v27  ;;  %v873_v62 = vand.u32 4294901760, %v872_v19  ;;  %708 = vmatmul.f32.gmra.mxu3 %v6576_v8  ;;  %v1847_v32 = vadd.f32 %v1843_v30, %v1837_v49  ;;  %v6629_v5 = vsub.f32 %v541_v1, %v6619_v27  ;;  %v6674_v1 = vperm.slane %v6373_v43, 1 }
  0xca   : > { %9303 = vst [vmem:[#allocation36_spill] sm:$0xff] %v6624_v22  ;;  %778 = vmatpush.msrb.mxu1 %v6529_v23  ;;  %667 = vmatmul.f32.gmra.mxu2 %v6540_v31  ;;  %v6633_v51 = vadd.f32 %v1846_v50, %v6617_v14  ;;  %v6648_v61 = vsub.f32 %v544_v56, %v6624_v22  ;;  %v6686_v50 = vperm.slane %v6356_v34, 1  ;;  %vm2472_vm14 = vcmp.ge.f32.partialorder %v6495_v48, 0.0 }
  0xcb   : > { %9304 = vst [vmem:[#allocation37_spill] sm:$0xff] %v6629_v5  ;;  %874 = vmatpush.msrb.mxu3 %v873_v62  ;;  %v6640_v19 = vadd.f32 %v1847_v32, %v6617_v14  ;;  %v6643_v23 = vand.u32 4294901760, %v6629_v5  ;;  %525 = vperm.xlu0 %6097, %v433_v59   ;;  %v1200_v21 = vadd.f32 %v6617_v14, %v1186_v54  ;;  %vm2475_vm15 = vcmp.ge.f32.partialorder %v6493_v41, 0.0 }
  0xcc   : > { %780 = vmatpush.msrb.mxu1 %v6531_v24  ;;  %9306 = vst [vmem:[#allocation39_spill] sm:$0xff] %v6648_v61  ;;  %v1198_v49 = vpop.permute.xlu1 %1197  ;;  %v6661_v30 = vand.u32 4294901760, %v6648_v61  ;;  %v1167_v53 = vmul.f32 %v6674_v1, %v6544_v25  ;;  %v1165_v62 = vmul.f32 %v6674_v1, %v6596_v47  ;;  %v1183_v59 = vmul.f32 %v6686_v50, %v6573_v7 }
  0xcd   : > { %9305 = vst [vmem:[#allocation38_spill] sm:$0xff] %v6643_v23  ;;  %1030 = vmatpush.msra.mxu3 %v6560_v16  ;;  %v1202_v24 = vadd.f32 %v1198_v49, %v1188_v28  ;;  %v6653_v4 = vadd.f32 %v1848_v2, %v1198_v49  ;;  %v6655_v37 = vadd.f32 %v1849_v60, %v1198_v49  ;;  %v1208_v20 = vmul.f32 0.01, %v1200_v21 }
  0xce   : > { %948 = vmatpush.msra.mxu1 %v6560_v16  ;;  %v583_v55 = vsub.f32 %v6629_v5, %v6643_v23  ;;  %9307 = vst [vmem:[#allocation40_spill] sm:$0xff] %v6661_v30  ;;  %vm1204_vm6 = vcmp.ge.f32.partialorder %v1200_v21, 0.0  ;;  %v591_v60 = vsub.f32 %v6648_v61, %v6661_v30  ;;  %v6671_v2 = vperm.slane %v6368_v40, 1 }
  0xcf   : > { %1032 = vmatpush.msra.mxu3 %v6582_v35  ;;  %vm1206_vm5 = vcmp.ge.f32.partialorder %v1202_v24, 0.0  ;;  %v1210_v16 = vmul.f32 0.01, %v1202_v24  ;;  %9310 = vst [vmem:[#allocation43_spill] sm:$0xff] %v6674_v1  ;;  %v1212_v26 = vsel %vm1204_vm6, %v1200_v21, %v1208_v20  ;;  %vm1856_vm9 = vcmp.ge.f32.partialorder %v6653_v4, 0.0 }
  0xd0   : > { %950 = vmatpush.msra.mxu1 %v6582_v35  ;;  %v6664_v52 = vand.u32 4294901760, %v583_v55  ;;  %9309 = vst [vmem:[#allocation42_spill] sm:$0xff] %v6671_v2  ;;  %v1153_v42 = vmul.f32 %v6671_v2, %v6507_v3  ;;  %v6682_v56 = vand.u32 4294901760, %v591_v60  ;;  %v6689_v40 = vand.u32 4294901760, %v1212_v26 }
  0xd1   : > { %628 = vmatmul.f32.gmra.mxu1 %v6512_v9  ;;  %714 = vmatmul.f32.gmra.mxu3 %v6643_v23  ;;  %v1214_v35 = vsel %vm1206_vm5, %v1202_v24, %v1210_v16  ;;  %9312 = vst [vmem:[#allocation45_spill] sm:$0xff] %v6686_v50  ;;  %v1185_v3 = vmul.f32 %v6686_v50, %v6562_v29  ;;  %vm1854_vm10 = vcmp.ge.f32.partialorder %v6633_v51, 0.0  ;;  %vm1857_vm11 = vcmp.ge.f32.partialorder %v6655_v37, 0.0 }
  0xd2   : > { %9308 = vst [vmem:[#allocation41_spill] sm:$0xff] %v6664_v52  ;;  %672 = vmatmul.f32.gmra.mxu2 %v6629_v5  ;;  %585 = vmatmul.f32.gmra.mxu0 %v6664_v52  ;;  %v6676_v33 = vand.u32 4294901760, %v1214_v35  ;;  %v1171_v25 = vadd.f32 %v1167_v53, %v1153_v42  ;;  %v1151_v34 = vmul.f32 %v6671_v2, %v6503_v46  ;;  %vm1855_vm12 = vcmp.ge.f32.partialorder %v6640_v19, 0.0 }
  0xd3   : > { %9311 = vst [vmem:[#allocation44_spill] sm:$0xff] %v6682_v56  ;;  %v1320_v32 = vsub.f32 %v1212_v26, %v6689_v40 }
  0xd4   : > { %v6692_v43 = vsub.f32 %v1214_v35, %v6676_v33  ;;  %v1169_v28 = vadd.f32 %v1165_v62, %v1151_v34  ;;  %v1189_v21 = vadd.f32 %v1185_v3, %v1171_v25 }
  0xd5   : > { %v1321_v47 = vand.u32 4294901760, %v1320_v32 }
  0xd6   : > { %v1315_v54 = vand.u32 4294901760, %v6692_v43  ;;  %v1187_v46 = vadd.f32 %v1183_v59, %v1169_v28  ;;  %v1203_v24 = vadd.f32 %v1198_v49, %v1189_v21  ;;  %v6025_v59 = vld [vmem:[%s9146_s3 + $0x20] sm:$0xff] }
  0xd7   : > { %v1322_v55 = vsub.f32 %v1320_v32, %v1321_v47 }
  0xd8   : > { %v1316_v29 = vsub.f32 %v6692_v43, %v1315_v54  ;;  %v1201_v16 = vadd.f32 %v6617_v14, %v1187_v46  ;;  %v1211_v20 = vmul.f32 0.01, %v1203_v24  ;;  %vm1207_vm7 = vcmp.ge.f32.partialorder %v1203_v24, 0.0 }
  0xd9   : > { %632 = vmatmul.f32.gmra.mxu1 %v6619_v27  ;;  %720 = vmatmul.f32.gmra.mxu3 %v6661_v30  ;;  %v1323_v49 = vand.u32 4294901760, %v1322_v55 }
  0xda   : > { %677 = vmatmul.f32.gmra.mxu2 %v6648_v61  ;;  %593 = vmatmul.f32.gmra.mxu0 %v6682_v56  ;;  %v1317_v7 = vand.u32 4294901760, %v1316_v29  ;;  %v1209_v35 = vmul.f32 0.01, %v1201_v16  ;;  %v1215_v60 = vsel %vm1207_vm7, %v1203_v24, %v1211_v20  ;;  %vm1205_vm8 = vcmp.ge.f32.partialorder %v1201_v16, 0.0  ;;  %v6029_v29 = vld [vmem:[%s9147_s4 + $0x20] sm:$0xff] }
  0xdb   : > { %v6721_v26 = vand.u32 4294901760, %v1215_v60  ;;  %1218 = vperm.xlu0 %6097, %v6029_v29  }
  0xdc   : > { %v1213_v14 = vsel %vm1205_vm8, %v1201_v16, %v1209_v35 }
  0xdd   : > { %v6726_v53 = vsub.f32 %v1215_v60, %v6721_v26  ;;  %v6729_v42 = vand.u32 4294901760, %v1213_v14 }
  0xdf   : > { %v6734_v25 = vsub.f32 %v1213_v14, %v6729_v42  ;;  %v6028_v14 = vld [vmem:[%s9146_s3 + $0x38] sm:$0xff] }
  0xe1   : > { %636 = vmatmul.f32.gmra.mxu1 %v6624_v22  ;;  %876 = vmatmul.f32.vlgmr.msrb.gmra.mxu3 %v6375_v44  ;;  %v1573_v62 = vand.u32 4294901760, %v6734_v25 }
  0xe2   : > { %1398 = vmatpush.msrb.mxu3 %v6676_v33  ;;  %821 = vmatmul.f32.vlgmr.msrb.gmra.mxu2 %v6550_v36 }
  0xe3   : > { %1358 = vmatpush.msrb.mxu2 %v6692_v43  ;;  %747 = vmatmul.f32.vlgmr.msrb.gmra.mxu0 %v6375_v44  ;;  %v1567_v43 = vand.u32 4294901760, %v6726_v53 }
  0xe4   : > { %1400 = vmatpush.msrb.mxu3 %v6689_v40  ;;  %1263 = vmatpush.msrb.mxu0 %v6676_v33 }
  0xe5   : > { %1361 = vmatpush.msrb.mxu2 %v1320_v32  ;;  %v1568_v3 = vsub.f32 %v6726_v53, %v1567_v43  ;;  %v1574_v32 = vsub.f32 %v6734_v25, %v1573_v62 }
  0xe6   : > { %1265 = vmatpush.msrb.mxu0 %v6689_v40 }
  0xe7   : > { %v1569_v34 = vand.u32 4294901760, %v1568_v3  ;;  %v1575_v28 = vand.u32 4294901760, %v1574_v32  ;;  %v1246_v32 = vsel %vm533_vm0, %v6028_v14, 0 }
  0xe9   : > { %782 = vmatmul.f32.vlgmr.msrb.gmra.mxu1 %v6375_v44  ;;  %880 = vmatmul.f32.gmra.mxu3 %v6512_v9 }
  0xea   : > { %1318 = vmatpush.msrb.mxu1 %v1317_v7  ;;  %829 = vmatmul.f32.gmra.mxu2 %v6611_v38  ;;  %v6027_v7 = vld [vmem:[%s9146_s3 + $0x30] sm:$0xff] }
  0xeb   : > { %751 = vmatmul.f32.gmra.mxu0 %v6512_v9  ;;  %v1243_v20 = vsel %vm533_vm0, %v6027_v7, 0 }
  0xec   : > { %1324 = vmatpush.msrb.mxu1 %v1323_v49  ;;  %v6799_v60 = vand.u32 4294901760, %v1243_v20 }
  0xf1   : > { %786 = vmatmul.f32.gmra.mxu1 %v6512_v9  ;;  %884 = vmatmul.f32.gmra.mxu3 %v6619_v27 }
  0xf2   : > { %837 = vmatmul.f32.gmra.mxu2 %v6664_v52  ;;  %v6932_v52 = vpop.permute.xlu1 %530 }
  0xf3   : > { %755 = vmatmul.f32.gmra.mxu0 %v6619_v27  ;;  %9317 = vst [vmem:[#allocation49_spill] sm:$0xff] %v6932_v52 }
  0xf9   : > { %790 = vmatmul.f32.gmra.mxu1 %v6619_v27  ;;  %888 = vmatmul.f32.gmra.mxu3 %v6624_v22 }
  0xfa   : > { %845 = vmatmul.f32.gmra.mxu2 %v6682_v56 }
  0xfb   : > { %759 = vmatmul.f32.gmra.mxu0 %v6624_v22 }
 0x101   : > { %794 = vmatmul.f32.gmra.mxu1 %v6624_v22  ;;  %1034 = vmatmul.f32.vlgmr.msra.gmra.mxu3 %v6375_v44 }
 0x102   : > { %1570 = vmatpush.msra.mxu3 %v1569_v34  ;;  %999 = vmatmul.f32.vlgmr.msra.gmra.mxu2 %v6375_v44  ;;  %v6812_v34 = vsub.f32 %v1243_v20, %v6799_v60 }
 0x103   : > { %1515 = vmatpush.msra.mxu2 %v6721_v26  ;;  %914 = vmatmul.f32.vlgmr.msra.gmra.mxu0 %v6417_v63 }
 0x104   : > { %1576 = vmatpush.msra.mxu3 %v1575_v28  ;;  %1443 = vmatpush.msra.mxu0 %v1315_v54  ;;  %v1237_v54 = vsel %vm533_vm0, %v6025_v59, 0  ;;  %v6823_v59 = vand.u32 4294901760, %v1246_v32 }
 0x105   : > { %1517 = vmatpush.msra.mxu2 %v6729_v42  ;;  %v6760_v21 = vand.u32 4294901760, %v1237_v54 }
 0x106   : > { %1447 = vmatpush.msra.mxu0 %v1321_v47 }
 0x109   : > { %954 = vmatmul.f32.vlgmr.msra.gmra.mxu1 %v6449_v15  ;;  %1038 = vmatmul.f32.gmra.mxu3 %v6512_v9 }
 0x10a   : > { %1480 = vmatpush.msra.mxu1 %v6676_v33  ;;  %1003 = vmatmul.f32.gmra.mxu2 %v6512_v9  ;;  %v6026_v33 = vld [vmem:[%s9146_s3 + $0x28] sm:$0xff] }
 0x10b   : > { %919 = vmatmul.f32.gmra.mxu0 %v6540_v31  ;;  %v1240_v47 = vsel %vm533_vm0, %v6026_v33, 0  ;;  %vm2473_vm0 = vcmp.ge.f32.partialorder %v6497_v57, 0.0 }
 0x10c   : > { %1482 = vmatpush.msra.mxu1 %v6689_v40  ;;  %v6769_v40 = vsub.f32 %v1237_v54, %v6760_v21  ;;  %v6779_v24 = vand.u32 4294901760, %v1240_v47  ;;  %v1860_v54 = vmul.f32 0.01, %v6653_v4 }
 0x10e   : > { %v6777_v46 = vand.u32 4294901760, %v6769_v40  ;;  %v6790_v16 = vsub.f32 %v1240_v47, %v6779_v24  ;;  %v1864_v47 = vsel %vm1856_vm9, %v6653_v4, %v1860_v54 }
 0x110   : > { %v1269_v55 = vsub.f32 %v6769_v40, %v6777_v46  ;;  %v6797_v35 = vand.u32 4294901760, %v6790_v16 }
 0x111   : > { %960 = vmatmul.f32.gmra.mxu1 %v6576_v8  ;;  %1042 = vmatmul.f32.gmra.mxu3 %v6619_v27 }
 0x112   : > { %1007 = vmatmul.f32.gmra.mxu2 %v6619_v27  ;;  %v6794_v49 = vand.u32 4294901760, %v1269_v55  ;;  %v1277_v3 = vsub.f32 %v6790_v16, %v6797_v35  ;;  %v6854_v55 = vand.u32 4294901760, %v1864_v47 }
 0x113   : > { %924 = vmatmul.f32.gmra.mxu0 %v6629_v5 }
 0x114   : > { %v6817_v28 = vand.u32 4294901760, %v1277_v3 }
 0x119   : > { %966 = vmatmul.f32.gmra.mxu1 %v6643_v23  ;;  %1046 = vmatmul.f32.gmra.mxu3 %v6624_v22 }
 0x11a   : > { %1011 = vmatmul.f32.gmra.mxu2 %v6624_v22  ;;  %v1861_v22 = vmul.f32 0.01, %v6655_v37 }
 0x11b   : > { %929 = vmatmul.f32.gmra.mxu0 %v6648_v61 }
 0x121   : > { %972 = vmatmul.f32.gmra.mxu1 %v6661_v30  ;;  %1404 = vmatmul.f32.vlgmr.msrb.gmra.mxu3 %v6777_v46 }
 0x122   : > { %1732 = vmatpush.msrb.mxu3 %v6721_v26  ;;  %1364 = vmatmul.f32.vlgmr.msrb.gmra.mxu2 %v6769_v40 }
 0x123   : > { %1695 = vmatpush.msrb.mxu2 %v1567_v43  ;;  %1271 = vmatmul.f32.vlgmr.msrb.gmra.mxu0 %v6794_v49  ;;  %v6821_v43 = vand.u32 4294901760, %v6812_v34 }
 0x124   : > { %1734 = vmatpush.msrb.mxu3 %v6729_v42  ;;  %1610 = vmatpush.msrb.mxu0 %v6726_v53 }
 0x125   : > { %1699 = vmatpush.msrb.mxu2 %v1573_v62  ;;  %v1285_v53 = vsub.f32 %v6812_v34, %v6821_v43  ;;  %v6835_v62 = vpop.permute.xlu2 %1233 }
 0x126   : > { %1613 = vmatpush.msrb.mxu0 %v6734_v25  ;;  %v6833_v25 = vsub.f32 %v1246_v32, %v6823_v59  ;;  %v6866_v32 = vsub.f32 %v1864_v47, %v6854_v55 }
 0x127   : > { %v6838_v33 = vand.u32 4294901760, %v1285_v53 }
 0x128   : > { %v9204_v53 = vand.u32 4294901760, %v6866_v32 }
 0x129   : > { %1326 = vmatmul.f32.vlgmr.msrb.gmra.mxu1 %v6760_v21  ;;  %1410 = vmatmul.f32.gmra.mxu3 %v6797_v35 }
 0x12a   : > { %1650 = vmatpush.msrb.mxu1 %v6721_v26  ;;  %1369 = vmatmul.f32.gmra.mxu2 %v6790_v16  ;;  %v6842_v26 = vand.u32 4294901760, %v6833_v25  ;;  %v1934_v47 = vsub.f32 %v6866_v32, %v9204_v53 }
 0x12b   : > { %1279 = vmatmul.f32.gmra.mxu0 %v6817_v28 }
 0x12c   : > { %1652 = vmatpush.msrb.mxu1 %v6729_v42  ;;  %v1858_v42 = vmul.f32 0.01, %v6633_v51  ;;  %v1293_v29 = vsub.f32 %v6833_v25, %v6842_v26  ;;  %v1935_v11 = vand.u32 4294901760, %v1934_v47 }
 0x12d   : > { %v6859_v14 = vpop.permute.xlu2 %520 }
 0x12e   : > { %v1862_v7 = vsel %vm1854_vm10, %v6633_v51, %v1858_v42  ;;  %v6856_v20 = vand.u32 4294901760, %v1293_v29  ;;  %9313 = vst [vmem:[#allocation46_spill] sm:$0xff] %v6859_v14 }
 0x12f   : > { %v6862_v3 = vand.u32 4294901760, %v1862_v7 }
 0x131   : > { %1330 = vmatmul.f32.gmra.mxu1 %v6779_v24  ;;  %1416 = vmatmul.f32.gmra.mxu3 %v6821_v43  ;;  %v6870_v4 = vsub.f32 %v1862_v7, %v6862_v3 }
 0x132   : > { %1374 = vmatmul.f32.gmra.mxu2 %v6812_v34 }
 0x133   : > { %1287 = vmatmul.f32.gmra.mxu0 %v6838_v33  ;;  %v9315_v18 = vand.u32 4294901760, %v6870_v4 }
 0x135   : > { %v6878_v29 = vpop.permute.xlu2 %515  ;;  %v1940_v13 = vsub.f32 %v6870_v4, %v9315_v18  ;;  %v1859_v18 = vmul.f32 0.01, %v6640_v19 }
 0x136   : > { %9314 = vst [vmem:[#allocation47_spill] sm:$0xff] %v6878_v29 }
 0x137   : > { %v1941_v56 = vand.u32 4294901760, %v1940_v13 }
 0x139   : > { %1334 = vmatmul.f32.gmra.mxu1 %v6799_v60  ;;  %1422 = vmatmul.f32.gmra.mxu3 %v6842_v26 }
 0x13a   : > { %1379 = vmatmul.f32.gmra.mxu2 %v6833_v25 }
 0x13b   : > { %1295 = vmatmul.f32.gmra.mxu0 %v6856_v20 }
 0x13c   : > { %v570_v51 = vpop.f32.mrf.mxu0 }
 0x13d   : > { %v571_v7 = vadd.f32 %v570_v51, %v6878_v29 }
 0x141   : > { %1338 = vmatmul.f32.gmra.mxu1 %v6823_v59  ;;  %1578 = vmatmul.f32.vlgmr.msra.gmra.mxu3 %v6760_v21 }
 0x142   : > { %2016 = vmatpush.msra.mxu3 %v6854_v55  ;;  %1523 = vmatmul.f32.vlgmr.msra.gmra.mxu2 %v6794_v49  ;;  %v703_v42 = vpop.f32.mrf.mxu3 }
 0x143   : > { %1976 = vmatpush.msra.mxu2 %v6866_v32  ;;  %1449 = vmatmul.f32.vlgmr.msra.gmra.mxu0 %v6760_v21 }
 0x144   : > { %2018 = vmatpush.msra.mxu3 %v6862_v3  ;;  %v663_v54 = vpop.f32.mrf.mxu2  ;;  %1881 = vmatpush.msra.mxu0 %v6854_v55  ;;  %v578_v53 = vpop.f32.mrf.mxu0 }
 0x145   : > { %1979 = vmatpush.msra.mxu2 %v6870_v4  ;;  %v625_v39 = vpop.f32.mrf.mxu1 }
 0x146   : > { %v626_v58 = vadd.f32 %v625_v39, %v571_v7  ;;  %1883 = vmatpush.msra.mxu0 %v6862_v3  ;;  %v6905_v7 = vpop.permute.xlu0 %525 }
 0x147   : > { %9316 = vst [vmem:[#allocation48_spill] sm:$0xff] %v6905_v7 }
 0x148   : > { %v664_v51 = vadd.f32 %v663_v54, %v626_v58  ;;  %v579_v58 = vadd.f32 %v578_v53, %v6859_v14  ;;  %v1865_v54 = vsel %vm1857_vm11, %v6655_v37, %v1861_v22 }
 0x149   : > { %1484 = vmatmul.f32.vlgmr.msra.gmra.mxu1 %v6760_v21  ;;  %1582 = vmatmul.f32.gmra.mxu3 %v6779_v24 }
 0x14a   : > { %1936 = vmatpush.msra.mxu1 %v1935_v11  ;;  %v6897_v61 = vadd.f32 %v703_v42, %v664_v51  ;;  %1531 = vmatmul.f32.gmra.mxu2 %v6817_v28  ;;  %v1863_v42 = vsel %vm1855_vm12, %v6640_v19, %v1859_v18  ;;  %v6908_v51 = vand.u32 4294901760, %v1865_v54 }
 0x14b   : > { %1453 = vmatmul.f32.gmra.mxu0 %v6779_v24  ;;  %v6916_v37 = vand.u32 4294901760, %v1863_v42 }
 0x14c   : > { %1942 = vmatpush.msra.mxu1 %v1941_v56  ;;  %v709_v39 = vpop.f32.mrf.mxu3 }
 0x14d   : > { %v668_v13 = vpop.f32.mrf.mxu2 }
 0x14e   : > { %v629_v11 = vpop.f32.mrf.mxu1 }
 0x14f   : > { %v630_v47 = vadd.f32 %v629_v11, %v579_v58  ;;  %v586_v56 = vpop.f32.mrf.mxu0  ;;  %v6919_v58 = vsub.f32 %v1865_v54, %v6908_v51 }
 0x150   : > { %v587_v22 = vadd.f32 %v586_v56, %v6905_v7 }
 0x151   : > { %v669_v30 = vadd.f32 %v668_v13, %v630_v47  ;;  %1488 = vmatmul.f32.gmra.mxu1 %v6779_v24  ;;  %1586 = vmatmul.f32.gmra.mxu3 %v6799_v60  ;;  %v6923_v47 = vsub.f32 %v1863_v42, %v6916_v37 }
 0x152   : > { %1539 = vmatmul.f32.gmra.mxu2 %v6838_v33 }
 0x153   : > { %v6912_v53 = vadd.f32 %v709_v39, %v669_v30  ;;  %1457 = vmatmul.f32.gmra.mxu0 %v6799_v60  ;;  %v9223_v39 = vand.u32 4294901760, %v6919_v58  ;;  %v9224_v54 = vand.u32 4294901760, %v6923_v47 }
 0x154   : > { %v715_v19 = vpop.f32.mrf.mxu3 }
 0x155   : > { %v673_v11 = vpop.f32.mrf.mxu2 }
 0x156   : > { %v633_v18 = vpop.f32.mrf.mxu1 }
 0x157   : > { %v634_v13 = vadd.f32 %v633_v18, %v587_v22  ;;  %v594_v56 = vpop.f32.mrf.mxu0  ;;  %v2186_v18 = vsub.f32 %v6919_v58, %v9223_v39 }
 0x158   : > { %v595_v22 = vadd.f32 %v594_v56, %v6932_v52 }
 0x159   : > { %v674_v30 = vadd.f32 %v673_v11, %v634_v13  ;;  %1492 = vmatmul.f32.gmra.mxu1 %v6799_v60  ;;  %1590 = vmatmul.f32.gmra.mxu3 %v6823_v59  ;;  %v2187_v45 = vand.u32 4294901760, %v2186_v18 }
 0x15a   : > { %1547 = vmatmul.f32.gmra.mxu2 %v6856_v20 }
 0x15b   : > { %v6928_v27 = vadd.f32 %v715_v19, %v674_v30  ;;  %1461 = vmatmul.f32.gmra.mxu0 %v6823_v59  ;;  %v2192_v19 = vsub.f32 %v6923_v47, %v9224_v54 }
 0x15c   : > { %v721_v42 = vpop.f32.mrf.mxu3 }
 0x15d   : > { %v678_v13 = vpop.f32.mrf.mxu2  ;;  %v2193_v39 = vand.u32 4294901760, %v2192_v19 }
 0x15e   : > { %v637_v11 = vpop.f32.mrf.mxu1 }
 0x15f   : > { %v638_v5 = vadd.f32 %v637_v11, %v595_v22 }
 0x160   : > { %v6943_v23 = vpop.f32.mrf.mxu0 }
 0x161   : > { %v679_v30 = vadd.f32 %v678_v13, %v638_v5  ;;  %1496 = vmatmul.f32.gmra.mxu1 %v6823_v59  ;;  %1736 = vmatmul.f32.vlgmr.msrb.gmra.mxu3 %v6760_v21  ;;  %v9318_v5 = vand.u32 4294901760, %v6866_v32 }
 0x162   : > { %2188 = vmatpush.msrb.mxu3 %v2187_v45  ;;  %1701 = vmatmul.f32.vlgmr.msrb.gmra.mxu2 %v6760_v21  ;;  %v9319_v45 = vand.u32 4294901760, %v6870_v4 }
 0x163   : > { %v6946_v56 = vadd.f32 %v721_v42, %v679_v30  ;;  %2133 = vmatpush.msrb.mxu2 %v6908_v51  ;;  %1616 = vmatmul.f32.vlgmr.msrb.gmra.mxu0 %v6769_v40 }
 0x164   : > { %2194 = vmatpush.msrb.mxu3 %v2193_v39  ;;  %v877_v22 = vpop.f32.mrf.mxu3  ;;  %2061 = vmatpush.msrb.mxu0 %v9318_v5 }
 0x165   : > { %2135 = vmatpush.msrb.mxu2 %v6916_v37  ;;  %v822_v11 = vpop.f32.mrf.mxu2 }
 0x166   : > { %v6954_v18 = vpop.f32.mrf.mxu1  ;;  %v823_v42 = vadd.f32 %v822_v11, %v6878_v29  ;;  %2065 = vmatpush.msrb.mxu0 %v9319_v45 }
 0x168   : > { %v878_v13 = vadd.f32 %v877_v22, %v823_v42  ;;  %v6960_v19 = vpop.f32.mrf.mxu0 }
 0x169   : > { %1656 = vmatmul.f32.vlgmr.msrb.gmra.mxu1 %v6777_v46  ;;  %1740 = vmatmul.f32.gmra.mxu3 %v6779_v24 }
 0x16a   : > { %2098 = vmatpush.msrb.mxu1 %v6854_v55  ;;  %1705 = vmatmul.f32.gmra.mxu2 %v6779_v24 }
 0x16b   : > { %1621 = vmatmul.f32.gmra.mxu0 %v6790_v16 }
 0x16c   : > { %2100 = vmatpush.msrb.mxu1 %v6862_v3  ;;  %v881_v32 = vpop.f32.mrf.mxu3 }
 0x16d   : > { %v830_v4 = vpop.f32.mrf.mxu2 }
 0x16e   : > { %v6967_v39 = vpop.f32.mrf.mxu1  ;;  %v831_v30 = vadd.f32 %v830_v4, %v6859_v14 }
 0x170   : > { %v882_v22 = vadd.f32 %v881_v32, %v831_v30  ;;  %v6971_v5 = vpop.f32.mrf.mxu0 }
 0x171   : > { %1662 = vmatmul.f32.gmra.mxu1 %v6797_v35  ;;  %1744 = vmatmul.f32.gmra.mxu3 %v6799_v60 }
 0x172   : > { %1709 = vmatmul.f32.gmra.mxu2 %v6799_v60 }
 0x173   : > { %1626 = vmatmul.f32.gmra.mxu0 %v6812_v34 }
 0x174   : > { %v885_v55 = vpop.f32.mrf.mxu3 }
 0x175   : > { %v838_v11 = vpop.f32.mrf.mxu2 }
 0x176   : > { %v6976_v3 = vpop.f32.mrf.mxu1  ;;  %v839_v42 = vadd.f32 %v838_v11, %v6905_v7  ;;  %v9320_v11 = vand.u32 4294901760, %v6919_v58 }
 0x178   : > { %v886_v45 = vadd.f32 %v885_v55, %v839_v42  ;;  %v6980_v32 = vpop.f32.mrf.mxu0 }
 0x179   : > { %1668 = vmatmul.f32.gmra.mxu1 %v6821_v43  ;;  %1748 = vmatmul.f32.gmra.mxu3 %v6823_v59 }
 0x17a   : > { %1713 = vmatmul.f32.gmra.mxu2 %v6823_v59 }
 0x17b   : > { %1631 = vmatmul.f32.gmra.mxu0 %v6833_v25 }
 0x17c   : > { %v889_v4 = vpop.f32.mrf.mxu3 }
 0x17d   : > { %v846_v54 = vpop.f32.mrf.mxu2 }
 0x17e   : > { %v6985_v30 = vpop.f32.mrf.mxu1  ;;  %v847_v14 = vadd.f32 %v846_v54, %v6932_v52 }
 0x180   : > { %v890_v29 = vadd.f32 %v889_v4, %v847_v14  ;;  %v915_v55 = vpop.f32.mrf.mxu0  ;;  %v9321_v14 = vand.u32 4294901760, %v6923_v47 }
 0x181   : > { %1674 = vmatmul.f32.gmra.mxu1 %v6842_v26  ;;  %2022 = vmatmul.f32.vlgmr.msra.gmra.mxu3 %v6777_v46  ;;  %v916_v42 = vadd.f32 %v915_v55, %v878_v13 }
 0x182   : > { %2350 = vmatpush.msra.mxu3 %v6908_v51  ;;  %1982 = vmatmul.f32.vlgmr.msra.gmra.mxu2 %v6769_v40 }
 0x183   : > { %2313 = vmatpush.msra.mxu2 %v9320_v11  ;;  %1889 = vmatmul.f32.vlgmr.msra.gmra.mxu0 %v6794_v49 }
 0x184   : > { %2352 = vmatpush.msra.mxu3 %v6916_v37  ;;  %v1035_v7 = vpop.f32.mrf.mxu3  ;;  %2228 = vmatpush.msra.mxu0 %v6919_v58 }
 0x185   : > { %2317 = vmatpush.msra.mxu2 %v9321_v14  ;;  %v1000_v4 = vpop.f32.mrf.mxu2 }
 0x186   : > { %v955_v54 = vpop.f32.mrf.mxu1  ;;  %2231 = vmatpush.msra.mxu0 %v6923_v47 }
 0x187   : > { %v956_v52 = vadd.f32 %v955_v54, %v916_v42  ;;  %v2478_v54 = vmul.f32 0.01, %v6491_v0 }
 0x188   : > { %v920_v11 = vpop.f32.mrf.mxu0 }
 0x189   : > { %v1001_v9 = vadd.f32 %v1000_v4, %v956_v52  ;;  %1944 = vmatmul.f32.vlgmr.msra.gmra.mxu1 %v6760_v21  ;;  %2028 = vmatmul.f32.gmra.mxu3 %v6797_v35  ;;  %v921_v58 = vadd.f32 %v920_v11, %v882_v22  ;;  %v2482_v22 = vsel %vm2474_vm13, %v6491_v0, %v2478_v54 }
 0x18a   : > { %2268 = vmatpush.msra.mxu1 %v6908_v51  ;;  %1987 = vmatmul.f32.gmra.mxu2 %v6790_v16  ;;  %v2476_v51 = vmul.f32 0.01, %v6495_v48 }
 0x18b   : > { %v7003_v13 = vadd.f32 %v1035_v7, %v1001_v9  ;;  %1897 = vmatmul.f32.gmra.mxu0 %v6817_v28 }
 0x18c   : > { %2270 = vmatpush.msra.mxu1 %v6916_v37  ;;  %v1039_v55 = vpop.f32.mrf.mxu3 }
 0x18d   : > { %v1004_v47 = vpop.f32.mrf.mxu2  ;;  %vm1051_vm9 = vcmp.ge.f32.partialorder %v7003_v13, 0.0 }
 0x18e   : > { %v961_v42 = vpop.f32.mrf.mxu1 }
 0x18f   : > { %v962_v52 = vadd.f32 %v961_v42, %v921_v58 }
 0x190   : > { %v925_v4 = vpop.f32.mrf.mxu0 }
 0x191   : > { %v1005_v14 = vadd.f32 %v1004_v47, %v962_v52  ;;  %1948 = vmatmul.f32.gmra.mxu1 %v6779_v24  ;;  %2034 = vmatmul.f32.gmra.mxu3 %v6821_v43  ;;  %v926_v9 = vadd.f32 %v925_v4, %v886_v45  ;;  %v2480_v47 = vsel %vm2472_vm14, %v6495_v48, %v2476_v51  ;;  %v7020_v52 = vand.u32 4294901760, %v2482_v22 }
 0x192   : > { %1992 = vmatmul.f32.gmra.mxu2 %v6812_v34 }
 0x193   : > { %v7012_v7 = vadd.f32 %v1039_v55, %v1005_v14  ;;  %1905 = vmatmul.f32.gmra.mxu0 %v6838_v33  ;;  %v7024_v14 = vand.u32 4294901760, %v2480_v47  ;;  %v7030_v0 = vsub.f32 %v2482_v22, %v7020_v52 }
 0x194   : > { %v1043_v37 = vpop.f32.mrf.mxu3 }
 0x195   : > { %9322 = vst [vmem:[#allocation50_spill] sm:$0xff] %v7012_v7  ;;  %v1008_v58 = vpop.f32.mrf.mxu2 }
 0x196   : > { %v967_v11 = vpop.f32.mrf.mxu1 }
 0x197   : > { %v968_v42 = vadd.f32 %v967_v11, %v926_v9  ;;  %v7034_v11 = vsub.f32 %v2480_v47, %v7024_v14 }
 0x198   : > { %v930_v55 = vpop.f32.mrf.mxu0 }
 0x199   : > { %v1009_v45 = vadd.f32 %v1008_v58, %v968_v42  ;;  %1952 = vmatmul.f32.gmra.mxu1 %v6799_v60  ;;  %2040 = vmatmul.f32.gmra.mxu3 %v6842_v26  ;;  %v931_v54 = vadd.f32 %v930_v55, %v890_v29  ;;  %v7036_v42 = vpop.permute.xlu0 %1218  ;;  %v9242_v29 = vand.u32 4294901760, %v7034_v11 }
 0x19a   : > { %1997 = vmatmul.f32.gmra.mxu2 %v6833_v25 }
 0x19b   : > { %v7026_v4 = vadd.f32 %v1043_v37, %v1009_v45  ;;  %1913 = vmatmul.f32.gmra.mxu0 %v6856_v20  ;;  %v9236_v37 = vand.u32 4294901760, %v7030_v0 }
 0x19c   : > { %v1047_v48 = vpop.f32.mrf.mxu3 }
 0x19d   : > { %9323 = vst [vmem:[#allocation51_spill] sm:$0xff] %v7026_v4  ;;  %v1012_v51 = vpop.f32.mrf.mxu2  ;;  %v7040_v4 = vpop.permute.xlu1 %1228 }
 0x19e   : > { %v973_v9 = vpop.f32.mrf.mxu1 }
 0x19f   : > { %v974_v58 = vadd.f32 %v973_v9, %v931_v54  ;;  %v2552_v54 = vsub.f32 %v7030_v0, %v9236_v37  ;;  %v2479_v37 = vmul.f32 0.01, %v6493_v41 }
 0x1a0   : > { %v1272_v22 = vpop.f32.mrf.mxu0 }
 0x1a1   : > { %v1013_v45 = vadd.f32 %v1012_v51, %v974_v58  ;;  %1956 = vmatmul.f32.gmra.mxu1 %v6823_v59  ;;  %2196 = vmatmul.f32.vlgmr.msrb.gmra.mxu3 %v6760_v21  ;;  %v1273_v47 = vadd.f32 %v1272_v22, %v7036_v42 }
 0x1a2   : > { %2634 = vmatpush.msrb.mxu3 %v7020_v52  ;;  %2141 = vmatmul.f32.vlgmr.msrb.gmra.mxu2 %v6794_v49  ;;  %v2558_v49 = vsub.f32 %v7034_v11, %v9242_v29 }
 0x1a3   : > { %v7044_v55 = vadd.f32 %v1047_v48, %v1013_v45  ;;  %2594 = vmatpush.msrb.mxu2 %v7030_v0  ;;  %2067 = vmatmul.f32.vlgmr.msrb.gmra.mxu0 %v6760_v21  ;;  %v2553_v45 = vand.u32 4294901760, %v2552_v54 }
 0x1a4   : > { %2636 = vmatpush.msrb.mxu3 %v7024_v14  ;;  %v1405_v9 = vpop.f32.mrf.mxu3  ;;  %2499 = vmatpush.msrb.mxu0 %v7020_v52  ;;  %v2559_v50 = vand.u32 4294901760, %v2558_v49 }
 0x1a5   : > { %9324 = vst [vmem:[#allocation52_spill] sm:$0xff] %v7044_v55  ;;  %2597 = vmatpush.msrb.mxu2 %v7034_v11  ;;  %v1365_v51 = vpop.f32.mrf.mxu2  ;;  %v7066_v29 = vpop.permute.xlu1 %1223 }
 0x1a6   : > { %v1327_v48 = vpop.f32.mrf.mxu1  ;;  %2501 = vmatpush.msrb.mxu0 %v7024_v14 }
 0x1a7   : > { %v1328_v58 = vadd.f32 %v1327_v48, %v1273_v47  ;;  %v2477_v47 = vmul.f32 0.01, %v6497_v57 }
 0x1a8   : > { %v1280_v55 = vpop.f32.mrf.mxu0 }
 0x1a9   : > { %v1366_v22 = vadd.f32 %v1365_v51, %v1328_v58  ;;  %2102 = vmatmul.f32.vlgmr.msrb.gmra.mxu1 %v6760_v21  ;;  %2200 = vmatmul.f32.gmra.mxu3 %v6779_v24  ;;  %v1281_v54 = vadd.f32 %v1280_v55, %v7066_v29 }
 0x1aa   : > { %2554 = vmatpush.msrb.mxu1 %v2553_v45  ;;  %2149 = vmatmul.f32.gmra.mxu2 %v6817_v28  ;;  %v2481_v28 = vsel %vm2473_vm0, %v6497_v57, %v2477_v47 }
 0x1ab   : > { %v1406_v1 = vadd.f32 %v1405_v9, %v1366_v22  ;;  %2071 = vmatmul.f32.gmra.mxu0 %v6779_v24  ;;  %v2483_v9 = vsel %vm2475_vm15, %v6493_v41, %v2479_v37  ;;  %v7081_v2 = vand.u32 4294901760, %v2481_v28 }
 0x1ac   : > { %2560 = vmatpush.msrb.mxu1 %v2559_v50  ;;  %v1411_v48 = vpop.f32.mrf.mxu3  ;;  %v7075_v50 = vand.u32 4294901760, %v2483_v9 }
 0x1ad   : > { %v1370_v58 = vpop.f32.mrf.mxu2 }
 0x1ae   : > { %v1331_v51 = vpop.f32.mrf.mxu1  ;;  %v7086_v57 = vsub.f32 %v2483_v9, %v7075_v50 }
 0x1af   : > { %v1332_v49 = vadd.f32 %v1331_v51, %v1281_v54  ;;  %v7089_v51 = vsub.f32 %v2481_v28, %v7081_v2 }
 0x1b0   : > { %v1288_v22 = vpop.f32.mrf.mxu0 }
 0x1b1   : > { %v1371_v45 = vadd.f32 %v1370_v58, %v1332_v49  ;;  %2106 = vmatmul.f32.gmra.mxu1 %v6779_v24  ;;  %2204 = vmatmul.f32.gmra.mxu3 %v6799_v60  ;;  %v1289_v7 = vadd.f32 %v1288_v22, %v7040_v4  ;;  %v2809_v9 = vand.u32 4294901760, %v7089_v51 }
 0x1b2   : > { %2157 = vmatmul.f32.gmra.mxu2 %v6838_v33  ;;  %v9247_v33 = vand.u32 4294901760, %v7086_v57 }
 0x1b3   : > { %v7078_v55 = vadd.f32 %v1411_v48, %v1371_v45  ;;  %2075 = vmatmul.f32.gmra.mxu0 %v6799_v60 }
 0x1b4   : > { %v1417_v41 = vpop.f32.mrf.mxu3  ;;  %v2804_v22 = vsub.f32 %v7086_v57, %v9247_v33 }
 0x1b5   : > { %v1375_v47 = vpop.f32.mrf.mxu2 }
 0x1b6   : > { %v1335_v37 = vpop.f32.mrf.mxu1 }
 0x1b7   : > { %v1336_v54 = vadd.f32 %v1335_v37, %v1289_v7  ;;  %v749_v7 = vadd.f32 %v6943_v23, %v6897_v61  ;;  %v2805_v23 = vand.u32 4294901760, %v2804_v22  ;;  %v9325_v22 = vand.u32 4294901760, %v7030_v0 }
 0x1b8   : > { %v1296_v58 = vpop.f32.mrf.mxu0 }
 0x1b9   : > { %v1376_v48 = vadd.f32 %v1375_v47, %v1336_v54  ;;  %2110 = vmatmul.f32.gmra.mxu1 %v6799_v60  ;;  %2208 = vmatmul.f32.gmra.mxu3 %v6823_v59  ;;  %v1297_v28 = vadd.f32 %v1296_v58, %v6835_v62 }
 0x1ba   : > { %2165 = vmatmul.f32.gmra.mxu2 %v6856_v20  ;;  %v2810_v20 = vsub.f32 %v7089_v51, %v2809_v9 }
 0x1bb   : > { %v7094_v49 = vadd.f32 %v1417_v41, %v1376_v48  ;;  %2079 = vmatmul.f32.gmra.mxu0 %v6823_v59  ;;  %v784_v41 = vadd.f32 %v6954_v18, %v749_v7  ;;  %v753_v18 = vadd.f32 %v6960_v19, %v6912_v53  ;;  %v9326_v53 = vand.u32 4294901760, %v7034_v11  ;;  %v9327_v19 = vld [vmem:[#allocation12_spill] sm:$0xff] }
 0x1bc   : > { %v1423_v45 = vpop.f32.mrf.mxu3  ;;  %v2811_v33 = vand.u32 4294901760, %v2810_v20 }
 0x1bd   : > { %v1380_v47 = vpop.f32.mrf.mxu2  ;;  %v1058_v58 = vmul.f32 0.01, %v784_v41  ;;  %vm1050_vm1 = vcmp.ge.f32.partialorder %v784_v41, 0.0 }
 0x1be   : > { %v1339_v37 = vpop.f32.mrf.mxu1 }
 0x1bf   : > { %v1340_v54 = vadd.f32 %v1339_v37, %v1297_v28 }
 0x1c0   : > { %v1450_v61 = vpop.f32.mrf.mxu0 }
 0x1c1   : > { %v1381_v48 = vadd.f32 %v1380_v47, %v1340_v54  ;;  %2114 = vmatmul.f32.gmra.mxu1 %v6823_v59  ;;  %2354 = vmatmul.f32.vlgmr.msra.gmra.mxu3 %v6760_v21  ;;  %v1451_v7 = vadd.f32 %v1450_v61, %v1406_v1  ;;  %v788_v47 = vadd.f32 %v6967_v39, %v753_v18  ;;  %v9328_v39 = vld [vmem:[#allocation18_spill] sm:$0xff] }
 0x1c2   : > { %2806 = vmatpush.msra.mxu3 %v2805_v23  ;;  %2319 = vmatmul.f32.vlgmr.msra.gmra.mxu2 %v6760_v21  ;;  %v1066_v21 = vsel %vm1050_vm1, %v784_v41, %v1058_v58 }
 0x1c3   : > { %v7111_v10 = vadd.f32 %v1423_v45, %v1381_v48  ;;  %2751 = vmatpush.msra.mxu2 %v7075_v50  ;;  %2234 = vmatmul.f32.vlgmr.msra.gmra.mxu0 %v6769_v40  ;;  %v1074_v0 = vmul.f32 %v1066_v21, %v9327_v19  ;;  %v1090_v41 = vmul.f32 %v1066_v21, %v9328_v39  ;;  %v9329_v48 = vld [vmem:[#allocation6_spill] sm:$0xff]  ;;  %v1060_v61 = vmul.f32 0.01, %v788_v47 }
 0x1c4   : > { %2812 = vmatpush.msra.mxu3 %v2811_v33  ;;  %v1579_v28 = vpop.f32.mrf.mxu3  ;;  %2679 = vmatpush.msra.mxu0 %v9325_v22  ;;  %v1106_v23 = vmul.f32 %v1066_v21, %v9329_v48  ;;  %vm1052_vm3 = vcmp.ge.f32.partialorder %v788_v47, 0.0 }
 0x1c5   : > { %2753 = vmatpush.msra.mxu2 %v7081_v2  ;;  %v1524_v37 = vpop.f32.mrf.mxu2 }
 0x1c6   : > { %v1485_v45 = vpop.f32.mrf.mxu1  ;;  %v1525_v20 = vadd.f32 %v1524_v37, %v7036_v42  ;;  %2683 = vmatpush.msra.mxu0 %v9326_v53 }
 0x1c7   : > { %v1486_v54 = vadd.f32 %v1485_v45, %v1451_v7 }
 0x1c8   : > { %v7125_v40 = vadd.f32 %v1579_v28, %v1525_v20  ;;  %v1454_v33 = vpop.f32.mrf.mxu0 }
 0x1c9   : > { %vm1752_vm2 = vcmp.ge.f32.partialorder %v1486_v54, 0.0  ;;  %v1760_v1 = vmul.f32 0.01, %v1486_v54  ;;  %2274 = vmatmul.f32.vlgmr.msra.gmra.mxu1 %v6777_v46  ;;  %2358 = vmatmul.f32.gmra.mxu3 %v6779_v24  ;;  %v1455_v7 = vadd.f32 %v1454_v33, %v7078_v55 }
 0x1ca   : > { %2716 = vmatpush.msra.mxu1 %v7020_v52  ;;  %2323 = vmatmul.f32.gmra.mxu2 %v6779_v24  ;;  %v757_v52 = vadd.f32 %v6971_v5, %v6928_v27 }
 0x1cb   : > { %v1768_v11 = vsel %vm1752_vm2, %v1486_v54, %v1760_v1  ;;  %2239 = vmatmul.f32.gmra.mxu0 %v6790_v16  ;;  %v1068_v54 = vsel %vm1052_vm3, %v788_v47, %v1060_v61 }
 0x1cc   : > { %v1776_v58 = vmul.f32 %v1768_v11, %v6441_v12  ;;  %v1792_v46 = vmul.f32 %v1768_v11, %v6452_v17  ;;  %v1808_v18 = vmul.f32 %v1768_v11, %v6510_v6  ;;  %2718 = vmatpush.msra.mxu1 %v7024_v14  ;;  %v1583_v28 = vpop.f32.mrf.mxu3  ;;  %v792_v20 = vadd.f32 %v6976_v3, %v757_v52 }
 0x1cd   : > { %v1532_v21 = vpop.f32.mrf.mxu2  ;;  %v1076_v16 = vmul.f32 %v1068_v54, %v9327_v19  ;;  %v1092_v1 = vmul.f32 %v1068_v54, %v9328_v39  ;;  %v1108_v47 = vmul.f32 %v1068_v54, %v9329_v48 }
 0x1ce   : > { %v7142_v22 = vadd.f32 %v1776_v58, %v1074_v0  ;;  %v7144_v24 = vadd.f32 %v1792_v46, %v1090_v41  ;;  %v7146_v45 = vadd.f32 %v1808_v18, %v1106_v23  ;;  %v1489_v37 = vpop.f32.mrf.mxu1  ;;  %v1533_v53 = vadd.f32 %v1532_v21, %v7066_v29 }
 0x1cf   : > { %v1490_v14 = vadd.f32 %v1489_v37, %v1455_v7  ;;  %v1062_v0 = vmul.f32 0.01, %v792_v20  ;;  %vm1054_vm5 = vcmp.ge.f32.partialorder %v792_v20, 0.0  ;;  %v761_v23 = vadd.f32 %v6980_v32, %v6946_v56 }
 0x1d0   : > { %v7150_v5 = vadd.f32 %v1583_v28, %v1533_v53  ;;  %v1458_v55 = vpop.f32.mrf.mxu0 }
 0x1d1   : > { %vm1754_vm4 = vcmp.ge.f32.partialorder %v1490_v14, 0.0  ;;  %v1762_v27 = vmul.f32 0.01, %v1490_v14  ;;  %2280 = vmatmul.f32.gmra.mxu1 %v6797_v35  ;;  %2362 = vmatmul.f32.gmra.mxu3 %v6799_v60  ;;  %v1459_v61 = vadd.f32 %v1458_v55, %v7094_v49  ;;  %v1070_v7 = vsel %vm1054_vm5, %v792_v20, %v1062_v0 }
 0x1d2   : > { %2327 = vmatmul.f32.gmra.mxu2 %v6799_v60  ;;  %v796_v28 = vadd.f32 %v6985_v30, %v761_v23  ;;  %v1094_v54 = vmul.f32 %v1070_v7, %v9328_v39  ;;  %v1110_v20 = vmul.f32 %v1070_v7, %v9329_v48 }
 0x1d3   : > { %v1770_v3 = vsel %vm1754_vm4, %v1490_v14, %v1762_v27  ;;  %2244 = vmatmul.f32.gmra.mxu0 %v6812_v34  ;;  %v1078_v34 = vmul.f32 %v1070_v7, %v9327_v19 }
 0x1d4   : > { %v1778_v33 = vmul.f32 %v1770_v3, %v6441_v12  ;;  %v1794_v41 = vmul.f32 %v1770_v3, %v6452_v17  ;;  %v1810_v35 = vmul.f32 %v1770_v3, %v6510_v6  ;;  %v1587_v11 = vpop.f32.mrf.mxu3  ;;  %v1064_v14 = vmul.f32 0.01, %v796_v28 }
 0x1d5   : > { %v1540_v52 = vpop.f32.mrf.mxu2  ;;  %vm1056_vm7 = vcmp.ge.f32.partialorder %v796_v28, 0.0 }
 0x1d6   : > { %v7165_v58 = vadd.f32 %v1778_v33, %v1076_v16  ;;  %v7167_v46 = vadd.f32 %v1794_v41, %v1092_v1  ;;  %v7169_v60 = vadd.f32 %v1810_v35, %v1108_v47  ;;  %v1493_v18 = vpop.f32.mrf.mxu1  ;;  %v1541_v21 = vadd.f32 %v1540_v52, %v7040_v4 }
 0x1d7   : > { %v1494_v37 = vadd.f32 %v1493_v18, %v1459_v61  ;;  %v1072_v33 = vsel %vm1056_vm7, %v796_v28, %v1064_v14  ;;  %v9331_v14 = vld [vmem:[#allocation13_spill] sm:$0xff] }
 0x1d8   : > { %v7173_v32 = vadd.f32 %v1587_v11, %v1541_v21  ;;  %v1462_v49 = vpop.f32.mrf.mxu0  ;;  %v1096_v11 = vmul.f32 %v1072_v33, %v9328_v39  ;;  %v1112_v7 = vmul.f32 %v1072_v33, %v9329_v48 }
 0x1d9   : > { %vm1756_vm6 = vcmp.ge.f32.partialorder %v1494_v37, 0.0  ;;  %v1764_v56 = vmul.f32 0.01, %v1494_v37  ;;  %2286 = vmatmul.f32.gmra.mxu1 %v6821_v43  ;;  %2366 = vmatmul.f32.gmra.mxu3 %v6823_v59  ;;  %v1463_v16 = vadd.f32 %v1462_v49, %v7111_v10  ;;  %v1080_v10 = vmul.f32 %v1072_v33, %v9327_v19 }
 0x1da   : > { %2331 = vmatmul.f32.gmra.mxu2 %v6823_v59 }
 0x1db   : > { %v1772_v30 = vsel %vm1756_vm6, %v1494_v37, %v1764_v56  ;;  %2249 = vmatmul.f32.gmra.mxu0 %v6833_v25  ;;  %v9330_v37 = vand.u32 4294901760, %v7086_v57 }
 0x1dc   : > { %v1780_v53 = vmul.f32 %v1772_v30, %v6441_v12  ;;  %v1796_v27 = vmul.f32 %v1772_v30, %v6452_v17  ;;  %v1812_v43 = vmul.f32 %v1772_v30, %v6510_v6  ;;  %v1591_v55 = vpop.f32.mrf.mxu3 }
 0x1dd   : > { %v1548_v59 = vpop.f32.mrf.mxu2 }
 0x1de   : > { %v7186_v1 = vadd.f32 %v1780_v53, %v1078_v34  ;;  %v7188_v47 = vadd.f32 %v1796_v27, %v1094_v54  ;;  %v7190_v0 = vadd.f32 %v1812_v43, %v1110_v20  ;;  %v1497_v3 = vpop.f32.mrf.mxu1  ;;  %v1549_v35 = vadd.f32 %v1548_v59, %v6835_v62  ;;  %v9332_v53 = vld [vmem:[#allocation19_spill] sm:$0xff] }
 0x1df   : > { %v1498_v41 = vadd.f32 %v1497_v3, %v1463_v16  ;;  %v9333_v16 = vld [vmem:[#allocation31_spill] sm:$0xff] }
 0x1e0   : > { %v7193_v61 = vadd.f32 %v1591_v55, %v1549_v35  ;;  %v1617_v25 = vpop.f32.mrf.mxu0  ;;  %vm3092_vm11 = vcmp.ge.f32.partialorder %v9333_v16, 0.0  ;;  %v9334_v55 = vld [vmem:[#allocation7_spill] sm:$0xff] }
 0x1e1   : > { %vm1758_vm8 = vcmp.ge.f32.partialorder %v1498_v41, 0.0  ;;  %v1766_v23 = vmul.f32 0.01, %v1498_v41  ;;  %2292 = vmatmul.f32.gmra.mxu1 %v6842_v26  ;;  %2640 = vmatmul.f32.vlgmr.msrb.gmra.mxu3 %v6449_v15  ;;  %v1618_v52 = vadd.f32 %v1617_v25, %v7125_v40  ;;  %v9338_v25 = vld [vmem:[#allocation45_spill] sm:$0xff] }
 0x1e2   : > { %2968 = vmatpush.msrb.mxu3 %v7075_v50  ;;  %2600 = vmatmul.f32.vlgmr.msrb.gmra.mxu2 %v6417_v63 }
 0x1e3   : > { %v1774_v18 = vsel %vm1758_vm8, %v1498_v41, %v1766_v23  ;;  %2931 = vmatpush.msrb.mxu2 %v9330_v37  ;;  %2507 = vmatmul.f32.vlgmr.msrb.gmra.mxu0 %v6550_v36  ;;  %v9336_v41 = vld [vmem:[#allocation42_spill] sm:$0xff]  ;;  %v9337_v23 = vld [vmem:[#allocation43_spill] sm:$0xff] }
 0x1e4   : > { %v1782_v28 = vmul.f32 %v1774_v18, %v6441_v12  ;;  %v1798_v26 = vmul.f32 %v1774_v18, %v6452_v17  ;;  %v1814_v19 = vmul.f32 %v1774_v18, %v6510_v6  ;;  %2970 = vmatpush.msrb.mxu3 %v7081_v2  ;;  %v1737_v40 = vpop.f32.mrf.mxu3  ;;  %2846 = vmatpush.msrb.mxu0 %v7086_v57  ;;  %v1059_v6 = vmul.f32 0.01, %v7003_v13  ;;  %v9342_v37 = vld [vmem:[#allocation38_spill] sm:$0xff] }
 0x1e5   : > { %2935 = vmatpush.msrb.mxu2 %v2809_v9  ;;  %v1702_v17 = vpop.f32.mrf.mxu2 }
 0x1e6   : > { %v7210_v39 = vadd.f32 %v1782_v28, %v1080_v10  ;;  %v7212_v21 = vadd.f32 %v1798_v26, %v1096_v11  ;;  %v7214_v56 = vadd.f32 %v1814_v19, %v1112_v7  ;;  %v1657_v12 = vpop.f32.mrf.mxu1  ;;  %2849 = vmatpush.msrb.mxu0 %v7089_v51  ;;  %v1067_v57 = vsel %vm1051_vm9, %v7003_v13, %v1059_v6 }
 0x1e7   : > { %v1658_v48 = vadd.f32 %v1657_v12, %v1618_v52  ;;  %v1075_v30 = vmul.f32 %v1067_v57, %v9331_v14  ;;  %v1091_v27 = vmul.f32 %v1067_v57, %v9332_v53  ;;  %v3096_v13 = vmul.f32 0.01, %v9333_v16  ;;  %v9339_v52 = vld [vmem:[#allocation30_spill] sm:$0xff] }
 0x1e8   : > { %v1622_v49 = vpop.f32.mrf.mxu0  ;;  %v1107_v3 = vmul.f32 %v1067_v57, %v9334_v55 }
 0x1e9   : > { %v1703_v34 = vadd.f32 %v1702_v17, %v1658_v48  ;;  %2562 = vmatmul.f32.vlgmr.msrb.gmra.mxu1 %v6375_v44  ;;  %2646 = vmatmul.f32.gmra.mxu3 %v6576_v8  ;;  %v1623_v54 = vadd.f32 %v1622_v49, %v7150_v5  ;;  %v9344_v48 = vld [vmem:[#allocation37_spill] sm:$0xff] }
 0x1ea   : > { %2886 = vmatpush.msrb.mxu1 %v7075_v50  ;;  %2605 = vmatmul.f32.gmra.mxu2 %v6540_v31 }
 0x1eb   : > { %v1738_v9 = vadd.f32 %v1737_v40, %v1703_v34  ;;  %2515 = vmatmul.f32.gmra.mxu0 %v6611_v38  ;;  %v9343_v40 = vld [vmem:[#allocation28_spill] sm:$0xff]  ;;  %v3100_v34 = vsel %vm3092_vm11, %v9333_v16, %v3096_v13  ;;  %v9346_v13 = vld [vmem:[#allocation51_spill] sm:$0xff] }
 0x1ec   : > { %2888 = vmatpush.msrb.mxu1 %v7081_v2  ;;  %v1741_v51 = vpop.f32.mrf.mxu3  ;;  %v9335_v2 = vld [vmem:[#allocation50_spill] sm:$0xff]  ;;  %v3094_v12 = vmul.f32 0.01, %v9343_v40  ;;  %vm3090_vm13 = vcmp.ge.f32.partialorder %v9343_v40, 0.0  ;;  %vm1055_vm15 = vcmp.ge.f32.partialorder %v9346_v13, 0.0 }
 0x1ed   : > { %vm1753_vm10 = vcmp.ge.f32.partialorder %v1738_v9, 0.0  ;;  %v1761_v20 = vmul.f32 0.01, %v1738_v9  ;;  %v1706_v50 = vpop.f32.mrf.mxu2  ;;  %v1061_v59 = vmul.f32 0.01, %v9335_v2  ;;  %vm1053_vm12 = vcmp.ge.f32.partialorder %v9335_v2, 0.0 }
 0x1ee   : > { %v1663_v43 = vpop.f32.mrf.mxu1 }
 0x1ef   : > { %v1769_v5 = vsel %vm1753_vm10, %v1738_v9, %v1761_v20  ;;  %v1664_v33 = vadd.f32 %v1663_v43, %v1623_v54  ;;  %v1069_v17 = vsel %vm1053_vm12, %v9335_v2, %v1061_v59  ;;  %v9345_v9 = vld [vmem:[#allocation41_spill] sm:$0xff]  ;;  %v7259_v43 = vand.u32 4294901760, %v3100_v34 }
 0x1f0   : > { %v1777_v35 = vmul.f32 %v1769_v5, %v9336_v41  ;;  %v1793_v10 = vmul.f32 %v1769_v5, %v9337_v23  ;;  %v1809_v11 = vmul.f32 %v1769_v5, %v9338_v25  ;;  %v1627_v19 = vpop.f32.mrf.mxu0  ;;  %v1077_v20 = vmul.f32 %v1069_v17, %v9331_v14 }
 0x1f1   : > { %v1707_v18 = vadd.f32 %v1706_v50, %v1664_v33  ;;  %2566 = vmatmul.f32.gmra.mxu1 %v9339_v52  ;;  %2652 = vmatmul.f32.gmra.mxu3 %v9342_v37  ;;  %v1628_v49 = vadd.f32 %v1627_v19, %v7173_v32  ;;  %v3098_v50 = vsel %vm3090_vm13, %v9343_v40, %v3094_v12 }
 0x1f2   : > { %v7241_v7 = vadd.f32 %v1777_v35, %v1075_v30  ;;  %v7243_v28 = vadd.f32 %v1793_v10, %v1091_v27  ;;  %v7245_v26 = vadd.f32 %v1809_v11, %v1107_v3  ;;  %2610 = vmatmul.f32.gmra.mxu2 %v9344_v48  ;;  %v1093_v30 = vmul.f32 %v1069_v17, %v9332_v53  ;;  %v9347_v10 = vld [vmem:[#allocation35_spill] sm:$0xff] }
 0x1f3   : > { %v1742_v6 = vadd.f32 %v1741_v51, %v1707_v18  ;;  %2523 = vmatmul.f32.gmra.mxu0 %v9345_v9  ;;  %v1109_v16 = vmul.f32 %v1069_v17, %v9334_v55  ;;  %v1063_v3 = vmul.f32 0.01, %v9346_v13  ;;  %v7269_v11 = vand.u32 4294901760, %v3098_v50  ;;  %v9351_v17 = vld [vmem:[#allocation40_spill] sm:$0xff] }
 0x1f4   : > { %9340 = vst [vmem:[#allocation12_spill] sm:$0xff] %v7243_v28  ;;  %v1745_v54 = vpop.f32.mrf.mxu3 }
 0x1f5   : > { %9341 = vst [vmem:[#allocation18_spill] sm:$0xff] %v7245_v26  ;;  %vm1755_vm14 = vcmp.ge.f32.partialorder %v1742_v6, 0.0  ;;  %v1763_v57 = vmul.f32 0.01, %v1742_v6  ;;  %v1710_v27 = vpop.f32.mrf.mxu2 }
 0x1f6   : > { %v1669_v51 = vpop.f32.mrf.mxu1 }
 0x1f7   : > { %v1771_v32 = vsel %vm1755_vm14, %v1742_v6, %v1763_v57  ;;  %v1670_v2 = vadd.f32 %v1669_v51, %v1628_v49  ;;  %v7279_v6 = vsub.f32 %v3100_v34, %v7259_v43  ;;  %v1071_v49 = vsel %vm1055_vm15, %v9346_v13, %v1063_v3  ;;  %v9352_v51 = vld [vmem:[#allocation39_spill] sm:$0xff] }
 0x1f8   : > { %v1779_v59 = vmul.f32 %v1771_v32, %v9336_v41  ;;  %v1795_v5 = vmul.f32 %v1771_v32, %v9337_v23  ;;  %v1811_v33 = vmul.f32 %v1771_v32, %v9338_v25  ;;  %v1632_v12 = vpop.f32.mrf.mxu0  ;;  %v9353_v32 = vld [vmem:[#allocation44_spill] sm:$0xff]  ;;  %v1111_v13 = vmul.f32 %v1071_v49, %v9334_v55 }
 0x1f9   : > { %v1711_v35 = vadd.f32 %v1710_v27, %v1670_v2  ;;  %2570 = vmatmul.f32.gmra.mxu1 %v9347_v10  ;;  %2658 = vmatmul.f32.gmra.mxu3 %v9351_v17  ;;  %v1633_v27 = vadd.f32 %v1632_v12, %v7193_v61  ;;  %v1079_v2 = vmul.f32 %v1071_v49, %v9331_v14 }
 0x1fa   : > { %v7271_v18 = vadd.f32 %v1779_v59, %v1077_v20  ;;  %v7273_v19 = vadd.f32 %v1795_v5, %v1093_v30  ;;  %v7275_v40 = vadd.f32 %v1811_v33, %v1109_v16  ;;  %2615 = vmatmul.f32.gmra.mxu2 %v9352_v51  ;;  %v7286_v16 = vsub.f32 %v3098_v50, %v7269_v11  ;;  %v9354_v33 = vld [vmem:[#allocation52_spill] sm:$0xff] }
 0x1fb   : > { %v1746_v57 = vadd.f32 %v1745_v54, %v1711_v35  ;;  %2531 = vmatmul.f32.gmra.mxu0 %v9353_v32  ;;  %v1095_v54 = vmul.f32 %v1071_v49, %v9332_v53  ;;  %v1065_v35 = vmul.f32 0.01, %v9354_v33  ;;  %vm1057_vm1 = vcmp.ge.f32.partialorder %v9354_v33, 0.0 }
 0x1fc   : > { %9348 = vst [vmem:[#allocation6_spill] sm:$0xff] %v7271_v18  ;;  %v1749_v30 = vpop.f32.mrf.mxu3  ;;  %v9355_v18 = vld [vmem:[#allocation36_spill] sm:$0xff]  ;;  %v3175_v5 = vand.u32 4294901760, %v7286_v16 }
 0x1fd   : > { %9349 = vst [vmem:[#allocation13_spill] sm:$0xff] %v7273_v19  ;;  %vm1757_vm0 = vcmp.ge.f32.partialorder %v1746_v57, 0.0  ;;  %v1765_v20 = vmul.f32 0.01, %v1746_v57  ;;  %v1714_v34 = vpop.f32.mrf.mxu2 }
 0x1fe   : > { %9350 = vst [vmem:[#allocation19_spill] sm:$0xff] %v7275_v40  ;;  %v1675_v59 = vpop.f32.mrf.mxu1 }
 0x1ff   : > { %v1773_v3 = vsel %vm1757_vm0, %v1746_v57, %v1765_v20  ;;  %v1676_v61 = vadd.f32 %v1675_v59, %v1633_v27  ;;  %v9359_v20 = vand.u32 4294901760, %v7279_v6 }
 0x200   : > { %v1781_v12 = vmul.f32 %v1773_v3, %v9336_v41  ;;  %v1797_v40 = vmul.f32 %v1773_v3, %v9337_v23  ;;  %v1813_v50 = vmul.f32 %v1773_v3, %v9338_v25  ;;  %v1890_v27 = vpop.f32.mrf.mxu0 }
 0x201   : > { %v1715_v19 = vadd.f32 %v1714_v34, %v1676_v61  ;;  %2574 = vmatmul.f32.gmra.mxu1 %v9355_v18  ;;  %2814 = vmatmul.f32.vlgmr.msra.gmra.mxu3 %v6375_v44  ;;  %v3170_v59 = vsub.f32 %v7279_v6, %v9359_v20  ;;  %v1891_v3 = vadd.f32 %v1890_v27, %v7036_v42 }
 0x202   : > { %v7299_v26 = vadd.f32 %v1781_v12, %v1079_v2  ;;  %v7301_v49 = vadd.f32 %v1797_v40, %v1095_v54  ;;  %v7303_v57 = vadd.f32 %v1813_v50, %v1111_v13  ;;  %3252 = vmatpush.msra.mxu3 %v7259_v43  ;;  %2759 = vmatmul.f32.vlgmr.msra.gmra.mxu2 %v6550_v36 }
 0x203   : > { %v1750_v34 = vadd.f32 %v1749_v30, %v1715_v19  ;;  %v1073_v2 = vsel %vm1057_vm1, %v9354_v33, %v1065_v35  ;;  %3212 = vmatpush.msra.mxu2 %v7279_v6  ;;  %2685 = vmatmul.f32.vlgmr.msra.gmra.mxu0 %v6375_v44  ;;  %v3171_v13 = vand.u32 4294901760, %v3170_v59  ;;  %v3176_v61 = vsub.f32 %v7286_v16, %v3175_v5  ;;  %v9360_v59 = vld [vmem:[#allocation32_spill] sm:$0xff] }
 0x204   : > { %9356 = vst [vmem:[#allocation31_spill] sm:$0xff] %v7299_v26  ;;  %3254 = vmatpush.msra.mxu3 %v7269_v11  ;;  %v2023_v54 = vpop.f32.mrf.mxu3  ;;  %3117 = vmatpush.msra.mxu0 %v7259_v43  ;;  %v1081_v33 = vmul.f32 %v1073_v2, %v9331_v14  ;;  %v1097_v35 = vmul.f32 %v1073_v2, %v9332_v53  ;;  %v3097_v26 = vmul.f32 0.01, %v9360_v59  ;;  %vm3093_vm3 = vcmp.ge.f32.partialorder %v9360_v59, 0.0 }
 0x205   : > { %9357 = vst [vmem:[#allocation7_spill] sm:$0xff] %v7301_v49  ;;  %vm1759_vm2 = vcmp.ge.f32.partialorder %v1750_v34, 0.0  ;;  %v1767_v40 = vmul.f32 0.01, %v1750_v34  ;;  %3215 = vmatpush.msra.mxu2 %v7286_v16  ;;  %v1983_v30 = vpop.f32.mrf.mxu2  ;;  %v1113_v27 = vmul.f32 %v1073_v2, %v9334_v55  ;;  %v9365_v16 = vld [vmem:[#allocation33_spill] sm:$0xff] }
 0x206   : > { %9358 = vst [vmem:[#allocation50_spill] sm:$0xff] %v7303_v57  ;;  %v1945_v19 = vpop.f32.mrf.mxu1  ;;  %3119 = vmatpush.msra.mxu0 %v7269_v11 }
 0x207   : > { %v1775_v12 = vsel %vm1759_vm2, %v1750_v34, %v1767_v40  ;;  %v1946_v50 = vadd.f32 %v1945_v19, %v1891_v3  ;;  %v3101_v19 = vsel %vm3093_vm3, %v9360_v59, %v3097_v26 }
 0x208   : > { %v1783_v20 = vmul.f32 %v1775_v12, %v9336_v41  ;;  %v1799_v57 = vmul.f32 %v1775_v12, %v9337_v23  ;;  %v1815_v49 = vmul.f32 %v1775_v12, %v9338_v25  ;;  %v1898_v55 = vpop.f32.mrf.mxu0  ;;  %v3177_v41 = vand.u32 4294901760, %v3176_v61  ;;  %v9361_v25 = vld [vmem:[#allocation29_spill] sm:$0xff] }
 0x209   : > { %v1984_v28 = vadd.f32 %v1983_v30, %v1946_v50  ;;  %2720 = vmatmul.f32.vlgmr.msra.gmra.mxu1 %v6375_v44  ;;  %2818 = vmatmul.f32.gmra.mxu3 %v9339_v52  ;;  %v3095_v34 = vmul.f32 0.01, %v9361_v25  ;;  %v1899_v2 = vadd.f32 %v1898_v55, %v7066_v29  ;;  %vm3091_vm4 = vcmp.ge.f32.partialorder %v9361_v25, 0.0 }
 0x20a   : > { %v7330_v14 = vadd.f32 %v1783_v20, %v1081_v33  ;;  %v7332_v53 = vadd.f32 %v1799_v57, %v1097_v35  ;;  %v7334_v3 = vadd.f32 %v1815_v49, %v1113_v27  ;;  %3172 = vmatpush.msra.mxu1 %v3171_v13  ;;  %2767 = vmatmul.f32.gmra.mxu2 %v6611_v38  ;;  %v7346_v13 = vand.u32 4294901760, %v3101_v19 }
 0x20b   : > { %v2024_v23 = vadd.f32 %v2023_v54, %v1984_v28  ;;  %2689 = vmatmul.f32.gmra.mxu0 %v9339_v52  ;;  %v3099_v28 = vsel %vm3091_vm4, %v9361_v25, %v3095_v34 }
 0x20c   : > { %3178 = vmatpush.msra.mxu1 %v3177_v41  ;;  %v2029_v57 = vpop.f32.mrf.mxu3  ;;  %v7350_v35 = vand.u32 4294901760, %v3099_v28  ;;  %v7355_v50 = vsub.f32 %v3101_v19, %v7346_v13 }
 0x20d   : > { %v1988_v40 = vpop.f32.mrf.mxu2 }
 0x20e   : > { %v1949_v49 = vpop.f32.mrf.mxu1  ;;  %v7358_v55 = vsub.f32 %v3099_v28, %v7350_v35  ;;  %v3421_v25 = vand.u32 4294901760, %v7355_v50 }
 0x20f   : > { %v1950_v30 = vadd.f32 %v1949_v49, %v1899_v2 }
 0x210   : > { %v1906_v61 = vpop.f32.mrf.mxu0  ;;  %v3422_v19 = vsub.f32 %v7355_v50, %v3421_v25 }
 0x211   : > { %v1989_v54 = vadd.f32 %v1988_v40, %v1950_v30  ;;  %2724 = vmatmul.f32.gmra.mxu1 %v9339_v52  ;;  %2822 = vmatmul.f32.gmra.mxu3 %v9347_v10  ;;  %v1907_v12 = vadd.f32 %v1906_v61, %v7040_v4 }
 0x212   : > { %2775 = vmatmul.f32.gmra.mxu2 %v9345_v9 }
 0x213   : > { %v2030_v33 = vadd.f32 %v2029_v57, %v1989_v54  ;;  %2693 = vmatmul.f32.gmra.mxu0 %v9347_v10  ;;  %v3427_v57 = vand.u32 4294901760, %v7358_v55 }
 0x214   : > { %v2035_v26 = vpop.f32.mrf.mxu3 }
 0x215   : > { %v1993_v20 = vpop.f32.mrf.mxu2  ;;  %v3428_v61 = vsub.f32 %v7358_v55, %v3427_v57 }
 0x216   : > { %v1953_v27 = vpop.f32.mrf.mxu1 }
 0x217   : > { %v1954_v59 = vadd.f32 %v1953_v27, %v1907_v12 }
 0x218   : > { %v1914_v34 = vpop.f32.mrf.mxu0 }
 0x219   : > { %v1994_v41 = vadd.f32 %v1993_v20, %v1954_v59  ;;  %2728 = vmatmul.f32.gmra.mxu1 %v9347_v10  ;;  %2826 = vmatmul.f32.gmra.mxu3 %v9355_v18  ;;  %v1915_v49 = vadd.f32 %v1914_v34, %v6835_v62  ;;  %v3429_v59 = vand.u32 4294901760, %v3428_v61 }
 0x21a   : > { %2783 = vmatmul.f32.gmra.mxu2 %v9353_v32 }
 0x21b   : > { %v7363_v2 = vadd.f32 %v2035_v26, %v1994_v41  ;;  %2697 = vmatmul.f32.gmra.mxu0 %v9355_v18  ;;  %v3423_v26 = vand.u32 4294901760, %v3422_v19 }
 0x21c   : > { %v2041_v40 = vpop.f32.mrf.mxu3 }
 0x21d   : > { %v1998_v28 = vpop.f32.mrf.mxu2 }
 0x21e   : > { %v1957_v30 = vpop.f32.mrf.mxu1 }
 0x21f   : > { %v1958_v54 = vadd.f32 %v1957_v30, %v1915_v49  ;;  %v9362_v49 = vand.u32 4294901760, %v7279_v6 }
 0x220   : > { %v2068_v27 = vpop.f32.mrf.mxu0 }
 0x221   : > { %v1999_v12 = vadd.f32 %v1998_v28, %v1958_v54  ;;  %2732 = vmatmul.f32.gmra.mxu1 %v9355_v18  ;;  %2972 = vmatmul.f32.vlgmr.msrb.gmra.mxu3 %v6375_v44  ;;  %v2069_v41 = vadd.f32 %v2068_v27, %v2024_v23 }
 0x222   : > { %3424 = vmatpush.msrb.mxu3 %v3423_v26  ;;  %2937 = vmatmul.f32.vlgmr.msrb.gmra.mxu2 %v6375_v44 }
 0x223   : > { %v7377_v20 = vadd.f32 %v2041_v40, %v1999_v12  ;;  %3369 = vmatpush.msrb.mxu2 %v7346_v13  ;;  %2852 = vmatmul.f32.vlgmr.msrb.gmra.mxu0 %v6417_v63  ;;  %v9363_v12 = vld [vmem:[#allocation24_spill] sm:$0xff] }
 0x224   : > { %3430 = vmatpush.msrb.mxu3 %v3429_v59  ;;  %v2197_v34 = vpop.f32.mrf.mxu3  ;;  %3297 = vmatpush.msrb.mxu0 %v9362_v49 }
 0x225   : > { %3371 = vmatpush.msrb.mxu2 %v7350_v35  ;;  %v2142_v30 = vpop.f32.mrf.mxu2 }
 0x226   : > { %v2103_v19 = vpop.f32.mrf.mxu1  ;;  %v2143_v28 = vadd.f32 %v2142_v30, %v7036_v42  ;;  %3301 = vmatpush.msrb.mxu0 %v3175_v5  ;;  %v9364_v42 = vld [vmem:[#allocation26_spill] sm:$0xff] }
 0x227   : > { %v2104_v40 = vadd.f32 %v2103_v19, %v2069_v41 }
 0x228   : > { %v7388_v23 = vadd.f32 %v2197_v34, %v2143_v28  ;;  %v2072_v61 = vpop.f32.mrf.mxu0 }
 0x229   : > { %vm2370_vm5 = vcmp.ge.f32.partialorder %v2104_v40, 0.0  ;;  %v2378_v54 = vmul.f32 0.01, %v2104_v40  ;;  %2892 = vmatmul.f32.vlgmr.msrb.gmra.mxu1 %v6449_v15  ;;  %2976 = vmatmul.f32.gmra.mxu3 %v9339_v52  ;;  %v2073_v59 = vadd.f32 %v2072_v61, %v2030_v33 }
 0x22a   : > { %3334 = vmatpush.msrb.mxu1 %v7259_v43  ;;  %2941 = vmatmul.f32.gmra.mxu2 %v9339_v52 }
 0x22b   : > { %v2386_v6 = vsel %vm2370_vm5, %v2104_v40, %v2378_v54  ;;  %2857 = vmatmul.f32.gmra.mxu0 %v6540_v31 }
 0x22c   : > { %v2394_v26 = vmul.f32 %v2386_v6, %v9363_v12  ;;  %v2410_v27 = vmul.f32 %v2386_v6, %v9364_v42  ;;  %v2426_v5 = vmul.f32 %v2386_v6, %v9365_v16  ;;  %3336 = vmatpush.msrb.mxu1 %v7269_v11  ;;  %v2201_v41 = vpop.f32.mrf.mxu3 }
 0x22d   : > { %v2150_v30 = vpop.f32.mrf.mxu2 }
 0x22e   : > { %v7400_v34 = vadd.f32 %v2394_v26, %v7142_v22  ;;  %v7403_v43 = vadd.f32 %v2410_v27, %v7144_v24  ;;  %v7406_v49 = vadd.f32 %v2426_v5, %v7146_v45  ;;  %v2107_v19 = vpop.f32.mrf.mxu1  ;;  %v2151_v28 = vadd.f32 %v2150_v30, %v7066_v29 }
 0x22f   : > { %v2108_v40 = vadd.f32 %v2107_v19, %v2073_v59 }
 0x230   : > { %v7409_v33 = vadd.f32 %v2201_v41, %v2151_v28  ;;  %v2076_v54 = vpop.f32.mrf.mxu0 }
 0x231   : > { %vm2372_vm6 = vcmp.ge.f32.partialorder %v2108_v40, 0.0  ;;  %v2380_v11 = vmul.f32 0.01, %v2108_v40  ;;  %2898 = vmatmul.f32.gmra.mxu1 %v6576_v8  ;;  %2980 = vmatmul.f32.gmra.mxu3 %v9347_v10  ;;  %v2077_v29 = vadd.f32 %v2076_v54, %v7363_v2 }
 0x232   : > { %2945 = vmatmul.f32.gmra.mxu2 %v9347_v10 }
 0x233   : > { %v2388_v22 = vsel %vm2372_vm6, %v2108_v40, %v2380_v11  ;;  %2862 = vmatmul.f32.gmra.mxu0 %v9344_v48 }
 0x234   : > { %v2396_v24 = vmul.f32 %v2388_v22, %v9363_v12  ;;  %v2412_v45 = vmul.f32 %v2388_v22, %v9364_v42  ;;  %v2428_v61 = vmul.f32 %v2388_v22, %v9365_v16  ;;  %v2205_v6 = vpop.f32.mrf.mxu3 }
 0x235   : > { %v2158_v41 = vpop.f32.mrf.mxu2 }
 0x236   : > { %v7420_v26 = vadd.f32 %v2396_v24, %v7165_v58  ;;  %v7423_v27 = vadd.f32 %v2412_v45, %v7167_v46  ;;  %v7426_v5 = vadd.f32 %v2428_v61, %v7169_v60  ;;  %v2111_v59 = vpop.f32.mrf.mxu1  ;;  %v2159_v30 = vadd.f32 %v2158_v41, %v7040_v4 }
 0x237   : > { %v2112_v19 = vadd.f32 %v2111_v59, %v2077_v29 }
 0x238   : > { %9366 = vst [vmem:[#allocation42_spill] sm:$0xff] %v7423_v27  ;;  %v7429_v2 = vadd.f32 %v2205_v6, %v2159_v30  ;;  %v2080_v28 = vpop.f32.mrf.mxu0 }
 0x239   : > { %9367 = vst [vmem:[#allocation43_spill] sm:$0xff] %v7426_v5  ;;  %vm2374_vm7 = vcmp.ge.f32.partialorder %v2112_v19, 0.0  ;;  %v2382_v40 = vmul.f32 0.01, %v2112_v19  ;;  %2904 = vmatmul.f32.gmra.mxu1 %v9342_v37  ;;  %2984 = vmatmul.f32.gmra.mxu3 %v9355_v18  ;;  %v2081_v4 = vadd.f32 %v2080_v28, %v7377_v20 }
 0x23a   : > { %2949 = vmatmul.f32.gmra.mxu2 %v9355_v18 }
 0x23b   : > { %v2390_v58 = vsel %vm2374_vm7, %v2112_v19, %v2382_v40  ;;  %2867 = vmatmul.f32.gmra.mxu0 %v9352_v51 }
 0x23c   : > { %v2398_v46 = vmul.f32 %v2390_v58, %v9363_v12  ;;  %v2414_v60 = vmul.f32 %v2390_v58, %v9364_v42  ;;  %v2430_v11 = vmul.f32 %v2390_v58, %v9365_v16  ;;  %v2209_v54 = vpop.f32.mrf.mxu3 }
 0x23d   : > { %v2166_v29 = vpop.f32.mrf.mxu2 }
 0x23e   : > { %v7440_v22 = vadd.f32 %v2398_v46, %v7186_v1  ;;  %v7443_v24 = vadd.f32 %v2414_v60, %v7188_v47  ;;  %v7446_v45 = vadd.f32 %v2430_v11, %v7190_v0  ;;  %v2115_v61 = vpop.f32.mrf.mxu1  ;;  %v2167_v59 = vadd.f32 %v2166_v29, %v6835_v62 }
 0x23f   : > { %v2116_v6 = vadd.f32 %v2115_v61, %v2081_v4  ;;  %v9374_v4 = vld [vmem:[#allocation25_spill] sm:$0xff]  ;;  %v9375_v61 = vld [vmem:[#allocation27_spill] sm:$0xff] }
 0x240   : > { %9368 = vst [vmem:[#allocation45_spill] sm:$0xff] %v7440_v22  ;;  %v7449_v20 = vadd.f32 %v2209_v54, %v2167_v59  ;;  %v2235_v19 = vpop.f32.mrf.mxu0  ;;  %v9408_v22 = vld [vmem:[#allocation47_spill] sm:$0xff] }
 0x241   : > { %9369 = vst [vmem:[#allocation30_spill] sm:$0xff] %v7443_v24  ;;  %vm2376_vm8 = vcmp.ge.f32.partialorder %v2116_v6, 0.0  ;;  %v2384_v41 = vmul.f32 0.01, %v2116_v6  ;;  %2910 = vmatmul.f32.gmra.mxu1 %v9351_v17  ;;  %3258 = vmatmul.f32.vlgmr.msra.gmra.mxu3 %v6449_v15  ;;  %v2236_v47 = vadd.f32 %v2235_v19, %v7388_v23  ;;  %v9378_v19 = vld [vmem:[#allocation12_spill] sm:$0xff] }
 0x242   : > { %9370 = vst [vmem:[#allocation38_spill] sm:$0xff] %v7446_v45  ;;  %3586 = vmatpush.msra.mxu3 %v7346_v13  ;;  %3218 = vmatmul.f32.vlgmr.msra.gmra.mxu2 %v6417_v63 }
 0x243   : > { %v2392_v1 = vsel %vm2376_vm8, %v2116_v6, %v2384_v41  ;;  %3549 = vmatpush.msra.mxu2 %v3421_v25  ;;  %3125 = vmatmul.f32.vlgmr.msra.gmra.mxu0 %v6550_v36  ;;  %v9376_v6 = vld [vmem:[#allocation34_spill] sm:$0xff]  ;;  %vm3734_vm8 = vcmask 785408  }
 0x244   : > { %v2400_v0 = vmul.f32 %v2392_v1, %v9363_v12  ;;  %v2416_v62 = vmul.f32 %v2392_v1, %v9364_v42  ;;  %v2432_v30 = vmul.f32 %v2392_v1, %v9365_v16  ;;  %3588 = vmatpush.msra.mxu3 %v7350_v35  ;;  %v2355_v40 = vpop.f32.mrf.mxu3  ;;  %3464 = vmatpush.msra.mxu0 %v7355_v50 }
 0x245   : > { %3553 = vmatpush.msra.mxu2 %v3427_v57  ;;  %v2320_v42 = vpop.f32.mrf.mxu2 }
 0x246   : > { %v7464_v23 = vadd.f32 %v2400_v0, %v7210_v39  ;;  %v7467_v28 = vadd.f32 %v2416_v62, %v7212_v21  ;;  %v7470_v12 = vadd.f32 %v2432_v30, %v7214_v56  ;;  %v2275_v25 = vpop.f32.mrf.mxu1  ;;  %3467 = vmatpush.msra.mxu0 %v7358_v55  ;;  %v3691_v21 = vld [vmem:[%s9149_s6 + $0x28] sm:$0xff] }
 0x247   : > { %v2276_v16 = vadd.f32 %v2275_v25, %v2236_v47  ;;  %3721 = vperm.xlu0 %6097, %v3691_v21   ;;  %v9380_v47 = vld [vmem:[#allocation18_spill] sm:$0xff] }
 0x248   : > { %9371 = vst [vmem:[#allocation28_spill] sm:$0xff] %v7464_v23  ;;  %v2240_v39 = vpop.f32.mrf.mxu0 }
 0x249   : > { %9372 = vst [vmem:[#allocation37_spill] sm:$0xff] %v7467_v28  ;;  %v2321_v58 = vadd.f32 %v2320_v42, %v2276_v16  ;;  %3180 = vmatmul.f32.vlgmr.msra.gmra.mxu1 %v6375_v44  ;;  %3264 = vmatmul.f32.gmra.mxu3 %v6576_v8  ;;  %v2241_v50 = vadd.f32 %v2240_v39, %v7409_v33 }
 0x24a   : > { %9373 = vst [vmem:[#allocation41_spill] sm:$0xff] %v7470_v12  ;;  %3504 = vmatpush.msra.mxu1 %v7346_v13  ;;  %3223 = vmatmul.f32.gmra.mxu2 %v6540_v31 }
 0x24b   : > { %v2356_v56 = vadd.f32 %v2355_v40, %v2321_v58  ;;  %3133 = vmatmul.f32.gmra.mxu0 %v6611_v38 }
 0x24c   : > { %3506 = vmatpush.msra.mxu1 %v7350_v35  ;;  %v2359_v57 = vpop.f32.mrf.mxu3  ;;  %v3688_v35 = vld [vmem:[%s9149_s6 + $0x10] sm:$0xff] }
 0x24d   : > { %vm2371_vm9 = vcmp.ge.f32.partialorder %v2356_v56, 0.0  ;;  %v2379_v55 = vmul.f32 0.01, %v2356_v56  ;;  %v2324_v46 = vpop.f32.mrf.mxu2 }
 0x24e   : > { %v2281_v13 = vpop.f32.mrf.mxu1 }
 0x24f   : > { %v2387_v60 = vsel %vm2371_vm9, %v2356_v56, %v2379_v55  ;;  %v2282_v11 = vadd.f32 %v2281_v13, %v2241_v50  ;;  %3706 = vperm.xlu0 %6097, %v3688_v35   ;;  %v4826_v55 = vld [vmem:[%s9151_s8 + $0x18] sm:$0xff] }
 0x250   : > { %v2395_v54 = vmul.f32 %v2387_v60, %v9374_v4  ;;  %v2411_v29 = vmul.f32 %v2387_v60, %v9375_v61  ;;  %v2427_v59 = vmul.f32 %v2387_v60, %v9376_v6  ;;  %v2245_v62 = vpop.f32.mrf.mxu0 }
 0x251   : > { %v2325_v33 = vadd.f32 %v2324_v46, %v2282_v11  ;;  %3184 = vmatmul.f32.gmra.mxu1 %v9339_v52  ;;  %3270 = vmatmul.f32.gmra.mxu3 %v9342_v37  ;;  %v2246_v40 = vadd.f32 %v2245_v62, %v7429_v2  ;;  %v9384_v46 = vld [vmem:[#allocation13_spill] sm:$0xff]  ;;  %v9386_v11 = vld [vmem:[#allocation19_spill] sm:$0xff] }
 0x252   : > { %v7494_v41 = vadd.f32 %v2395_v54, %v7241_v7  ;;  %v7497_v1 = vadd.f32 %v2411_v29, %v9378_v19  ;;  %v7500_v0 = vadd.f32 %v2427_v59, %v9380_v47  ;;  %3228 = vmatmul.f32.gmra.mxu2 %v9344_v48 }
 0x253   : > { %v2360_v30 = vadd.f32 %v2359_v57, %v2325_v33  ;;  %3141 = vmatmul.f32.gmra.mxu0 %v9345_v9  ;;  %v9382_v57 = vld [vmem:[#allocation6_spill] sm:$0xff] }
 0x254   : > { %9377 = vst [vmem:[#allocation51_spill] sm:$0xff] %v7494_v41  ;;  %v2363_v7 = vpop.f32.mrf.mxu3 }
 0x255   : > { %9379 = vst [vmem:[#allocation35_spill] sm:$0xff] %v7497_v1  ;;  %vm2373_vm10 = vcmp.ge.f32.partialorder %v2360_v30, 0.0  ;;  %v2381_v25 = vmul.f32 0.01, %v2360_v30  ;;  %v2328_v16 = vpop.f32.mrf.mxu2 }
 0x256   : > { %9381 = vst [vmem:[#allocation40_spill] sm:$0xff] %v7500_v0  ;;  %v2287_v42 = vpop.f32.mrf.mxu1 }
 0x257   : > { %v2389_v58 = vsel %vm2373_vm10, %v2360_v30, %v2381_v25  ;;  %v2288_v39 = vadd.f32 %v2287_v42, %v2246_v40  ;;  %4844 = vperm.xlu0 %6097, %v4826_v55  }
 0x258   : > { %v2397_v21 = vmul.f32 %v2389_v58, %v9374_v4  ;;  %v2413_v56 = vmul.f32 %v2389_v58, %v9375_v61  ;;  %v2429_v50 = vmul.f32 %v2389_v58, %v9376_v6  ;;  %v2250_v29 = vpop.f32.mrf.mxu0  ;;  %v9388_v58 = vld [vmem:[#allocation31_spill] sm:$0xff] }
 0x259   : > { %v2329_v2 = vadd.f32 %v2328_v16, %v2288_v39  ;;  %3188 = vmatmul.f32.gmra.mxu1 %v9347_v10  ;;  %3276 = vmatmul.f32.gmra.mxu3 %v9351_v17  ;;  %v2251_v35 = vadd.f32 %v2250_v29, %v7449_v20  ;;  %v4823_v16 = vld [vmem:[%s9151_s8] sm:$0xff] }
 0x25a   : > { %v7514_v13 = vadd.f32 %v2397_v21, %v9382_v57  ;;  %v7517_v60 = vadd.f32 %v2413_v56, %v9384_v46  ;;  %v7520_v54 = vadd.f32 %v2429_v50, %v9386_v11  ;;  %3233 = vmatmul.f32.gmra.mxu2 %v9352_v51  ;;  %v9390_v21 = vld [vmem:[#allocation7_spill] sm:$0xff]  ;;  %v9392_v50 = vld [vmem:[#allocation50_spill] sm:$0xff] }
 0x25b   : > { %v2364_v59 = vadd.f32 %v2363_v7, %v2329_v2  ;;  %3149 = vmatmul.f32.gmra.mxu0 %v9353_v32 }
 0x25c   : > { %9383 = vst [vmem:[#allocation39_spill] sm:$0xff] %v7514_v13  ;;  %v2367_v19 = vpop.f32.mrf.mxu3 }
 0x25d   : > { %9385 = vst [vmem:[#allocation44_spill] sm:$0xff] %v7517_v60  ;;  %vm2375_vm11 = vcmp.ge.f32.partialorder %v2364_v59, 0.0  ;;  %v2383_v33 = vmul.f32 0.01, %v2364_v59  ;;  %v2332_v62 = vpop.f32.mrf.mxu2 }
 0x25e   : > { %9387 = vst [vmem:[#allocation52_spill] sm:$0xff] %v7520_v54  ;;  %v2293_v47 = vpop.f32.mrf.mxu1 }
 0x25f   : > { %v2391_v30 = vsel %vm2375_vm11, %v2364_v59, %v2383_v33  ;;  %v2294_v40 = vadd.f32 %v2293_v47, %v2251_v35  ;;  %4829 = vperm.xlu0 %6097, %v4823_v16  }
 0x260   : > { %v2399_v25 = vmul.f32 %v2391_v30, %v9374_v4  ;;  %v2415_v42 = vmul.f32 %v2391_v30, %v9375_v61  ;;  %v2431_v7 = vmul.f32 %v2391_v30, %v9376_v6  ;;  %v7542_v2 = vpop.f32.mrf.mxu0 }
 0x261   : > { %v2333_v20 = vadd.f32 %v2332_v62, %v2294_v40  ;;  %3192 = vmatmul.f32.gmra.mxu1 %v9355_v18  ;;  %3432 = vmatmul.f32.vlgmr.msrb.gmra.mxu3 %v6375_v44 }
 0x262   : > { %v7534_v39 = vadd.f32 %v2399_v25, %v9388_v58  ;;  %v7537_v56 = vadd.f32 %v2415_v42, %v9390_v21  ;;  %v7540_v55 = vadd.f32 %v2431_v7, %v9392_v50  ;;  %3377 = vmatmul.f32.vlgmr.msrb.gmra.mxu2 %v6550_v36 }
 0x263   : > { %v2368_v57 = vadd.f32 %v2367_v19, %v2333_v20  ;;  %3303 = vmatmul.f32.vlgmr.msrb.gmra.mxu0 %v6375_v44 }
 0x264   : > { %9389 = vst [vmem:[#allocation36_spill] sm:$0xff] %v7534_v39  ;;  %v7547_v11 = vpop.f32.mrf.mxu3 }
 0x265   : > { %9391 = vst [vmem:[#allocation32_spill] sm:$0xff] %v7537_v56  ;;  %vm2377_vm12 = vcmp.ge.f32.partialorder %v2368_v57, 0.0  ;;  %v2385_v46 = vmul.f32 0.01, %v2368_v57  ;;  %v7551_v59 = vpop.f32.mrf.mxu2 }
 0x266   : > { %9393 = vst [vmem:[#allocation29_spill] sm:$0xff] %v7540_v55  ;;  %v7549_v29 = vpop.f32.mrf.mxu1 }
 0x267   : > { %v2393_v35 = vsel %vm2377_vm12, %v2368_v57, %v2385_v46 }
 0x268   : > { %v2401_v33 = vmul.f32 %v2393_v35, %v9374_v4  ;;  %v2417_v47 = vmul.f32 %v2393_v35, %v9375_v61  ;;  %v2433_v19 = vmul.f32 %v2393_v35, %v9376_v6  ;;  %v7566_v40 = vpop.f32.mrf.mxu0 }
 0x269   : > { %3338 = vmatmul.f32.vlgmr.msrb.gmra.mxu1 %v6375_v44  ;;  %3436 = vmatmul.f32.gmra.mxu3 %v9339_v52 }
 0x26a   : > { %v7558_v36 = vadd.f32 %v2401_v33, %v7330_v14  ;;  %v7561_v62 = vadd.f32 %v2417_v47, %v7332_v53  ;;  %v7564_v30 = vadd.f32 %v2433_v19, %v7334_v3  ;;  %3385 = vmatmul.f32.gmra.mxu2 %v6611_v38 }
 0x26b   : > { %3307 = vmatmul.f32.gmra.mxu0 %v9339_v52 }
 0x26c   : > { %9394 = vst [vmem:[#allocation24_spill] sm:$0xff] %v7558_v36  ;;  %v7571_v4 = vpop.f32.mrf.mxu3 }
 0x26d   : > { %9395 = vst [vmem:[#allocation26_spill] sm:$0xff] %v7561_v62  ;;  %v7575_v14 = vpop.f32.mrf.mxu2 }
 0x26e   : > { %9396 = vst [vmem:[#allocation33_spill] sm:$0xff] %v7564_v30  ;;  %v7573_v61 = vpop.f32.mrf.mxu1 }
 0x270   : > { %v7578_v53 = vpop.f32.mrf.mxu0 }
 0x271   : > { %3342 = vmatmul.f32.gmra.mxu1 %v9339_v52  ;;  %3440 = vmatmul.f32.gmra.mxu3 %v9347_v10 }
 0x272   : > { %3393 = vmatmul.f32.gmra.mxu2 %v9345_v9 }
 0x273   : > { %3311 = vmatmul.f32.gmra.mxu0 %v9347_v10 }
 0x274   : > { %v7583_v3 = vpop.f32.mrf.mxu3 }
 0x275   : > { %v7587_v6 = vpop.f32.mrf.mxu2 }
 0x276   : > { %v7585_v38 = vpop.f32.mrf.mxu1 }
 0x278   : > { %v7590_v25 = vpop.f32.mrf.mxu0 }
 0x279   : > { %3346 = vmatmul.f32.gmra.mxu1 %v9347_v10  ;;  %3444 = vmatmul.f32.gmra.mxu3 %v9355_v18 }
 0x27a   : > { %3401 = vmatmul.f32.gmra.mxu2 %v9353_v32 }
 0x27b   : > { %3315 = vmatmul.f32.gmra.mxu0 %v9355_v18 }
 0x27c   : > { %v7595_v42 = vpop.f32.mrf.mxu3 }
 0x27d   : > { %v7599_v7 = vpop.f32.mrf.mxu2 }
 0x27e   : > { %v7597_v9 = vpop.f32.mrf.mxu1 }
 0x280   : > { %v7602_v16 = vpop.f32.mrf.mxu0 }
 0x281   : > { %3350 = vmatmul.f32.gmra.mxu1 %v9355_v18  ;;  %3590 = vmatmul.f32.vlgmr.msra.gmra.mxu3 %v6375_v44 }
 0x282   : > { %3555 = vmatmul.f32.vlgmr.msra.gmra.mxu2 %v6375_v44 }
 0x283   : > { %3470 = vmatmul.f32.vlgmr.msra.gmra.mxu0 %v6417_v63 }
 0x284   : > { %v7607_v20 = vpop.f32.mrf.mxu3 }
 0x285   : > { %v7611_v58 = vpop.f32.mrf.mxu2 }
 0x286   : > { %v7609_v32 = vpop.f32.mrf.mxu1 }
 0x288   : > { %v7614_v21 = vpop.f32.mrf.mxu0 }
 0x289   : > { %3510 = vmatmul.f32.vlgmr.msra.gmra.mxu1 %v6449_v15  ;;  %3594 = vmatmul.f32.gmra.mxu3 %v9339_v52 }
 0x28a   : > { %3559 = vmatmul.f32.gmra.mxu2 %v9339_v52 }
 0x28b   : > { %3475 = vmatmul.f32.gmra.mxu0 %v6540_v31 }
 0x28c   : > { %v7619_v50 = vpop.f32.mrf.mxu3 }
 0x28d   : > { %v7623_v63 = vpop.f32.mrf.mxu2 }
 0x28e   : > { %v7621_v44 = vpop.f32.mrf.mxu1 }
 0x290   : > { %v7626_v57 = vpop.f32.mrf.mxu0 }
 0x291   : > { %3516 = vmatmul.f32.gmra.mxu1 %v6576_v8  ;;  %3598 = vmatmul.f32.gmra.mxu3 %v9347_v10 }
 0x292   : > { %3563 = vmatmul.f32.gmra.mxu2 %v9347_v10 }
 0x293   : > { %3480 = vmatmul.f32.gmra.mxu0 %v9344_v48 }
 0x294   : > { %v7631_v15 = vpop.f32.mrf.mxu3 }
 0x295   : > { %v7635_v31 = vpop.f32.mrf.mxu2 }
 0x296   : > { %v7633_v52 = vpop.f32.mrf.mxu1 }
 0x298   : > { %v7638_v46 = vpop.f32.mrf.mxu0 }
 0x299   : > { %3522 = vmatmul.f32.gmra.mxu1 %v9342_v37  ;;  %3602 = vmatmul.f32.gmra.mxu3 %v9355_v18 }
 0x29a   : > { %3567 = vmatmul.f32.gmra.mxu2 %v9355_v18 }
 0x29b   : > { %3485 = vmatmul.f32.gmra.mxu0 %v9352_v51 }
 0x29c   : > { %v7643_v8 = vpop.f32.mrf.mxu3 }
 0x29d   : > { %9397 = vst [vmem:[#allocation25_spill] sm:$0xff] %v7643_v8  ;;  %v7647_v48 = vpop.f32.mrf.mxu2  ;;  %v9409_v8 = vld [vmem:[#allocation46_spill] sm:$0xff] }
 0x29e   : > { %v7645_v10 = vpop.f32.mrf.mxu1  ;;  %9398 = vst [vmem:[#allocation27_spill] sm:$0xff] %v7647_v48 }
 0x2a0   : > { %v7650_v35 = vpop.f32.mrf.mxu0 }
 0x2a1   : > { %3528 = vmatmul.f32.gmra.mxu1 %v9351_v17 }
 0x2a4   : > { %v7652_v33 = vpop.f32.mrf.mxu3 }
 0x2a5   : > { %9399 = vst [vmem:[#allocation34_spill] sm:$0xff] %v7652_v33  ;;  %v7656_v47 = vpop.f32.mrf.mxu2 }
 0x2a6   : > { %v7654_v37 = vpop.f32.mrf.mxu1 }
 0x2a8   : > { %v7658_v19 = vpop.f32.mrf.mxu0 }
 0x2ac   : > { %v7660_v18 = vpop.f32.mrf.mxu3 }
 0x2ad   : > { %9400 = vst [vmem:[#allocation12_spill] sm:$0xff] %v7660_v18  ;;  %v7664_v41 = vpop.f32.mrf.mxu2 }
 0x2ae   : > { %v7662_v51 = vpop.f32.mrf.mxu1  ;;  %9401 = vst [vmem:[#allocation18_spill] sm:$0xff] %v7664_v41 }
 0x2b0   : > { %v7666_v39 = vpop.f32.mrf.mxu0 }
 0x2b4   : > { %v7668_v13 = vpop.f32.mrf.mxu3 }
 0x2b5   : > { %9402 = vst [vmem:[#allocation6_spill] sm:$0xff] %v7668_v13  ;;  %v7672_v36 = vpop.f32.mrf.mxu2  ;;  %v2509_v13 = vadd.f32 %v7542_v2, %v9408_v22 }
 0x2b6   : > { %v7670_v17 = vpop.f32.mrf.mxu1  ;;  %9403 = vst [vmem:[#allocation13_spill] sm:$0xff] %v7672_v36  ;;  %v9411_v36 = vld [vmem:[#allocation48_spill] sm:$0xff] }
 0x2b7   : > { %v2525_v48 = vadd.f32 %v7578_v53, %v9411_v36 }
 0x2b8   : > { %v7674_v1 = vpop.f32.mrf.mxu0 }
 0x2b9   : > { %9404 = vst [vmem:[#allocation19_spill] sm:$0xff] %v7674_v1  ;;  %v2564_v1 = vadd.f32 %v7549_v29, %v2509_v13  ;;  %v2572_v29 = vadd.f32 %v7585_v38, %v2525_v48 }
 0x2bb   : > { %v2602_v45 = vadd.f32 %v7551_v59, %v2564_v1 }
 0x2bc   : > { %v7676_v60 = vpop.f32.mrf.mxu3 }
 0x2bd   : > { %9405 = vst [vmem:[#allocation31_spill] sm:$0xff] %v7676_v60  ;;  %v7680_v62 = vpop.f32.mrf.mxu2  ;;  %v2642_v2 = vadd.f32 %v7547_v11, %v2602_v45  ;;  %v2612_v11 = vadd.f32 %v7587_v6, %v2572_v29 }
 0x2be   : > { %v7678_v56 = vpop.f32.mrf.mxu1  ;;  %9407 = vst [vmem:[#allocation50_spill] sm:$0xff] %v7680_v62 }
 0x2bf   : > { %9406 = vst [vmem:[#allocation7_spill] sm:$0xff] %v7678_v56  ;;  %v2517_v56 = vadd.f32 %v7566_v40, %v9409_v8  ;;  %v2687_v40 = vadd.f32 %v7602_v16, %v2642_v2 }
 0x2c0   : > { %v3126_v30 = vpop.f32.mrf.mxu0 }
 0x2c1   : > { %v2568_v5 = vadd.f32 %v7573_v61, %v2517_v56  ;;  %v2722_v1 = vadd.f32 %v7609_v32, %v2687_v40  ;;  %v9412_v61 = vld [vmem:[#allocation49_spill] sm:$0xff]  ;;  %v2654_v32 = vadd.f32 %v7583_v3, %v2612_v11  ;;  %v2761_v3 = vadd.f32 %v7611_v58, %v9408_v22 }
 0x2c2   : > { %v2533_v45 = vadd.f32 %v7590_v25, %v9412_v61  ;;  %v2777_v25 = vadd.f32 %v7635_v31, %v9411_v36 }
 0x2c3   : > { %v2607_v13 = vadd.f32 %v7575_v14, %v2568_v5  ;;  %v2996_v53 = vmul.f32 0.01, %v2722_v1  ;;  %vm2988_vm13 = vcmp.ge.f32.partialorder %v2722_v1, 0.0 }
 0x2c4   : > { %v7682_v0 = vpop.f32.mrf.mxu3  ;;  %v2576_v5 = vadd.f32 %v7597_v9, %v2533_v45  ;;  %v2695_v9 = vadd.f32 %v7626_v57, %v2654_v32  ;;  %v9414_v45 = vld [vmem:[#allocation20_spill] sm:$0xff] }
 0x2c5   : > { %v3219_v55 = vpop.f32.mrf.mxu2  ;;  %v2648_v56 = vadd.f32 %v7571_v4, %v2607_v13  ;;  %v3127_v4 = vadd.f32 %v3126_v30, %v9408_v22 }
 0x2c6   : > { %v3181_v54 = vpop.f32.mrf.mxu1  ;;  %v2617_v6 = vadd.f32 %v7599_v7, %v2576_v5 }
 0x2c7   : > { %v2691_v14 = vadd.f32 %v7614_v21, %v2648_v56  ;;  %v3182_v21 = vadd.f32 %v3181_v54, %v3127_v4  ;;  %v2824_v54 = vadd.f32 %v7631_v15, %v2777_v25 }
 0x2c8   : > { %v3134_v12 = vpop.f32.mrf.mxu0  ;;  %v2660_v31 = vadd.f32 %v7595_v42, %v2617_v6 }
 0x2c9   : > { %v3135_v38 = vadd.f32 %v3134_v12, %v9409_v8  ;;  %v2726_v48 = vadd.f32 %v7621_v44, %v2691_v14  ;;  %v3004_v12 = vsel %vm2988_vm13, %v2722_v1, %v2996_v53  ;;  %v2769_v44 = vadd.f32 %v7623_v63, %v9409_v8  ;;  %v9413_v1 = vld [vmem:[#allocation14_spill] sm:$0xff]  ;;  %v9415_v63 = vld [vmem:[#allocation8_spill] sm:$0xff] }
 0x2ca   : > { %v3012_v56 = vmul.f32 %v3004_v12, %v9413_v1  ;;  %v3220_v58 = vadd.f32 %v3219_v55, %v3182_v21  ;;  %v3028_v11 = vmul.f32 %v3004_v12, %v9414_v45  ;;  %v3044_v5 = vmul.f32 %v3004_v12, %v9415_v63 }
 0x2cb   : > { %v2998_v40 = vmul.f32 0.01, %v2726_v48  ;;  %vm2990_vm14 = vcmp.ge.f32.partialorder %v2726_v48, 0.0  ;;  %v2816_v14 = vadd.f32 %v7607_v20, %v2761_v3  ;;  %v2820_v53 = vadd.f32 %v7619_v50, %v2769_v44 }
 0x2cc   : > { %v7684_v28 = vpop.f32.mrf.mxu3  ;;  %v2864_v55 = vadd.f32 %v7666_v39, %v2824_v54  ;;  %v7749_v25 = vadd.f32 %v3012_v56, %v7400_v34  ;;  %v3260_v50 = vadd.f32 %v7682_v0, %v3220_v58  ;;  %v7761_v34 = vadd.f32 %v3028_v11, %v7403_v43  ;;  %v9421_v58 = vld [vmem:[#allocation13_spill] sm:$0xff] }
 0x2cd   : > { %v3224_v24 = vpop.f32.mrf.mxu2  ;;  %v2859_v42 = vadd.f32 %v7658_v19, %v2820_v53 }
 0x2ce   : > { %v3185_v23 = vpop.f32.mrf.mxu1  ;;  %v2906_v21 = vadd.f32 %v7670_v17, %v2864_v55 }
 0x2cf   : > { %v3186_v2 = vadd.f32 %v3185_v23, %v3135_v38  ;;  %v2730_v23 = vadd.f32 %v7633_v52, %v2695_v9  ;;  %v3006_v38 = vsel %vm2990_vm14, %v2726_v48, %v2998_v40  ;;  %v2900_v19 = vadd.f32 %v7662_v51, %v2859_v42 }
 0x2d0   : > { %v3142_v60 = vpop.f32.mrf.mxu0  ;;  %v3046_v6 = vmul.f32 %v3006_v38, %v9415_v63  ;;  %v7768_v51 = vadd.f32 %v3044_v5, %v7406_v49  ;;  %v2947_v11 = vadd.f32 %v9421_v58, %v2906_v21 }
 0x2d1   : > { %v3143_v7 = vadd.f32 %v3142_v60, %v9411_v36  ;;  %v3225_v57 = vadd.f32 %v3224_v24, %v3186_v2  ;;  %v2699_v60 = vadd.f32 %v7638_v46, %v2660_v31  ;;  %v3000_v32 = vmul.f32 0.01, %v2730_v23 }
 0x2d2   : > { %v2854_v24 = vadd.f32 %v7650_v35, %v2816_v14  ;;  %vm2992_vm15 = vcmp.ge.f32.partialorder %v2730_v23, 0.0  ;;  %v3014_v46 = vmul.f32 %v3006_v38, %v9413_v1 }
 0x2d3   : > { %v3266_v4 = vadd.f32 %v7684_v28, %v3225_v57  ;;  %v2734_v20 = vadd.f32 %v7645_v10, %v2699_v60  ;;  %v3030_v28 = vmul.f32 %v3006_v38, %v9414_v45  ;;  %v3008_v9 = vsel %vm2992_vm15, %v2730_v23, %v3000_v32  ;;  %v9422_v60 = vld [vmem:[#allocation34_spill] sm:$0xff] }
 0x2d4   : > { %v7691_v62 = vpop.f32.mrf.mxu3  ;;  %v2894_v35 = vadd.f32 %v7654_v37, %v2854_v24  ;;  %v7773_v44 = vadd.f32 %v3014_v46, %v7420_v26  ;;  %v3048_v49 = vmul.f32 %v3008_v9, %v9415_v63  ;;  %v9420_v26 = vld [vmem:[#allocation27_spill] sm:$0xff]  ;;  %v3016_v38 = vmul.f32 %v3008_v9, %v9413_v1 }
 0x2d5   : > { %9410 = vst [vmem:[#allocation47_spill] sm:$0xff] %v7691_v62  ;;  %v7694_v33 = vpop.f32.mrf.mxu2  ;;  %v3002_v12 = vmul.f32 0.01, %v2734_v20  ;;  %vm2994_vm0 = vcmp.ge.f32.partialorder %v2734_v20, 0.0  ;;  %v2785_v56 = vadd.f32 %v9420_v26, %v9412_v61  ;;  %v3032_v55 = vmul.f32 %v3008_v9, %v9414_v45 }
 0x2d6   : > { %v3189_v18 = vpop.f32.mrf.mxu1 }
 0x2d7   : > { %v3190_v15 = vadd.f32 %v3189_v18, %v3143_v7  ;;  %v9417_v7 = vld [vmem:[#allocation42_spill] sm:$0xff]  ;;  %v3010_v5 = vsel %vm2994_vm0, %v2734_v20, %v3002_v12  ;;  %v9427_v12 = vld [vmem:[#allocation19_spill] sm:$0xff] }
 0x2d8   : > { %v7700_v27 = vpop.f32.mrf.mxu0  ;;  %v7778_v17 = vadd.f32 %v3030_v28, %v9417_v7  ;;  %v9429_v7 = vld [vmem:[#allocation7_spill] sm:$0xff] }
 0x2d9   : > { %v3230_v10 = vadd.f32 %v7694_v33, %v3190_v15  ;;  %v3151_v3 = vadd.f32 %v7700_v27, %v9412_v61  ;;  %v2939_v33 = vadd.f32 %v7656_v47, %v2894_v35  ;;  %v9419_v27 = vld [vmem:[#allocation43_spill] sm:$0xff]  ;;  %v9423_v15 = vld [vmem:[#allocation12_spill] sm:$0xff]  ;;  %v3018_v35 = vmul.f32 %v3010_v5, %v9413_v1 }
 0x2db   : > { %v2974_v32 = vadd.f32 %v9422_v60, %v2939_v33 }
 0x2dc   : > { %v7705_v62 = vpop.f32.mrf.mxu3  ;;  %v9418_v54 = vld [vmem:[#allocation47_spill] sm:$0xff] }
 0x2dd   : > { %v7710_v41 = vpop.f32.mrf.mxu2  ;;  %v3272_v57 = vadd.f32 %v9418_v54, %v3230_v10  ;;  %vm2989_vm4 = vcmp.ge.f32.partialorder %v2974_v32, 0.0  ;;  %v2997_v9 = vmul.f32 0.01, %v2974_v32  ;;  %v9430_v54 = vld [vmem:[#allocation45_spill] sm:$0xff] }
 0x2de   : > { %v7708_v59 = vpop.f32.mrf.mxu1 }
 0x2df   : > { %v3194_v31 = vadd.f32 %v7708_v59, %v3151_v3 }
 0x2e0   : > { %v3304_v16 = vpop.f32.mrf.mxu0 }
 0x2e1   : > { %v3305_v0 = vadd.f32 %v3304_v16, %v3260_v50  ;;  %v9416_v16 = vld [vmem:[#allocation18_spill] sm:$0xff]  ;;  %v3235_v20 = vadd.f32 %v7710_v41, %v3194_v31 }
 0x2e2   : > { %v2943_v40 = vadd.f32 %v9416_v16, %v2900_v19  ;;  %v9425_v19 = vld [vmem:[#allocation25_spill] sm:$0xff]  ;;  %v9428_v16 = vld [vmem:[#allocation10_spill] sm:$0xff] }
 0x2e3   : > { %v3278_v1 = vadd.f32 %v7705_v62, %v3235_v20  ;;  %v9431_v31 = vld [vmem:[#allocation30_spill] sm:$0xff] }
 0x2e4   : > { %v7726_v13 = vpop.f32.mrf.mxu3  ;;  %v2978_v59 = vadd.f32 %v9423_v15, %v2943_v40 }
 0x2e5   : > { %v7732_v30 = vpop.f32.mrf.mxu2 }
 0x2e6   : > { %v3339_v29 = vpop.f32.mrf.mxu1  ;;  %vm2991_vm5 = vcmp.ge.f32.partialorder %v2978_v59, 0.0  ;;  %v2999_v33 = vmul.f32 0.01, %v2978_v59 }
 0x2e7   : > { %v3340_v43 = vadd.f32 %v3339_v29, %v3305_v0  ;;  %v3054_v29 = vadd.f32 %v3046_v6, %v9419_v27  ;;  %v3034_v0 = vmul.f32 %v3010_v5, %v9414_v45  ;;  %v3040_v27 = vadd.f32 %v3032_v55, %v9431_v31 }
 0x2e8   : > { %v3308_v52 = vpop.f32.mrf.mxu0 }
 0x2e9   : > { %v3309_v18 = vadd.f32 %v3308_v52, %v3266_v4  ;;  %v3614_v14 = vmul.f32 0.01, %v3340_v43  ;;  %vm3606_vm2 = vcmp.ge.f32.partialorder %v3340_v43, 0.0  ;;  %v9424_v4 = vld [vmem:[#allocation38_spill] sm:$0xff] }
 0x2ea   : > { %v3056_v50 = vadd.f32 %v3048_v49, %v9424_v4 }
 0x2eb   : > { %v7803_v6 = vsel %vm3606_vm2, %v3340_v43, %v3614_v14  ;;  %v3050_v14 = vmul.f32 %v3010_v5, %v9415_v63 }
 0x2ec   : > { %v7753_v48 = vpop.f32.mrf.mxu3  ;;  %v3662_v43 = vmul.f32 %v7803_v6, %v9428_v16 }
 0x2ed   : > { %v7758_v2 = vpop.f32.mrf.mxu2 }
 0x2ee   : > { %v3343_v39 = vpop.f32.mrf.mxu1  ;;  %v3670_v63 = vadd.f32 %v3662_v43, %v7768_v51 }
 0x2ef   : > { %v3344_v37 = vadd.f32 %v3343_v39, %v3309_v18  ;;  %v2828_v18 = vadd.f32 %v9425_v19, %v2785_v56  ;;  %v9426_v39 = vld [vmem:[#allocation6_spill] sm:$0xff]  ;;  %v9432_v56 = vld [vmem:[#allocation28_spill] sm:$0xff] }
 0x2f0   : > { %v3312_v23 = vpop.f32.mrf.mxu0  ;;  %v2982_v28 = vadd.f32 %v9426_v39, %v2947_v11  ;;  %v7820_v58 = vadd.f32 %v3018_v35, %v9432_v56  ;;  %v9433_v11 = vld [vmem:[#allocation37_spill] sm:$0xff]  ;;  %v9435_v19 = vld [vmem:[#allocation22_spill] sm:$0xff]  ;;  %v9439_v56 = vld [vmem:[#allocation16_spill] sm:$0xff] }
 0x2f1   : > { %v3616_v47 = vmul.f32 0.01, %v3344_v37  ;;  %v3313_v53 = vadd.f32 %v3312_v23, %v3272_v57  ;;  %vm3608_vm1 = vcmp.ge.f32.partialorder %v3344_v37, 0.0  ;;  %v2869_v41 = vadd.f32 %v9427_v12, %v2828_v18  ;;  %v9436_v39 = vld [vmem:[#allocation41_spill] sm:$0xff] }
 0x2f2   : > { %v3001_v23 = vmul.f32 0.01, %v2982_v28  ;;  %v7814_v57 = vadd.f32 %v3016_v38, %v9430_v54  ;;  %vm2993_vm6 = vcmp.ge.f32.partialorder %v2982_v28, 0.0  ;;  %v7827_v38 = vsel %vm2989_vm4, %v2974_v32, %v2997_v9 }
 0x2f3   : > { %v7800_v10 = vsel %vm3608_vm1, %v3344_v37, %v3616_v47  ;;  %v2912_v45 = vadd.f32 %v9429_v7, %v2869_v41  ;;  %v3042_v47 = vadd.f32 %v3034_v0, %v9433_v11  ;;  %v9437_v0 = vld [vmem:[#allocation9_spill] sm:$0xff]  ;;  %v3646_v12 = vmul.f32 %v7803_v6, %v9435_v19 }
 0x2f4   : > { %v7787_v52 = vpop.f32.mrf.mxu3  ;;  %v3664_v40 = vmul.f32 %v7800_v10, %v9428_v16  ;;  %v7832_v20 = vsel %vm2993_vm6, %v2982_v28, %v3001_v23  ;;  %v3648_v18 = vmul.f32 %v7800_v10, %v9435_v19  ;;  %v3630_v11 = vmul.f32 %v7803_v6, %v9439_v56 }
 0x2f5   : > { %v7792_v42 = vpop.f32.mrf.mxu2  ;;  %v7854_v9 = vmul.f32 %v7832_v20, %v9437_v0  ;;  %vm4847_vm1 = vcmask 523264  }
 0x2f6   : > { %v3347_v24 = vpop.f32.mrf.mxu1  ;;  %v3672_v4 = vadd.f32 %v3664_v40, %v3054_v29  ;;  %v7844_v29 = vmul.f32 %v7827_v38, %v9437_v0  ;;  %v3387_v40 = vadd.f32 %v7758_v2, %v9409_v8  ;;  %v3395_v31 = vadd.f32 %v7792_v42, %v9411_v36 }
 0x2f7   : > { %v3348_v46 = vadd.f32 %v3347_v24, %v3313_v53  ;;  %v7830_v24 = vsel %vm2991_vm5, %v2978_v59, %v2999_v33  ;;  %v3058_v59 = vadd.f32 %v3050_v14, %v9436_v39  ;;  %v9438_v33 = vld [vmem:[#allocation31_spill] sm:$0xff] }
 0x2f8   : > { %v3316_v3 = vpop.f32.mrf.mxu0  ;;  %v7848_v28 = vmul.f32 %v7830_v24, %v9437_v0 }
 0x2f9   : > { %vm3610_vm3 = vcmp.ge.f32.partialorder %v3348_v46, 0.0  ;;  %v3618_v21 = vmul.f32 0.01, %v3348_v46  ;;  %v3317_v26 = vadd.f32 %v3316_v3, %v3278_v1  ;;  %v7858_v3 = vand.u32 4294901760, %v3672_v4 }
 0x2fb   : > { %v3626_v37 = vsel %vm3610_vm3, %v3348_v46, %v3618_v21  ;;  %v9434_v46 = vld [vmem:[#allocation50_spill] sm:$0xff]  ;;  %v3379_v21 = vadd.f32 %v7732_v30, %v9408_v22 }
 0x2fc   : > { %v3666_v49 = vmul.f32 %v3626_v37, %v9428_v16  ;;  %v7817_v62 = vpop.f32.mrf.mxu3  ;;  %v2951_v35 = vadd.f32 %v9434_v46, %v2912_v45  ;;  %v3650_v5 = vmul.f32 %v3626_v37, %v9435_v19  ;;  %v7872_v45 = vand.u32 4294901760, %v3670_v63 }
 0x2fd   : > { %v7824_v60 = vpop.f32.mrf.mxu2  ;;  %v3434_v54 = vadd.f32 %v7726_v13, %v3379_v21  ;;  %v3634_v14 = vmul.f32 %v3626_v37, %v9439_v56  ;;  %v3438_v13 = vadd.f32 %v7753_v48, %v3387_v40  ;;  %v3632_v48 = vmul.f32 %v7800_v10, %v9439_v56 }
 0x2fe   : > { %v3351_v53 = vpop.f32.mrf.mxu1  ;;  %v3674_v15 = vadd.f32 %v3666_v49, %v3056_v50  ;;  %v7861_v1 = vadd.f32 %v9438_v33, %v2951_v35  ;;  %v3658_v43 = vadd.f32 %v3650_v5, %v3040_v27  ;;  %v3656_v49 = vadd.f32 %v3648_v18, %v7778_v17 }
 0x2ff   : > { %v3352_v55 = vadd.f32 %v3351_v53, %v3317_v26  ;;  %v7884_v53 = vsub.f32 %v3672_v4, %v7858_v3  ;;  %v3654_v17 = vadd.f32 %v3646_v12, %v7761_v34  ;;  %v7897_v6 = vsub.f32 %v3670_v63, %v7872_v45 }
 0x300   : > { %v7839_v32 = vand.u32 4294901760, %v3674_v15  ;;  %v3471_v51 = vpop.f32.mrf.mxu0  ;;  %v7899_v37 = vand.u32 4294901760, %v3658_v43  ;;  %v7902_v34 = vand.u32 4294901760, %v3656_v49  ;;  %v3642_v18 = vadd.f32 %v3634_v14, %v7814_v57 }
 0x301   : > { %vm3612_vm7 = vcmp.ge.f32.partialorder %v3352_v55, 0.0  ;;  %v3620_v50 = vmul.f32 0.01, %v3352_v55  ;;  %v9255_v35 = vand.u32 4294901760, %v7884_v53  ;;  %v3472_v63 = vadd.f32 %v3471_v51, %v3434_v54 }
 0x302   : > { %v7870_v7 = vsub.f32 %v3674_v15, %v7839_v32  ;;  %v9254_v21 = vand.u32 4294901760, %v7897_v6  ;;  %v7937_v51 = vsub.f32 %v3656_v49, %v7902_v34  ;;  %v7953_v49 = vand.u32 4294901760, %v3642_v18 }
 0x303   : > { %v3628_v41 = vsel %vm3612_vm7, %v3352_v55, %v3620_v50  ;;  %v7907_v55 = vadd.f32 %v7787_v52, %v3395_v31  ;;  %v3640_v54 = vadd.f32 %v3632_v48, %v7773_v44  ;;  %vm2995_vm9 = vcmp.ge.f32.partialorder %v7861_v1, 0.0 }
 0x304   : > { %v3652_v23 = vmul.f32 %v3628_v41, %v9435_v19  ;;  %v3668_v22 = vmul.f32 %v3628_v41, %v9428_v16  ;;  %v7867_v30 = vpop.f32.mrf.mxu3  ;;  %v3636_v27 = vmul.f32 %v3628_v41, %v9439_v56  ;;  %v9256_v15 = vand.u32 4294901760, %v7870_v7  ;;  %v3679_v56 = vld [vmem:[%s9148_s5 + $0x8] sm:$0xff] }
 0x305   : > { %v7878_v2 = vpop.f32.mrf.mxu2  ;;  %v7915_v19 = vand.u32 4294901760, %v3654_v17  ;;  %v3877_v44 = vsub.f32 %v7897_v6, %v9254_v21 }
 0x306   : > { %v3511_v8 = vpop.f32.mrf.mxu1  ;;  %v3676_v26 = vadd.f32 %v3668_v22, %v3058_v59  ;;  %v3660_v16 = vadd.f32 %v3652_v23, %v3042_v47  ;;  %v3678_v47 = vld [vmem:[%s9148_s5] sm:$0xff]  ;;  %v3644_v50 = vadd.f32 %v3636_v27, %v7820_v58  ;;  %v3865_v57 = vsub.f32 %v7870_v7, %v9256_v15 }
 0x307   : > { %v3736_v10 = vsel %vm3734_vm8, %v3678_v47, 0  ;;  %v7933_v59 = vsub.f32 %v3658_v43, %v7899_v37  ;;  %v3512_v41 = vadd.f32 %v3511_v8, %v3472_v63  ;;  %v3871_v22 = vsub.f32 %v7884_v53, %v9255_v35 }
 0x308   : > { %v7889_v36 = vand.u32 4294901760, %v3676_v26  ;;  %v7891_v42 = vand.u32 4294901760, %v3660_v16  ;;  %v3476_v4 = vpop.f32.mrf.mxu0  ;;  %v7944_v23 = vand.u32 4294901760, %v3736_v10  ;;  %v7951_v43 = vsub.f32 %v3654_v17, %v7915_v19 }
 0x309   : > { %v3477_v12 = vadd.f32 %v3476_v4, %v3438_v13  ;;  %v9249_v14 = vand.u32 4294901760, %v7933_v59  ;;  %v9248_v17 = vand.u32 4294901760, %v7937_v51  ;;  %v3638_v13 = vadd.f32 %v3630_v11, %v7749_v25 }
 0x30a   : > { %3764 = vmatpush.msrb.mxu0 %v7889_v36  ;;  %4047 = vmatpush.msrb.mxu3 %v7889_v36  ;;  %v7912_v46 = vsub.f32 %v3676_v26, %v7889_v36  ;;  %v7923_v5 = vsub.f32 %v3660_v16, %v7891_v42  ;;  %v7958_v26 = vand.u32 4294901760, %v3644_v50  ;;  %v3403_v27 = vadd.f32 %v7824_v60, %v9412_v61 }
 0x30b   : > { %v3557_v47 = vadd.f32 %v7878_v2, %v3512_v41  ;;  %v3866_v4 = vand.u32 4294901760, %v3865_v57  ;;  %v7976_v63 = vsub.f32 %v3736_v10, %v7944_v23  ;;  %v7983_v25 = vsub.f32 %v3642_v18, %v7953_v49 }
 0x30c   : > { %3766 = vmatpush.msrb.mxu0 %v7839_v32  ;;  %3967 = vmatpush.msrb.mxu2 %v7912_v46  ;;  %v9257_v52 = vand.u32 4294901760, %v7912_v46  ;;  %v7927_v39 = vpop.f32.mrf.mxu3  ;;  %v9253_v16 = vand.u32 4294901760, %v7923_v5  ;;  %v9250_v61 = vand.u32 4294901760, %v7951_v43  ;;  %v3739_v60 = vsel %vm3734_vm8, %v3679_v56, 0 }
 0x30d   : > { %4049 = vmatpush.msrb.mxu3 %v7839_v32  ;;  %v3560_v58 = vpop.f32.mrf.mxu2  ;;  %9440 = vst [vmem:[#allocation46_spill] sm:$0xff] %v7976_v63  ;;  %v3872_v11 = vand.u32 4294901760, %v3871_v22  ;;  %v7992_v57 = vsub.f32 %v3644_v50, %v7958_v26  ;;  %v3878_v18 = vand.u32 4294901760, %v3877_v44  ;;  %v8005_v50 = vadd.f32 %v7867_v30, %v3557_v47 }
 0x30e   : > { %v3517_v33 = vpop.f32.mrf.mxu1  ;;  %3768 = vmatpush.msrb.mxu0 %v7858_v3  ;;  %3970 = vmatpush.msrb.mxu2 %v7870_v7  ;;  %v3859_v40 = vsub.f32 %v7912_v46, %v9257_v52  ;;  %v3883_v10 = vsub.f32 %v7923_v5, %v9253_v16  ;;  %v8013_v56 = vand.u32 4294901760, %v3739_v60  ;;  %v8016_v44 = vmul.f32 0.01, %v7861_v1 }
 0x30f   : > { %4051 = vmatpush.msrb.mxu3 %v7858_v3  ;;  %v3518_v31 = vadd.f32 %v3517_v33, %v3477_v12  ;;  %v7980_v12 = vand.u32 4294901760, %v3640_v54  ;;  %v3901_v30 = vsub.f32 %v7951_v43, %v9250_v61  ;;  %vm3607_vm10 = vcmp.ge.f32.partialorder %v8005_v50, 0.0 }
 0x310   : > { %3770 = vmatpush.msrb.mxu0 %v7872_v45  ;;  %3973 = vmatpush.msrb.mxu2 %v7884_v53  ;;  %v3860_v8 = vand.u32 4294901760, %v3859_v40  ;;  %v3481_v48 = vpop.f32.mrf.mxu0  ;;  %v3895_v40 = vsub.f32 %v7937_v51, %v9248_v17  ;;  %v9251_v17 = vand.u32 4294901760, %v7992_v57 }
 0x311   : > { %4053 = vmatpush.msrb.mxu3 %v7872_v45  ;;  %v3561_v2 = vadd.f32 %v3560_v58, %v3518_v31  ;;  %v3482_v41 = vadd.f32 %v3481_v48, %v7907_v55  ;;  %v3889_v58 = vsub.f32 %v7933_v59, %v9249_v14  ;;  %v8008_v31 = vand.u32 4294901760, %v3638_v13 }
 0x312   : > { %3772 = vmatpush.msrb.mxu0 %v7891_v42  ;;  %3861 = vmatpush.msrb.mxu1 %v3860_v8  ;;  %v8011_v8 = vand.u32 4294901760, %v7976_v63  ;;  %v8024_v47 = vsub.f32 %v3640_v54, %v7980_v12  ;;  %v3446_v14 = vadd.f32 %v7817_v62, %v3403_v27  ;;  %v3896_v54 = vand.u32 4294901760, %v3895_v40 }
 0x313   : > { %3976 = vmatpush.msrb.mxu2 %v7897_v6  ;;  %4055 = vmatpush.msrb.mxu3 %v7891_v42  ;;  %v8044_v62 = vsub.f32 %v3739_v60, %v8013_v56  ;;  %v3615_v27 = vmul.f32 0.01, %v8005_v50 }
 0x314   : > { %3774 = vmatpush.msrb.mxu0 %v7899_v37  ;;  %3867 = vmatpush.msrb.mxu1 %v3866_v4  ;;  %v3599_v33 = vpop.f32.mrf.mxu3  ;;  %9441 = vst [vmem:[#allocation48_spill] sm:$0xff] %v8011_v8  ;;  %v3596_v4 = vadd.f32 %v7927_v39, %v3561_v2  ;;  %v3890_v39 = vand.u32 4294901760, %v3889_v58  ;;  %v3902_v58 = vand.u32 4294901760, %v3901_v30 }
 0x315   : > { %3979 = vmatpush.msrb.mxu2 %v7923_v5  ;;  %4057 = vmatpush.msrb.mxu3 %v7899_v37  ;;  %v3564_v22 = vpop.f32.mrf.mxu2 }
 0x316   : > { %v3523_v55 = vpop.f32.mrf.mxu1  ;;  %3776 = vmatpush.msrb.mxu0 %v7902_v34  ;;  %3873 = vmatpush.msrb.mxu1 %v3872_v11  ;;  %v3884_v11 = vand.u32 4294901760, %v3883_v10  ;;  %v3790_v10 = vsub.f32 %v7976_v63, %v8011_v8  ;;  %vm3609_vm11 = vcmp.ge.f32.partialorder %v3596_v4, 0.0 }
 0x317   : > { %v3524_v48 = vadd.f32 %v3523_v55, %v3482_v41  ;;  %3982 = vmatpush.msrb.mxu2 %v7933_v59  ;;  %4059 = vmatpush.msrb.mxu3 %v7902_v34  ;;  %v9252_v41 = vand.u32 4294901760, %v7983_v25  ;;  %v3680_v55 = vld [vmem:[%s9148_s5 + $0x10] sm:$0xff] }
 0x318   : > { %3778 = vmatpush.msrb.mxu0 %v7915_v19  ;;  %3879 = vmatpush.msrb.mxu1 %v3878_v18  ;;  %v3486_v2 = vpop.f32.mrf.mxu0  ;;  %v8041_v18 = vsub.f32 %v3638_v13, %v8008_v31  ;;  %v3742_v40 = vsel %vm3734_vm8, %v3680_v55, 0  ;;  %v3907_v13 = vsub.f32 %v7992_v57, %v9251_v17 }
 0x319   : > { %v3565_v61 = vadd.f32 %v3564_v22, %v3524_v48  ;;  %3985 = vmatpush.msrb.mxu2 %v7937_v51  ;;  %4061 = vmatpush.msrb.mxu3 %v7915_v19  ;;  %v3617_v48 = vmul.f32 0.01, %v3596_v4  ;;  %v3913_v60 = vsub.f32 %v7983_v25, %v9252_v41  ;;  %v8065_v41 = vand.u32 4294901760, %v8044_v62 }
 0x31a   : > { %3780 = vmatpush.msrb.mxu0 %v7958_v26  ;;  %3885 = vmatpush.msrb.mxu1 %v3884_v11  ;;  %v8067_v16 = vand.u32 4294901760, %v3742_v40  ;;  %v3908_v17 = vand.u32 4294901760, %v3907_v13 }
 0x31b   : > { %v3600_v22 = vadd.f32 %v3599_v33, %v3565_v61  ;;  %3988 = vmatpush.msrb.mxu2 %v7951_v43  ;;  %4063 = vmatpush.msrb.mxu3 %v7958_v26  ;;  %v9258_v61 = vand.u32 4294901760, %v8024_v47  ;;  %v3487_v33 = vadd.f32 %v3486_v2, %v3446_v14  ;;  %v9442_v14 = vld [vmem:[#allocation29_spill] sm:$0xff]  ;;  %v3914_v13 = vand.u32 4294901760, %v3913_v60 }
 0x31c   : > { %3782 = vmatpush.msrb.mxu0 %v7953_v49  ;;  %3891 = vmatpush.msrb.mxu1 %v3890_v39  ;;  %v8061_v39 = vand.u32 4294901760, %v3790_v10  ;;  %v3057_v2 = vadd.f32 %v7854_v9, %v9442_v14  ;;  %v9443_v10 = vld [vmem:[#allocation11_spill] sm:$0xff]  ;;  %v3603_v52 = vpop.f32.mrf.mxu3 }
 0x31d   : > { %vm3611_vm12 = vcmp.ge.f32.partialorder %v3600_v22, 0.0  ;;  %v3619_v30 = vmul.f32 0.01, %v3600_v22  ;;  %3991 = vmatpush.msrb.mxu2 %v7992_v57  ;;  %4065 = vmatpush.msrb.mxu3 %v7953_v49  ;;  %v3568_v55 = vpop.f32.mrf.mxu2  ;;  %v3919_v9 = vsub.f32 %v8024_v47, %v9258_v61  ;;  %v9451_v61 = vld [vmem:[#allocation33_spill] sm:$0xff] }
 0x31e   : > { %v3529_v11 = vpop.f32.mrf.mxu1  ;;  %3784 = vmatpush.msrb.mxu0 %v7980_v12  ;;  %3897 = vmatpush.msrb.mxu1 %v3896_v54  ;;  %v8076_v54 = vsel %vm3609_vm11, %v3596_v4, %v3617_v48  ;;  %v8093_v4 = vsel %vm3607_vm10, %v8005_v50, %v3615_v27  ;;  %v3798_v50 = vsub.f32 %v8044_v62, %v8065_v41  ;;  %v9445_v27 = vld [vmem:[#allocation52_spill] sm:$0xff] }
 0x31f   : > { %v8071_v21 = vsel %vm3611_vm12, %v3600_v22, %v3619_v30  ;;  %v3530_v35 = vadd.f32 %v3529_v11, %v3487_v33  ;;  %3994 = vmatpush.msrb.mxu2 %v7983_v25  ;;  %4067 = vmatpush.msrb.mxu3 %v7980_v12  ;;  %v8088_v22 = vsel %vm2995_vm9, %v7861_v1, %v8016_v44  ;;  %v9444_v1 = vand.u32 4294901760, %v8041_v18 }
 0x320   : > { %v3667_v15 = vmul.f32 %v8071_v21, %v9443_v10  ;;  %3786 = vmatpush.msrb.mxu0 %v8008_v31  ;;  %3903 = vmatpush.msrb.mxu1 %v3902_v58  ;;  %v3681_v58 = vld [vmem:[%s9148_s5 + $0x18] sm:$0xff]  ;;  %v3055_v33 = vadd.f32 %v7848_v28, %v9445_v27  ;;  %v3665_v30 = vmul.f32 %v8076_v54, %v9443_v10  ;;  %v9446_v11 = vand.u32 4294901760, %v7912_v46  ;;  %v9447_v28 = vld [vmem:[#allocation21_spill] sm:$0xff] }
 0x321   : > { %v3569_v48 = vadd.f32 %v3568_v55, %v3530_v35  ;;  %3997 = vmatpush.msrb.mxu2 %v8024_v47  ;;  %4069 = vmatpush.msrb.mxu3 %v8008_v31  ;;  %v3925_v44 = vsub.f32 %v8041_v18, %v9444_v1  ;;  %v8107_v35 = vsub.f32 %v3742_v40, %v8067_v16  ;;  %v3920_v40 = vand.u32 4294901760, %v3919_v9 }
 0x322   : > { %3792 = vmatmul.f32.vlgmr.msrb.gmra.mxu0 %v8061_v39  ;;  %3909 = vmatpush.msrb.mxu1 %v3908_v17  ;;  %v3051_v60 = vmul.f32 %v8088_v22, %v9437_v0  ;;  %v3675_v55 = vadd.f32 %v3667_v15, %v3057_v2  ;;  %v3745_v14 = vsel %vm3734_vm8, %v3681_v58, 0  ;;  %v3035_v1 = vmul.f32 %v8088_v22, %v9447_v28  ;;  %v9449_v0 = vld [vmem:[#allocation40_spill] sm:$0xff] }
 0x323   : > { %4126 = vmatpush.msra.mxu0 %v9446_v11  ;;  %v3604_v17 = vadd.f32 %v3603_v52, %v3569_v48  ;;  %4000 = vmatpush.msrb.mxu2 %v8041_v18  ;;  %v3663_v46 = vmul.f32 %v8093_v4, %v9443_v10  ;;  %v9448_v48 = vand.u32 4294901760, %v7870_v7  ;;  %v3926_v15 = vand.u32 4294901760, %v3925_v44 }
 0x324   : > { %4003 = vmatmul.f32.vlgmr.msrb.gmra.mxu2 %v7976_v63  ;;  %3915 = vmatpush.msrb.mxu1 %v3914_v13  ;;  %v3053_v13 = vadd.f32 %v7844_v29, %v9449_v0  ;;  %v8129_v2 = vand.u32 4294901760, %v3798_v50  ;;  %v8132_v9 = vand.u32 4294901760, %v8107_v35  ;;  %v3033_v58 = vmul.f32 %v7832_v20, %v9447_v28  ;;  %v9452_v29 = vld [vmem:[#allocation23_spill] sm:$0xff]  ;;  %v9453_v63 = vld [vmem:[#allocation26_spill] sm:$0xff] }
 0x325   : > { %vm3613_vm13 = vcmp.ge.f32.partialorder %v3604_v17, 0.0  ;;  %v3621_v52 = vmul.f32 0.01, %v3604_v17  ;;  %4130 = vmatpush.msra.mxu0 %v9448_v48  ;;  %4073 = vmatmul.f32.vlgmr.msrb.gmra.mxu3 %v8011_v8  ;;  %v9450_v11 = vand.u32 4294901760, %v7884_v53  ;;  %v3673_v7 = vadd.f32 %v3665_v30, %v3055_v33 }
 0x326   : > { %3921 = vmatpush.msrb.mxu1 %v3920_v40  ;;  %v8138_v48 = vand.u32 4294901760, %v3745_v14  ;;  %v3059_v8 = vadd.f32 %v3051_v60, %v9451_v61  ;;  %v8143_v50 = vand.u32 4294901760, %v3675_v55  ;;  %v3031_v0 = vmul.f32 %v7830_v24, %v9447_v28 }
 0x327   : > { %v3629_v27 = vsel %vm3613_vm13, %v3604_v17, %v3621_v52  ;;  %4134 = vmatpush.msra.mxu0 %v9450_v11  ;;  %v3043_v17 = vadd.f32 %v3035_v1, %v9453_v63  ;;  %v9454_v53 = vand.u32 4294901760, %v7897_v6  ;;  %v3671_v33 = vadd.f32 %v3663_v46, %v3053_v13  ;;  %v3682_v46 = vld [vmem:[%s9148_s5 + $0x20] sm:$0xff]  ;;  %v9457_v13 = vld [vmem:[#allocation15_spill] sm:$0xff] }
 0x328   : > { %v3653_v40 = vmul.f32 %v3629_v27, %v9452_v29  ;;  %v3669_v44 = vmul.f32 %v3629_v27, %v9443_v10  ;;  %3927 = vmatpush.msrb.mxu1 %v3926_v15  ;;  %v3651_v61 = vmul.f32 %v8071_v21, %v9452_v29  ;;  %v3806_v30 = vsub.f32 %v8107_v35, %v8132_v9  ;;  %v9458_v15 = vld [vmem:[#allocation44_spill] sm:$0xff] }
 0x329   : > { %4138 = vmatpush.msra.mxu0 %v9454_v53  ;;  %3929 = vmatmul.f32.vlgmr.msrb.gmra.mxu1 %v7944_v23  ;;  %v3029_v63 = vmul.f32 %v7827_v38, %v9447_v28  ;;  %v9455_v6 = vand.u32 4294901760, %v7923_v5  ;;  %v8161_v60 = vand.u32 4294901760, %v3673_v7  ;;  %v8164_v1 = vsub.f32 %v3745_v14, %v8138_v48 }
 0x32a   : > { %3800 = vmatmul.f32.gmra.mxu0 %v8129_v2  ;;  %4209 = vmatpush.msra.mxu1 %v7889_v36  ;;  %v3677_v10 = vadd.f32 %v3669_v44, %v3059_v8  ;;  %v9456_v36 = vld [vmem:[#allocation32_spill] sm:$0xff]  ;;  %v3661_v28 = vadd.f32 %v3653_v40, %v3043_v17  ;;  %v8175_v5 = vsub.f32 %v3675_v55, %v8143_v50  ;;  %v9460_v53 = vand.u32 4294901760, %v7937_v51 }
 0x32b   : > { %4142 = vmatpush.msra.mxu0 %v9455_v6  ;;  %v3041_v8 = vadd.f32 %v3033_v58, %v9456_v36  ;;  %v8179_v14 = vmul.f32 %v7827_v38, %v9457_v13  ;;  %v3039_v11 = vadd.f32 %v3031_v0, %v9458_v15  ;;  %v3649_v44 = vmul.f32 %v8076_v54, %v9452_v29 }
 0x32c   : > { %4008 = vmatmul.f32.gmra.mxu2 %v8044_v62  ;;  %4211 = vmatpush.msra.mxu1 %v7839_v32  ;;  %v8172_v52 = vand.u32 4294901760, %v3677_v10  ;;  %v9459_v58 = vand.u32 4294901760, %v7933_v59  ;;  %v8187_v32 = vand.u32 4294901760, %v3671_v33  ;;  %v8194_v38 = vand.u32 4294901760, %v3806_v30  ;;  %v9461_v30 = vld [vmem:[#allocation35_spill] sm:$0xff] }
 0x32d   : > { %4079 = vmatmul.f32.gmra.mxu3 %v8065_v41  ;;  %v3659_v40 = vadd.f32 %v3651_v61, %v3041_v8  ;;  %v3748_v0 = vsel %vm3734_vm8, %v3682_v46, 0  ;;  %v3019_v59 = vmul.f32 %v8088_v22, %v9457_v13  ;;  %v3647_v17 = vmul.f32 %v8093_v4, %v9452_v29  ;;  %v9463_v8 = vld [vmem:[#allocation17_spill] sm:$0xff] }
 0x32e   : > { %4146 = vmatpush.msra.mxu0 %v9459_v58  ;;  %4213 = vmatpush.msra.mxu1 %v7858_v3  ;;  %v8192_v55 = vsub.f32 %v3677_v10, %v8172_v52  ;;  %v8204_v3 = vand.u32 4294901760, %v8164_v1  ;;  %v8207_v10 = vsub.f32 %v3673_v7, %v8161_v60  ;;  %v3037_v6 = vadd.f32 %v3029_v63, %v9461_v30 }
 0x32f   : > { %4270 = vmatpush.msra.mxu2 %v8172_v52  ;;  %v8212_v61 = vand.u32 4294901760, %v3661_v28  ;;  %v4370_v29 = vand.u32 4294901760, %v8175_v5  ;;  %v3015_v51 = vmul.f32 %v7830_v24, %v9457_v13  ;;  %v9462_v46 = vand.u32 4294901760, %v7951_v43 }
 0x330   : > { %4150 = vmatpush.msra.mxu0 %v9460_v53  ;;  %4215 = vmatpush.msra.mxu1 %v7872_v45  ;;  %v4364_v22 = vand.u32 4294901760, %v8192_v55  ;;  %v3657_v7 = vadd.f32 %v3649_v44, %v3039_v11  ;;  %v8222_v63 = vsub.f32 %v3671_v33, %v8187_v32  ;;  %v8224_v45 = vand.u32 4294901760, %v3748_v0  ;;  %v9464_v11 = vld [vmem:[#allocation24_spill] sm:$0xff]  ;;  %v9466_v53 = vld [vmem:[#allocation39_spill] sm:$0xff] }
 0x331   : > { %4272 = vmatpush.msra.mxu2 %v8143_v50  ;;  %3933 = vmatmul.f32.gmra.mxu1 %v8013_v56  ;;  %v3017_v36 = vmul.f32 %v7832_v20, %v9457_v13  ;;  %v3637_v15 = vmul.f32 %v3629_v27, %v9463_v8  ;;  %v8234_v43 = vand.u32 4294901760, %v3659_v40  ;;  %v3027_v33 = vadd.f32 %v3019_v59, %v9464_v11 }
 0x332   : > { %4154 = vmatpush.msra.mxu0 %v9462_v46  ;;  %4217 = vmatpush.msra.mxu1 %v7891_v42  ;;  %v4365_v24 = vsub.f32 %v8192_v55, %v4364_v22  ;;  %v9465_v44 = vand.u32 4294901760, %v7992_v57  ;;  %v3814_v20 = vsub.f32 %v8164_v1, %v8204_v3  ;;  %v4376_v27 = vand.u32 4294901760, %v8207_v10 }
 0x333   : > { %3808 = vmatmul.f32.gmra.mxu0 %v8194_v38  ;;  %4274 = vmatpush.msra.mxu2 %v8161_v60  ;;  %v3655_v13 = vadd.f32 %v3647_v17, %v3037_v6  ;;  %v3635_v42 = vmul.f32 %v8071_v21, %v9463_v8  ;;  %v4371_v57 = vsub.f32 %v8175_v5, %v4370_v29  ;;  %v9467_v46 = vand.u32 4294901760, %v7983_v25  ;;  %v3683_v6 = vld [vmem:[%s9148_s5 + $0x28] sm:$0xff] }
 0x334   : > { %4158 = vmatpush.msra.mxu0 %v9465_v44  ;;  %4013 = vmatmul.f32.gmra.mxu2 %v8107_v35  ;;  %v4366_v58 = vand.u32 4294901760, %v4365_v24  ;;  %v8251_v59 = vsub.f32 %v3661_v28, %v8212_v61  ;;  %v3023_v30 = vadd.f32 %v3015_v51, %v9466_v53  ;;  %v8257_v21 = vand.u32 4294901760, %v3657_v7  ;;  %v9468_v28 = vld [vmem:[#allocation36_spill] sm:$0xff] }
 0x335   : > { %4219 = vmatpush.msra.mxu1 %v7899_v37  ;;  %4276 = vmatpush.msra.mxu2 %v8187_v32  ;;  %v4382_v17 = vand.u32 4294901760, %v8222_v63  ;;  %v8261_v37 = vsub.f32 %v3748_v0, %v8224_v45  ;;  %v3025_v24 = vadd.f32 %v3017_v36, %v9468_v28  ;;  %v3645_v25 = vadd.f32 %v3637_v15, %v3027_v33 }
 0x336   : > { %4162 = vmatpush.msra.mxu0 %v9467_v46  ;;  %4085 = vmatmul.f32.gmra.mxu3 %v8132_v9  ;;  %v8270_v51 = vsub.f32 %v3659_v40, %v8234_v43  ;;  %v3633_v11 = vmul.f32 %v8076_v54, %v9463_v8  ;;  %v9469_v0 = vand.u32 4294901760, %v8024_v47  ;;  %v8277_v44 = vand.u32 4294901760, %v3814_v20 }
 0x337   : > { %4221 = vmatpush.msra.mxu1 %v7902_v34  ;;  %4278 = vmatpush.msra.mxu2 %v8212_v61  ;;  %v4377_v36 = vsub.f32 %v8207_v10, %v4376_v27  ;;  %v8282_v53 = vand.u32 4294901760, %v3655_v13  ;;  %v4372_v34 = vand.u32 4294901760, %v4371_v57  ;;  %v4388_v40 = vand.u32 4294901760, %v8251_v59 }
 0x338   : > { %4166 = vmatpush.msra.mxu0 %v9469_v0  ;;  %4367 = vmatpush.msra.mxu3 %v4366_v58  ;;  %v3643_v54 = vadd.f32 %v3635_v42, %v3025_v24  ;;  %v3751_v47 = vsel %vm3734_vm8, %v3683_v6, 0  ;;  %v3631_v15 = vmul.f32 %v8093_v4, %v9463_v8  ;;  %v9470_v33 = vand.u32 4294901760, %v8041_v18  ;;  %v9471_v42 = vld [vmem:[#allocation51_spill] sm:$0xff] }
 0x339   : > { %4223 = vmatpush.msra.mxu1 %v7915_v19  ;;  %4280 = vmatpush.msra.mxu2 %v8234_v43  ;;  %v4383_v20 = vsub.f32 %v8222_v63, %v4382_v17  ;;  %v8296_v19 = vand.u32 4294901760, %v8261_v37  ;;  %v8299_v58 = vsub.f32 %v3657_v7, %v8257_v21  ;;  %v3021_v57 = vadd.f32 %v8179_v14, %v9471_v42 }
 0x33a   : > { %4170 = vmatpush.msra.mxu0 %v9470_v33  ;;  %4373 = vmatpush.msra.mxu3 %v4372_v34  ;;  %v8304_v18 = vand.u32 4294901760, %v3645_v25  ;;  %v9265_v4 = vand.u32 4294901760, %v8270_v51  ;;  %v4378_v8 = vand.u32 4294901760, %v4377_v36  ;;  %v3641_v46 = vadd.f32 %v3633_v11, %v3023_v30  ;;  %v3684_v36 = vld [vmem:[%s9148_s5 + $0x30] sm:$0xff] }
 0x33b   : > { %3816 = vmatmul.f32.gmra.mxu0 %v8277_v44  ;;  %3937 = vmatmul.f32.gmra.mxu1 %v8067_v16  ;;  %v8310_v6 = vsub.f32 %v3655_v13, %v8282_v53  ;;  %v8312_v7 = vand.u32 4294901760, %v3751_v47  ;;  %v4389_v14 = vsub.f32 %v8251_v59, %v4388_v40  ;;  %v8319_v28 = vand.u32 4294901760, %v3643_v54 }
 0x33c   : > { %4473 = vmatpush.msrb.mxu0 %v8192_v55  ;;  %4225 = vmatpush.msra.mxu1 %v7958_v26  ;;  %v4384_v24 = vand.u32 4294901760, %v4383_v20  ;;  %v3822_v13 = vsub.f32 %v8261_v37, %v8296_v19  ;;  %v9263_v30 = vand.u32 4294901760, %v8299_v58  ;;  %v3639_v11 = vadd.f32 %v3631_v15, %v3021_v57 }
 0x33d   : > { %4282 = vmatpush.msra.mxu2 %v8257_v21  ;;  %4379 = vmatpush.msra.mxu3 %v4378_v8  ;;  %v4395_v26 = vsub.f32 %v8270_v51, %v9265_v4  ;;  %v8331_v0 = vsub.f32 %v3645_v25, %v8304_v18  ;;  %v8337_v34 = vand.u32 4294901760, %v3641_v46  ;;  %v9262_v15 = vand.u32 4294901760, %v8310_v6 }
 0x33e   : > { %4476 = vmatpush.msrb.mxu0 %v8175_v5  ;;  %4018 = vmatmul.f32.gmra.mxu2 %v8164_v1  ;;  %v4390_v25 = vand.u32 4294901760, %v4389_v14  ;;  %v8346_v33 = vsub.f32 %v3643_v54, %v8319_v28  ;;  %v8350_v20 = vand.u32 4294901760, %v3822_v13  ;;  %v4401_v42 = vsub.f32 %v8299_v58, %v9263_v30 }
 0x33f   : > { %4227 = vmatpush.msra.mxu1 %v7953_v49  ;;  %4284 = vmatpush.msra.mxu2 %v8282_v53  ;;  %v8341_v49 = vsub.f32 %v3751_v47, %v8312_v7  ;;  %v8355_v47 = vand.u32 4294901760, %v3639_v11  ;;  %v3754_v57 = vsel %vm3734_vm8, %v3684_v36, 0  ;;  %v4396_v8 = vand.u32 4294901760, %v4395_v26 }
 0x340   : > { %4385 = vmatpush.msra.mxu3 %v4384_v24  ;;  %4479 = vmatpush.msrb.mxu0 %v8207_v10  ;;  %v9261_v54 = vand.u32 4294901760, %v8331_v0  ;;  %v8369_v24 = vsub.f32 %v3641_v46, %v8337_v34  ;;  %v9264_v13 = vand.u32 4294901760, %v8346_v33  ;;  %v8373_v26 = vand.u32 4294901760, %v3754_v57 }
 0x341   : > { %4091 = vmatmul.f32.gmra.mxu3 %v8204_v3  ;;  %4229 = vmatpush.msra.mxu1 %v7980_v12  ;;  %v4407_v12 = vsub.f32 %v8310_v6, %v9262_v15  ;;  %v8366_v14 = vand.u32 4294901760, %v8341_v49  ;;  %v8378_v36 = vsub.f32 %v3639_v11, %v8355_v47  ;;  %v3685_v11 = vld [vmem:[%s9148_s5 + $0x38] sm:$0xff] }
 0x342   : > { %4286 = vmatpush.msra.mxu2 %v8304_v18  ;;  %4391 = vmatpush.msra.mxu3 %v4390_v25  ;;  %v4413_v46 = vsub.f32 %v8331_v0, %v9261_v54  ;;  %v8398_v54 = vsub.f32 %v3754_v57, %v8373_v26  ;;  %v3757_v30 = vsel %vm3734_vm8, %v3685_v11, 0 }
 0x343   : > { %4482 = vmatpush.msrb.mxu0 %v8222_v63  ;;  %4231 = vmatpush.msra.mxu1 %v8008_v31  ;;  %v4402_v31 = vand.u32 4294901760, %v4401_v42  ;;  %v4408_v25 = vand.u32 4294901760, %v4407_v12  ;;  %v4424_v42 = vand.u32 4294901760, %v8369_v24  ;;  %v4430_v12 = vand.u32 4294901760, %v8378_v36 }
 0x344   : > { %4288 = vmatpush.msra.mxu2 %v8319_v28  ;;  %4397 = vmatpush.msra.mxu3 %v4396_v8  ;;  %v3830_v8 = vsub.f32 %v8341_v49, %v8366_v14  ;;  %v4414_v15 = vand.u32 4294901760, %v4413_v46  ;;  %v8415_v4 = vand.u32 4294901760, %v8398_v54  ;;  %v9472_v63 = vand.u32 4294901760, %v8270_v51 }
 0x345   : > { %4485 = vmatpush.msrb.mxu0 %v8251_v59  ;;  %4553 = vmatpush.msrb.mxu1 %v8172_v52  ;;  %v4425_v57 = vsub.f32 %v8369_v24, %v4424_v42  ;;  %v4431_v55 = vsub.f32 %v8378_v36, %v4430_v12  ;;  %v9473_v59 = vand.u32 4294901760, %v8299_v58 }
 0x346   : > { %3824 = vmatmul.f32.gmra.mxu0 %v8350_v20  ;;  %3941 = vmatmul.f32.gmra.mxu1 %v8138_v48  ;;  %v3838_v5 = vsub.f32 %v8398_v54, %v8415_v4 }
 0x347   : > { %4290 = vmatpush.msra.mxu2 %v8337_v34  ;;  %4403 = vmatpush.msra.mxu3 %v4402_v31  ;;  %v4419_v31 = vsub.f32 %v8346_v33, %v9264_v13  ;;  %v8408_v13 = vand.u32 4294901760, %v3830_v8 }
 0x348   : > { %4488 = vmatpush.msrb.mxu0 %v8270_v51  ;;  %4555 = vmatpush.msrb.mxu1 %v8143_v50  ;;  %v8443_v10 = vand.u32 4294901760, %v3838_v5  ;;  %v9475_v51 = vand.u32 4294901760, %v8331_v0 }
 0x349   : > { %4023 = vmatmul.f32.gmra.mxu2 %v8261_v37  ;;  %4409 = vmatpush.msra.mxu3 %v4408_v25  ;;  %v4420_v25 = vand.u32 4294901760, %v4419_v31 }
 0x34a   : > { %4292 = vmatpush.msra.mxu2 %v8355_v47  ;;  %4491 = vmatpush.msrb.mxu0 %v8299_v58  ;;  %v9478_v58 = vld [vmem:[#allocation48_spill] sm:$0xff] }
 0x34b   : > { %4557 = vmatpush.msrb.mxu1 %v8161_v60  ;;  %4097 = vmatmul.f32.gmra.mxu3 %v8296_v19 }
 0x34c   : > { %4632 = vmatpush.msrb.mxu2 %v4364_v22  ;;  %4415 = vmatpush.msra.mxu3 %v4414_v15  ;;  %v8423_v22 = vand.u32 4294901760, %v3757_v30  ;;  %v4426_v15 = vand.u32 4294901760, %v4425_v57  ;;  %v8628_v57 = vpop.permute.xlu1 %3731 }
 0x34d   : > { %4494 = vmatpush.msrb.mxu0 %v8310_v6  ;;  %4559 = vmatpush.msrb.mxu1 %v8187_v32 }
 0x34e   : > { %4636 = vmatpush.msrb.mxu2 %v4370_v29  ;;  %4421 = vmatpush.msra.mxu3 %v4420_v25  ;;  %v4432_v29 = vand.u32 4294901760, %v4431_v55  ;;  %v8435_v46 = vsub.f32 %v3757_v30, %v8423_v22 }
 0x34f   : > { %4497 = vmatpush.msrb.mxu0 %v8331_v0  ;;  %4561 = vmatpush.msrb.mxu1 %v8212_v61 }
 0x350   : > { %3832 = vmatmul.f32.gmra.mxu0 %v8408_v13  ;;  %3945 = vmatmul.f32.gmra.mxu1 %v8224_v45 }
 0x351   : > { %4640 = vmatpush.msrb.mxu2 %v4376_v27  ;;  %4427 = vmatpush.msra.mxu3 %v4426_v15  ;;  %v8449_v27 = vand.u32 4294901760, %v8435_v46 }
 0x352   : > { %4500 = vmatpush.msrb.mxu0 %v8346_v33  ;;  %4563 = vmatpush.msrb.mxu1 %v8234_v43 }
 0x353   : > { %4028 = vmatmul.f32.gmra.mxu2 %v8341_v49  ;;  %4433 = vmatpush.msra.mxu3 %v4432_v29 }
 0x354   : > { %4644 = vmatpush.msrb.mxu2 %v4382_v17  ;;  %4503 = vmatpush.msrb.mxu0 %v8369_v24  ;;  %v3846_v17 = vsub.f32 %v8435_v46, %v8449_v27 }
 0x355   : > { %4565 = vmatpush.msrb.mxu1 %v8257_v21  ;;  %4103 = vmatmul.f32.gmra.mxu3 %v8366_v14 }
 0x356   : > { %4648 = vmatpush.msrb.mxu2 %v4388_v40  ;;  %4715 = vmatpush.msrb.mxu3 %v8172_v52  ;;  %v3847_v52 = vand.u32 4294901760, %v3846_v17 }
 0x357   : > { %4506 = vmatpush.msrb.mxu0 %v8378_v36  ;;  %4567 = vmatpush.msrb.mxu1 %v8282_v53 }
 0x358   : > { %4652 = vmatpush.msrb.mxu2 %v9472_v63  ;;  %4717 = vmatpush.msrb.mxu3 %v8143_v50  ;;  %v9474_v50 = vand.u32 4294901760, %v8310_v6 }
 0x359   : > { %3840 = vmatmul.f32.gmra.mxu0 %v8443_v10  ;;  %4569 = vmatpush.msrb.mxu1 %v8304_v18 }
 0x35a   : > { %4656 = vmatpush.msrb.mxu2 %v9473_v59  ;;  %3949 = vmatmul.f32.gmra.mxu1 %v8312_v7 }
 0x35b   : > { %4719 = vmatpush.msrb.mxu3 %v8161_v60  ;;  %4571 = vmatpush.msrb.mxu1 %v8319_v28  ;;  %v9476_v60 = vand.u32 4294901760, %v8346_v33 }
 0x35c   : > { %4033 = vmatmul.f32.gmra.mxu2 %v8398_v54 }
 0x35d   : > { %4660 = vmatpush.msrb.mxu2 %v9474_v50  ;;  %4721 = vmatpush.msrb.mxu3 %v8187_v32 }
 0x35e   : > { %4573 = vmatpush.msrb.mxu1 %v8337_v34  ;;  %4109 = vmatmul.f32.gmra.mxu3 %v8415_v4 }
 0x35f   : > { %4664 = vmatpush.msrb.mxu2 %v9475_v51  ;;  %4723 = vmatpush.msrb.mxu3 %v8212_v61 }
 0x360   : > { %4575 = vmatpush.msrb.mxu1 %v8355_v47 }
 0x361   : > { %4668 = vmatpush.msrb.mxu2 %v9476_v60  ;;  %4725 = vmatpush.msrb.mxu3 %v8234_v43  ;;  %v9477_v43 = vld [vmem:[#allocation46_spill] sm:$0xff] }
 0x362   : > { %3848 = vmatmul.f32.gmra.mxu0 %v3847_v52  ;;  %3953 = vmatmul.f32.gmra.mxu1 %v8373_v26 }
 0x363   : > { %4672 = vmatpush.msrb.mxu2 %v4424_v42  ;;  %4727 = vmatpush.msrb.mxu3 %v8257_v21 }
 0x364   : > { %4038 = vmatmul.f32.gmra.mxu2 %v8435_v46 }
 0x365   : > { %4676 = vmatpush.msrb.mxu2 %v4430_v12  ;;  %4729 = vmatpush.msrb.mxu3 %v8282_v53  ;;  %v8626_v12 = vpop.permute.xlu2 %3726 }
 0x366   : > { %4115 = vmatmul.f32.gmra.mxu3 %v8449_v27 }
 0x367   : > { %4731 = vmatpush.msrb.mxu3 %v8304_v18 }
 0x369   : > { %4733 = vmatpush.msrb.mxu3 %v8319_v28 }
 0x36a   : > { %4172 = vmatmul.f32.vlgmr.msra.gmra.mxu0 %v7944_v23  ;;  %3957 = vmatmul.f32.gmra.mxu1 %v8423_v22 }
 0x36b   : > { %4735 = vmatpush.msrb.mxu3 %v8337_v34 }
 0x36c   : > { %4298 = vmatmul.f32.vlgmr.msra.gmra.mxu2 %v8061_v39 }
 0x36d   : > { %4737 = vmatpush.msrb.mxu3 %v8355_v47  ;;  %v8636_v29 = vpop.permute.xlu2 %3711 }
 0x36e   : > { %4435 = vmatmul.f32.vlgmr.msra.gmra.mxu3 %v7944_v23 }
 0x372   : > { %4176 = vmatmul.f32.gmra.mxu0 %v8013_v56  ;;  %4233 = vmatmul.f32.vlgmr.msra.gmra.mxu1 %v7944_v23 }
 0x374   : > { %4306 = vmatmul.f32.gmra.mxu2 %v8129_v2 }
 0x376   : > { %4439 = vmatmul.f32.gmra.mxu3 %v8013_v56 }
 0x37a   : > { %4180 = vmatmul.f32.gmra.mxu0 %v8067_v16  ;;  %4237 = vmatmul.f32.gmra.mxu1 %v8013_v56 }
 0x37c   : > { %4314 = vmatmul.f32.gmra.mxu2 %v8194_v38 }
 0x37e   : > { %4443 = vmatmul.f32.gmra.mxu3 %v8067_v16 }
 0x382   : > { %4184 = vmatmul.f32.gmra.mxu0 %v8138_v48  ;;  %4241 = vmatmul.f32.gmra.mxu1 %v8067_v16 }
 0x384   : > { %4322 = vmatmul.f32.gmra.mxu2 %v8277_v44 }
 0x386   : > { %4447 = vmatmul.f32.gmra.mxu3 %v8138_v48 }
 0x38a   : > { %4188 = vmatmul.f32.gmra.mxu0 %v8224_v45  ;;  %4245 = vmatmul.f32.gmra.mxu1 %v8138_v48 }
 0x38c   : > { %4330 = vmatmul.f32.gmra.mxu2 %v8350_v20 }
 0x38e   : > { %4451 = vmatmul.f32.gmra.mxu3 %v8224_v45 }
 0x392   : > { %4192 = vmatmul.f32.gmra.mxu0 %v8312_v7  ;;  %4249 = vmatmul.f32.gmra.mxu1 %v8224_v45 }
 0x394   : > { %4338 = vmatmul.f32.gmra.mxu2 %v8408_v13 }
 0x396   : > { %4455 = vmatmul.f32.gmra.mxu3 %v8312_v7 }
 0x39a   : > { %4196 = vmatmul.f32.gmra.mxu0 %v8373_v26  ;;  %4253 = vmatmul.f32.gmra.mxu1 %v8312_v7 }
 0x39c   : > { %4346 = vmatmul.f32.gmra.mxu2 %v8443_v10  ;;  %v8640_v10 = vpop.permute.xlu1 %3716 }
 0x39e   : > { %4459 = vmatmul.f32.gmra.mxu3 %v8373_v26 }
 0x39f   : > { %v8520_v39 = vpop.f32.mrf.mxu0 }
 0x3a2   : > { %4200 = vmatmul.f32.gmra.mxu0 %v8423_v22  ;;  %4257 = vmatmul.f32.gmra.mxu1 %v8373_v26 }
 0x3a4   : > { %4354 = vmatmul.f32.gmra.mxu2 %v3847_v52 }
 0x3a6   : > { %4463 = vmatmul.f32.gmra.mxu3 %v8423_v22  ;;  %v8525_v2 = vpop.f32.mrf.mxu1 }
 0x3a7   : > { %v8527_v32 = vpop.f32.mrf.mxu0  ;;  %v8529_v38 = vpop.f32.mrf.mxu2 }
 0x3a8   : > { %v8531_v61 = vpop.f32.mrf.mxu3 }
 0x3aa   : > { %4509 = vmatmul.f32.vlgmr.msrb.gmra.mxu0 %v9477_v43  ;;  %4261 = vmatmul.f32.gmra.mxu1 %v8423_v22 }
 0x3ac   : > { %4678 = vmatmul.f32.vlgmr.msrb.gmra.mxu2 %v7944_v23 }
 0x3ae   : > { %4739 = vmatmul.f32.vlgmr.msrb.gmra.mxu3 %v7944_v23  ;;  %v8537_v21 = vpop.f32.mrf.mxu1 }
 0x3af   : > { %v8541_v53 = vpop.f32.mrf.mxu2 }
 0x3b0   : > { %v8539_v44 = vpop.f32.mrf.mxu0  ;;  %v8543_v40 = vpop.f32.mrf.mxu3 }
 0x3b2   : > { %4514 = vmatmul.f32.gmra.mxu0 %v8044_v62  ;;  %4579 = vmatmul.f32.vlgmr.msrb.gmra.mxu1 %v9478_v58  ;;  %v8650_v58 = vpop.permute.xlu2 %3696 }
 0x3b4   : > { %4682 = vmatmul.f32.gmra.mxu2 %v8013_v56 }
 0x3b6   : > { %4743 = vmatmul.f32.gmra.mxu3 %v8013_v56 }
 0x3b7   : > { %v8549_v18 = vpop.f32.mrf.mxu2 }
 0x3b8   : > { %v8551_v6 = vpop.f32.mrf.mxu0  ;;  %v8554_v23 = vpop.f32.mrf.mxu1 }
 0x3b9   : > { %v8557_v28 = vpop.f32.mrf.mxu3 }
 0x3ba   : > { %4519 = vmatmul.f32.gmra.mxu0 %v8107_v35  ;;  %4585 = vmatmul.f32.gmra.mxu1 %v8065_v41 }
 0x3bc   : > { %4686 = vmatmul.f32.gmra.mxu2 %v8067_v16 }
 0x3be   : > { %4747 = vmatmul.f32.gmra.mxu3 %v8067_v16 }
 0x3c1   : > { %v8562_v62 = vpop.f32.mrf.mxu2 }
 0x3c2   : > { %4524 = vmatmul.f32.gmra.mxu0 %v8164_v1  ;;  %4591 = vmatmul.f32.gmra.mxu1 %v8132_v9 }
 0x3c3   : > { %v8565_v56 = vpop.f32.mrf.mxu0  ;;  %v8568_v35 = vpop.f32.mrf.mxu1 }
 0x3c4   : > { %4690 = vmatmul.f32.gmra.mxu2 %v8138_v48  ;;  %v8570_v30 = vpop.f32.mrf.mxu3  ;;  %v3826_v50 = vadd.f32 %v8565_v56, %v8640_v10 }
 0x3c6   : > { %4751 = vmatmul.f32.gmra.mxu3 %v8138_v48 }
 0x3ca   : > { %4529 = vmatmul.f32.gmra.mxu0 %v8261_v37  ;;  %4597 = vmatmul.f32.gmra.mxu1 %v8204_v3 }
 0x3cc   : > { %4694 = vmatmul.f32.gmra.mxu2 %v8224_v45  ;;  %v8576_v16 = vpop.f32.mrf.mxu2 }
 0x3cd   : > { %v3833_v41 = vpop.f32.mrf.mxu0  ;;  %v3946_v9 = vpop.f32.mrf.mxu1 }
 0x3ce   : > { %4755 = vmatmul.f32.gmra.mxu3 %v8224_v45  ;;  %v8579_v1 = vpop.f32.mrf.mxu3  ;;  %v3947_v43 = vadd.f32 %v3946_v9, %v3826_v50 }
 0x3d2   : > { %4534 = vmatmul.f32.gmra.mxu0 %v8341_v49  ;;  %4603 = vmatmul.f32.gmra.mxu1 %v8296_v19 }
 0x3d4   : > { %4698 = vmatmul.f32.gmra.mxu2 %v8312_v7 }
 0x3d6   : > { %v3841_v48 = vpop.f32.mrf.mxu0  ;;  %v4029_v37 = vpop.f32.mrf.mxu2  ;;  %4759 = vmatmul.f32.gmra.mxu3 %v8312_v7 }
 0x3d7   : > { %v3950_v3 = vpop.f32.mrf.mxu1  ;;  %v3842_v51 = vadd.f32 %v3841_v48, %v8626_v12 }
 0x3d8   : > { %v8585_v0 = vpop.f32.mrf.mxu3 }
 0x3da   : > { %4539 = vmatmul.f32.gmra.mxu0 %v8398_v54  ;;  %4609 = vmatmul.f32.gmra.mxu1 %v8366_v14 }
 0x3dc   : > { %4702 = vmatmul.f32.gmra.mxu2 %v8373_v26 }
 0x3de   : > { %4763 = vmatmul.f32.gmra.mxu3 %v8373_v26 }
 0x3df   : > { %v8590_v45 = vpop.f32.mrf.mxu0  ;;  %v4034_v34 = vpop.f32.mrf.mxu2 }
 0x3e0   : > { %v3954_v19 = vpop.f32.mrf.mxu1 }
 0x3e1   : > { %v8593_v49 = vpop.f32.mrf.mxu3 }
 0x3e2   : > { %4544 = vmatmul.f32.gmra.mxu0 %v8435_v46  ;;  %4615 = vmatmul.f32.gmra.mxu1 %v8415_v4  ;;  %v8638_v46 = vpop.permute.xlu0 %3721 }
 0x3e3   : > { %v3834_v17 = vadd.f32 %v3833_v41, %v8638_v46  ;;  %v3794_v41 = vadd.f32 %v8520_v39, %v8650_v58 }
 0x3e4   : > { %4706 = vmatmul.f32.gmra.mxu2 %v8423_v22 }
 0x3e5   : > { %v3951_v60 = vadd.f32 %v3950_v3, %v3834_v17 }
 0x3e6   : > { %4767 = vmatmul.f32.gmra.mxu3 %v8423_v22 }
 0x3e7   : > { %v8598_v7 = vpop.f32.mrf.mxu2  ;;  %v8600_v33 = vpop.f32.mrf.mxu0  ;;  %v4030_v3 = vadd.f32 %v4029_v37, %v3951_v60 }
 0x3e8   : > { %v3958_v20 = vpop.f32.mrf.mxu1 }
 0x3e9   : > { %v8603_v47 = vpop.f32.mrf.mxu3  ;;  %v4105_v37 = vadd.f32 %v8585_v0, %v4030_v3 }
 0x3ea   : > { %4621 = vmatmul.f32.gmra.mxu1 %v8449_v27 }
 0x3ef   : > { %v8606_v54 = vpop.f32.mrf.mxu0  ;;  %v8608_v14 = vpop.f32.mrf.mxu2 }
 0x3f0   : > { %v8610_v24 = vpop.f32.mrf.mxu1 }
 0x3f1   : > { %v8612_v4 = vpop.f32.mrf.mxu3 }
 0x3f7   : > { %v8614_v13 = vpop.f32.mrf.mxu0  ;;  %v8616_v26 = vpop.f32.mrf.mxu2 }
 0x3f8   : > { %9479 = vst [vmem:[#allocation49_spill] sm:$0xff] %v8616_v26  ;;  %v8618_v36 = vpop.f32.mrf.mxu1  ;;  %v8656_v26 = vpop.permute.xlu1 %3701 }
 0x3f9   : > { %v8620_v8 = vpop.f32.mrf.mxu3  ;;  %v3802_v50 = vadd.f32 %v8527_v32, %v8656_v26 }
 0x3fa   : > { %9480 = vst [vmem:[#allocation14_spill] sm:$0xff] %v8620_v8  ;;  %v8652_v8 = vpop.permute.xlu0 %3706 }
 0x3fb   : > { %v3810_v56 = vadd.f32 %v8539_v44, %v8652_v8 }
 0x3ff   : > { %v4185_v42 = vpop.f32.mrf.mxu0  ;;  %v8622_v11 = vpop.f32.mrf.mxu2 }
 0x400   : > { %9481 = vst [vmem:[#allocation20_spill] sm:$0xff] %v8622_v11  ;;  %v8624_v31 = vpop.f32.mrf.mxu1  ;;  %v3935_v11 = vadd.f32 %v8537_v21, %v3802_v50 }
 0x401   : > { %v8630_v25 = vpop.f32.mrf.mxu3 }
 0x402   : > { %9482 = vst [vmem:[#allocation8_spill] sm:$0xff] %v8630_v25  ;;  %v3818_v25 = vadd.f32 %v8551_v6, %v8636_v29  ;;  %v3931_v6 = vadd.f32 %v8525_v2, %v3794_v41  ;;  %v4010_v21 = vadd.f32 %v8541_v53, %v3935_v11 }
 0x404   : > { %v3943_v48 = vadd.f32 %v8568_v35, %v3818_v25  ;;  %v3850_v25 = vadd.f32 %v8590_v45, %v8628_v57  ;;  %v4005_v32 = vadd.f32 %v8529_v38, %v3931_v6  ;;  %v4081_v53 = vadd.f32 %v8543_v40, %v4010_v21 }
 0x406   : > { %v4020_v35 = vadd.f32 %v8562_v62, %v3943_v48  ;;  %v4075_v38 = vadd.f32 %v8531_v61, %v4005_v32 }
 0x407   : > { %v4189_v55 = vpop.f32.mrf.mxu0  ;;  %v8632_v22 = vpop.f32.mrf.mxu2 }
 0x408   : > { %v4246_v15 = vpop.f32.mrf.mxu1  ;;  %v4093_v62 = vadd.f32 %v8570_v30, %v4020_v35  ;;  %v4174_v11 = vadd.f32 %v8600_v33, %v4075_v38 }
 0x409   : > { %v8634_v5 = vpop.f32.mrf.mxu3 }
 0x40a   : > { %9483 = vst [vmem:[#allocation18_spill] sm:$0xff] %v8634_v5  ;;  %v3955_v5 = vadd.f32 %v3954_v19, %v3842_v51  ;;  %v3939_v19 = vadd.f32 %v8554_v23, %v3810_v56  ;;  %v4025_v51 = vadd.f32 %v8576_v16, %v3947_v43  ;;  %v4235_v33 = vadd.f32 %v8610_v24, %v4174_v11 }
 0x40b   : > { %v4300_v24 = vadd.f32 %v8608_v14, %v8650_v58 }
 0x40c   : > { %v4035_v39 = vadd.f32 %v4034_v34, %v3955_v5  ;;  %v4015_v2 = vadd.f32 %v8549_v18, %v3939_v19  ;;  %v4099_v23 = vadd.f32 %v8579_v1, %v4025_v51  ;;  %v3959_v34 = vadd.f32 %v3958_v20, %v3850_v25 }
 0x40d   : > { %v4186_v20 = vadd.f32 %v4185_v42, %v4093_v62  ;;  %v4819_v42 = vld [vmem:[%s9150_s7] sm:$0xff]  ;;  %v4787_v35 = vmul.f32 0.01, %v4235_v33  ;;  %vm4771_vm6 = vcmp.ge.f32.partialorder %v4235_v33, 0.0  ;;  %v4437_v58 = vadd.f32 %v8612_v4, %v4300_v24 }
 0x40e   : > { %v4111_v16 = vadd.f32 %v8593_v49, %v4035_v39  ;;  %v4190_v60 = vadd.f32 %v4189_v55, %v4099_v23  ;;  %v4087_v18 = vadd.f32 %v8557_v28, %v4015_v2  ;;  %v4040_v49 = vadd.f32 %v8598_v7, %v3959_v34 }
 0x40f   : > { %v4193_v27 = vpop.f32.mrf.mxu0  ;;  %v8642_v63 = vpop.f32.mrf.mxu2  ;;  %v4178_v28 = vadd.f32 %v8606_v54, %v4081_v53  ;;  %v4849_v39 = vsel %vm4847_vm1, %v4819_v42, 0 }
 0x410   : > { %v4250_v59 = vpop.f32.mrf.mxu1  ;;  %v4194_v5 = vadd.f32 %v4193_v27, %v4105_v37  ;;  %v4182_v30 = vadd.f32 %v8614_v13, %v4087_v18  ;;  %v4117_v7 = vadd.f32 %v8603_v47, %v4040_v49  ;;  %v8717_v14 = vand.u32 4294901760, %v4849_v39 }
 0x411   : > { %v8647_v52 = vpop.f32.mrf.mxu3  ;;  %v4251_v45 = vadd.f32 %v4250_v59, %v4190_v60  ;;  %v4239_v13 = vadd.f32 %v8618_v36, %v4178_v28  ;;  %v4803_v49 = vsel %vm4771_vm6, %v4235_v33, %v4787_v35 }
 0x412   : > { %9484 = vst [vmem:[#allocation42_spill] sm:$0xff] %v8647_v52  ;;  %v4243_v59 = vadd.f32 %v8624_v31, %v4182_v30  ;;  %v8744_v11 = vsub.f32 %v4849_v39, %v8717_v14 }
 0x413   : > { %v4795_v3 = vmul.f32 0.01, %v4251_v45  ;;  %vm4779_vm0 = vcmp.ge.f32.partialorder %v4251_v45, 0.0  ;;  %v4789_v37 = vmul.f32 0.01, %v4239_v13  ;;  %vm4773_vm5 = vcmp.ge.f32.partialorder %v4239_v13, 0.0 }
 0x414   : > { %v4791_v6 = vmul.f32 0.01, %v4243_v59  ;;  %vm4775_vm3 = vcmp.ge.f32.partialorder %v4243_v59, 0.0 }
 0x415   : > { %v4811_v47 = vsel %vm4779_vm0, %v4251_v45, %v4795_v3 }
 0x416   : > { %v8712_v23 = vand.u32 4294901760, %v4811_v47  ;;  %v4807_v34 = vsel %vm4775_vm3, %v4243_v59, %v4791_v6 }
 0x417   : > { %v4197_v9 = vpop.f32.mrf.mxu0  ;;  %v8663_v17 = vpop.f32.mrf.mxu2  ;;  %v8730_v38 = vand.u32 4294901760, %v4807_v34 }
 0x418   : > { %v4254_v52 = vpop.f32.mrf.mxu1  ;;  %v4198_v43 = vadd.f32 %v4197_v9, %v4111_v16  ;;  %v8735_v4 = vsub.f32 %v4811_v47, %v8712_v23 }
 0x419   : > { %v8671_v44 = vpop.f32.mrf.mxu3  ;;  %v4255_v0 = vadd.f32 %v4254_v52, %v4194_v5  ;;  %v4247_v52 = vadd.f32 %v4246_v15, %v4186_v20  ;;  %v8760_v33 = vsub.f32 %v4807_v34, %v8730_v38 }
 0x41b   : > { %v4797_v48 = vmul.f32 0.01, %v4255_v0  ;;  %vm4781_vm15 = vcmp.ge.f32.partialorder %v4255_v0, 0.0  ;;  %v4793_v15 = vmul.f32 0.01, %v4247_v52  ;;  %vm4777_vm2 = vcmp.ge.f32.partialorder %v4247_v52, 0.0 }
 0x41d   : > { %v4813_v9 = vsel %vm4781_vm15, %v4255_v0, %v4797_v48  ;;  %v4809_v2 = vsel %vm4777_vm2, %v4247_v52, %v4793_v15  ;;  %v4820_v0 = vld [vmem:[%s9150_s7 + $0x8] sm:$0xff]  ;;  %vm5551_vm15 = vcmask 261120  }
 0x41e   : > { %v8708_v25 = vand.u32 4294901760, %v4813_v9  ;;  %v8720_v60 = vand.u32 4294901760, %v4809_v2  ;;  %v4852_v52 = vsel %vm4847_vm1, %v4820_v0, 0 }
 0x41f   : > { %v4201_v41 = vpop.f32.mrf.mxu0  ;;  %v8683_v56 = vpop.f32.mrf.mxu2 }
 0x420   : > { %v4258_v1 = vpop.f32.mrf.mxu1  ;;  %v4202_v54 = vadd.f32 %v4201_v41, %v4117_v7  ;;  %v4805_v41 = vsel %vm4773_vm5, %v4239_v13, %v4789_v37  ;;  %v8753_v59 = vsub.f32 %v4809_v2, %v8720_v60  ;;  %v8756_v7 = vand.u32 4294901760, %v4803_v49 }
 0x421   : > { %v4259_v27 = vadd.f32 %v4258_v1, %v4198_v43  ;;  %v8691_v55 = vpop.f32.mrf.mxu3  ;;  %v8725_v43 = vsub.f32 %v4813_v9, %v8708_v25  ;;  %v8747_v48 = vand.u32 4294901760, %v4805_v41  ;;  %v4945_v13 = vand.u32 4294901760, %v8735_v4 }
 0x422   : > { %v8772_v9 = vand.u32 4294901760, %v8744_v11  ;;  %v9267_v24 = vand.u32 4294901760, %v8753_v59  ;;  %v8797_v37 = vsub.f32 %v4803_v49, %v8756_v7  ;;  %v9266_v2 = vand.u32 4294901760, %v8760_v33 }
 0x423   : > { %vm4783_vm14 = vcmp.ge.f32.partialorder %v4259_v27, 0.0  ;;  %v4799_v61 = vmul.f32 0.01, %v4259_v27  ;;  %v4939_v3 = vand.u32 4294901760, %v8725_v43 }
 0x424   : > { %v4952_v49 = vsub.f32 %v8753_v59, %v9267_v24 }
 0x425   : > { %v4815_v40 = vsel %vm4783_vm14, %v4259_v27, %v4799_v61  ;;  %v4940_v47 = vsub.f32 %v8725_v43, %v4939_v3 }
 0x426   : > { %v8703_v19 = vand.u32 4294901760, %v4815_v40 }
 0x427   : > { %v8701_v50 = vpop.f32.mrf.mxu2  ;;  %v4510_v31 = vpop.f32.mrf.mxu0 }
 0x428   : > { %v4262_v51 = vpop.f32.mrf.mxu1  ;;  %v8715_v5 = vsub.f32 %v4815_v40, %v8703_v19  ;;  %v4511_v18 = vadd.f32 %v4510_v31, %v4437_v58  ;;  %v4946_v58 = vsub.f32 %v8735_v4, %v4945_v13 }
 0x429   : > { %v4263_v36 = vadd.f32 %v4262_v51, %v4202_v54  ;;  %v8710_v32 = vpop.f32.mrf.mxu3  ;;  %v8774_v54 = vand.u32 4294901760, %v4852_v52  ;;  %v8785_v51 = vsub.f32 %v4805_v41, %v8747_v48 }
 0x42a   : > { %v4933_v53 = vand.u32 4294901760, %v8715_v5 }
 0x42b   : > { %vm4785_vm4 = vcmp.ge.f32.partialorder %v4263_v36, 0.0  ;;  %v4801_v16 = vmul.f32 0.01, %v4263_v36  ;;  %v8809_v0 = vsub.f32 %v4852_v52, %v8774_v54  ;;  %v4969_v52 = vand.u32 4294901760, %v8797_v37 }
 0x42c   : > { %v4934_v15 = vsub.f32 %v8715_v5, %v4933_v53 }
 0x42d   : > { %v4817_v21 = vsel %vm4785_vm4, %v4263_v36, %v4801_v16  ;;  %v4821_v36 = vld [vmem:[%s9150_s7 + $0x10] sm:$0xff] }
 0x42e   : > { %v8722_v62 = vand.u32 4294901760, %v4817_v21  ;;  %v4935_v34 = vand.u32 4294901760, %v4934_v15  ;;  %v4855_v41 = vsel %vm4847_vm1, %v4821_v36, 0  ;;  %v4822_v36 = vld [vmem:[%s9150_s7 + $0x18] sm:$0xff] }
 0x42f   : > { %v8732_v45 = vpop.f32.mrf.mxu0  ;;  %v4679_v1 = vpop.f32.mrf.mxu2  ;;  %v8833_v15 = vand.u32 4294901760, %v4855_v41 }
 0x430   : > { %v8738_v20 = vsub.f32 %v4817_v21, %v8722_v62  ;;  %v4580_v27 = vpop.f32.mrf.mxu1  ;;  %4869 = vmatpush.msra.mxu0 %v8722_v62  ;;  %5052 = vmatpush.msra.mxu3 %v8722_v62  ;;  %v4887_v21 = vsub.f32 %v8744_v11, %v8772_v9 }
 0x431   : > { %v4581_v30 = vadd.f32 %v4580_v27, %v4511_v18  ;;  %v4740_v61 = vpop.f32.mrf.mxu3  ;;  %v4963_v27 = vand.u32 4294901760, %v8785_v51 }
 0x432   : > { %4871 = vmatpush.msra.mxu0 %v8703_v19  ;;  %5000 = vmatpush.msra.mxu2 %v8738_v20  ;;  %v4927_v28 = vand.u32 4294901760, %v8738_v20 }
 0x433   : > { %v4680_v40 = vadd.f32 %v4679_v1, %v4581_v30  ;;  %5054 = vmatpush.msra.mxu3 %v8703_v19  ;;  %v4941_v1 = vand.u32 4294901760, %v4940_v47  ;;  %v4958_v30 = vsub.f32 %v8760_v33, %v9266_v2  ;;  %v4964_v47 = vsub.f32 %v8785_v51, %v4963_v27 }
 0x434   : > { %4873 = vmatpush.msra.mxu0 %v8708_v25  ;;  %5003 = vmatpush.msra.mxu2 %v8715_v5  ;;  %v4928_v42 = vsub.f32 %v8738_v20, %v4927_v28  ;;  %v8855_v2 = vsub.f32 %v4855_v41, %v8833_v15 }
 0x435   : > { %v8776_v31 = vadd.f32 %v4740_v61, %v4680_v40  ;;  %5056 = vmatpush.msra.mxu3 %v8708_v25  ;;  %v4947_v61 = vand.u32 4294901760, %v4946_v58  ;;  %v8828_v40 = vand.u32 4294901760, %v4887_v21 }
 0x436   : > { %4875 = vmatpush.msra.mxu0 %v8712_v23  ;;  %5006 = vmatpush.msra.mxu2 %v8725_v43  ;;  %v4929_v6 = vand.u32 4294901760, %v4928_v42  ;;  %v8831_v42 = vand.u32 4294901760, %v8809_v0  ;;  %v8870_v20 = vand.u32 4294901760, %v8855_v2 }
 0x437   : > { %5058 = vmatpush.msra.mxu3 %v8712_v23  ;;  %v8792_v39 = vpop.f32.mrf.mxu0  ;;  %v8794_v35 = vpop.f32.mrf.mxu2  ;;  %vm4772_vm14 = vcmp.ge.f32.partialorder %v8776_v31, 0.0 }
 0x438   : > { %v8800_v16 = vpop.f32.mrf.mxu1  ;;  %4877 = vmatpush.msra.mxu0 %v8720_v60  ;;  %4930 = vmatpush.msra.mxu1 %v4929_v6  ;;  %v4953_v6 = vand.u32 4294901760, %v4952_v49  ;;  %v4970_v49 = vsub.f32 %v8797_v37, %v4969_v52 }
 0x439   : > { %5009 = vmatpush.msra.mxu2 %v8735_v4  ;;  %5060 = vmatpush.msra.mxu3 %v8720_v60  ;;  %v8815_v18 = vpop.f32.mrf.mxu3 }
 0x43a   : > { %4879 = vmatpush.msra.mxu0 %v8730_v38  ;;  %4936 = vmatpush.msra.mxu1 %v4935_v34  ;;  %v4971_v41 = vand.u32 4294901760, %v4970_v49  ;;  %v4324_v49 = vadd.f32 %v8632_v22, %v8636_v29  ;;  %v9489_v22 = vld [vmem:[#allocation49_spill] sm:$0xff] }
 0x43b   : > { %5012 = vmatpush.msra.mxu2 %v8753_v59  ;;  %5062 = vmatpush.msra.mxu3 %v8730_v38  ;;  %v4308_v29 = vadd.f32 %v9489_v22, %v8656_v26 }
 0x43c   : > { %4881 = vmatpush.msra.mxu0 %v8747_v48  ;;  %4942 = vmatpush.msra.mxu1 %v4941_v1  ;;  %v4959_v1 = vand.u32 4294901760, %v4958_v30  ;;  %v4965_v30 = vand.u32 4294901760, %v4964_v47  ;;  %v4903_v47 = vsub.f32 %v8855_v2, %v8870_v20 }
 0x43d   : > { %5015 = vmatpush.msra.mxu2 %v8760_v33  ;;  %5064 = vmatpush.msra.mxu3 %v8747_v48 }
 0x43e   : > { %4883 = vmatpush.msra.mxu0 %v8756_v7  ;;  %4948 = vmatpush.msra.mxu1 %v4947_v61  ;;  %v4895_v61 = vsub.f32 %v8809_v0, %v8831_v42 }
 0x43f   : > { %5018 = vmatpush.msra.mxu2 %v8785_v51  ;;  %5066 = vmatpush.msra.mxu3 %v8756_v7  ;;  %v8844_v34 = vpop.f32.mrf.mxu0  ;;  %v8846_v58 = vpop.f32.mrf.mxu2  ;;  %v4858_v51 = vsel %vm4847_vm1, %v4822_v36, 0 }
 0x440   : > { %4889 = vmatmul.f32.vlgmr.msra.gmra.mxu0 %v8828_v40  ;;  %v8849_v21 = vpop.f32.mrf.mxu1  ;;  %4954 = vmatpush.msra.mxu1 %v4953_v6  ;;  %v8867_v24 = vand.u32 4294901760, %v4895_v61  ;;  %v9487_v61 = vld [vmem:[#allocation20_spill] sm:$0xff] }
 0x441   : > { %5103 = vmatpush.msrb.mxu0 %v4927_v28  ;;  %5021 = vmatpush.msra.mxu2 %v8797_v37  ;;  %v8862_v6 = vpop.f32.mrf.mxu3  ;;  %v8872_v28 = vand.u32 4294901760, %v4858_v51 }
 0x442   : > { %4960 = vmatpush.msra.mxu1 %v4959_v1  ;;  %5024 = vmatmul.f32.vlgmr.msra.gmra.mxu2 %v8744_v11 }
 0x443   : > { %5107 = vmatpush.msrb.mxu0 %v4933_v53  ;;  %5070 = vmatmul.f32.vlgmr.msra.gmra.mxu3 %v8772_v9  ;;  %v8886_v43 = vsub.f32 %v4858_v51, %v8872_v28 }
 0x444   : > { %4966 = vmatpush.msra.mxu1 %v4965_v30 }
 0x445   : > { %5111 = vmatpush.msrb.mxu0 %v4939_v3  ;;  %v9485_v3 = vand.u32 4294901760, %v8753_v59  ;;  %v8901_v36 = vand.u32 4294901760, %v8886_v43 }
 0x446   : > { %4972 = vmatpush.msra.mxu1 %v4971_v41  ;;  %v9490_v41 = vld [vmem:[#allocation18_spill] sm:$0xff] }
 0x447   : > { %5115 = vmatpush.msrb.mxu0 %v4945_v13  ;;  %4974 = vmatmul.f32.vlgmr.msra.gmra.mxu1 %v8717_v14  ;;  %v4530_v5 = vpop.f32.mrf.mxu0  ;;  %v8879_v53 = vpop.f32.mrf.mxu2  ;;  %v9486_v13 = vand.u32 4294901760, %v8760_v33 }
 0x448   : > { %4897 = vmatmul.f32.gmra.mxu0 %v8867_v24  ;;  %5158 = vmatpush.msrb.mxu1 %v8722_v62  ;;  %v4598_v37 = vpop.f32.mrf.mxu1  ;;  %v8898_v62 = vand.u32 4294901760, %v4903_v47  ;;  %v4449_v47 = vadd.f32 %v9490_v41, %v4324_v49 }
 0x449   : > { %5119 = vmatpush.msrb.mxu0 %v9485_v3  ;;  %v8892_v4 = vpop.f32.mrf.mxu3 }
 0x44a   : > { %5160 = vmatpush.msrb.mxu1 %v8703_v19  ;;  %5029 = vmatmul.f32.gmra.mxu2 %v8809_v0 }
 0x44b   : > { %5123 = vmatpush.msrb.mxu0 %v9486_v13  ;;  %5076 = vmatmul.f32.gmra.mxu3 %v8831_v42 }
 0x44c   : > { %5162 = vmatpush.msrb.mxu1 %v8708_v25  ;;  %v4911_v25 = vsub.f32 %v8886_v43, %v8901_v36 }
 0x44d   : > { %5127 = vmatpush.msrb.mxu0 %v4963_v27 }
 0x44e   : > { %5164 = vmatpush.msrb.mxu1 %v8712_v23  ;;  %v4340_v23 = vadd.f32 %v8663_v17, %v8638_v46  ;;  %v4348_v17 = vadd.f32 %v8683_v56, %v8626_v12  ;;  %v9491_v56 = vld [vmem:[#allocation8_spill] sm:$0xff] }
 0x44f   : > { %5131 = vmatpush.msrb.mxu0 %v4969_v52  ;;  %4978 = vmatmul.f32.gmra.mxu1 %v8774_v54  ;;  %v4695_v19 = vpop.f32.mrf.mxu2  ;;  %v4535_v59 = vpop.f32.mrf.mxu0  ;;  %v8915_v52 = vand.u32 4294901760, %v4911_v25 }
 0x450   : > { %4905 = vmatmul.f32.gmra.mxu0 %v8898_v62  ;;  %5166 = vmatpush.msrb.mxu1 %v8720_v60  ;;  %v4604_v33 = vpop.f32.mrf.mxu1  ;;  %v4332_v60 = vadd.f32 %v8642_v63, %v8640_v10  ;;  %v4457_v1 = vadd.f32 %v8671_v44, %v4340_v23  ;;  %v4316_v10 = vadd.f32 %v9487_v61, %v8652_v8  ;;  %v9488_v63 = vld [vmem:[#allocation42_spill] sm:$0xff] }
 0x451   : > { %v4756_v27 = vpop.f32.mrf.mxu3  ;;  %v4461_v12 = vadd.f32 %v8691_v55, %v4348_v17  ;;  %v4526_v8 = vadd.f32 %v8844_v34, %v4449_v47  ;;  %v4356_v55 = vadd.f32 %v8701_v50, %v8628_v57 }
 0x452   : > { %5168 = vmatpush.msrb.mxu1 %v8730_v38  ;;  %5034 = vmatmul.f32.gmra.mxu2 %v8855_v2  ;;  %v4445_v13 = vadd.f32 %v9491_v56, %v4316_v10 }
 0x453   : > { %5082 = vmatmul.f32.gmra.mxu3 %v8870_v20  ;;  %v4599_v26 = vadd.f32 %v4598_v37, %v4526_v8 }
 0x454   : > { %5170 = vmatpush.msrb.mxu1 %v8747_v48  ;;  %v4536_v48 = vadd.f32 %v4535_v59, %v4457_v1  ;;  %v9492_v1 = vld [vmem:[#allocation14_spill] sm:$0xff] }
 0x456   : > { %5172 = vmatpush.msrb.mxu1 %v8756_v7  ;;  %v4453_v7 = vadd.f32 %v9488_v63, %v4332_v60 }
 0x457   : > { %4982 = vmatmul.f32.gmra.mxu1 %v8833_v15  ;;  %v4699_v38 = vpop.f32.mrf.mxu2  ;;  %v4540_v51 = vpop.f32.mrf.mxu0 }
 0x458   : > { %4913 = vmatmul.f32.gmra.mxu0 %v8915_v52  ;;  %v4610_v46 = vpop.f32.mrf.mxu1  ;;  %v4531_v3 = vadd.f32 %v4530_v5, %v4453_v7  ;;  %v4541_v25 = vadd.f32 %v4540_v51, %v4461_v12  ;;  %v4465_v7 = vadd.f32 %v8710_v32, %v4356_v55 }
 0x459   : > { %v4760_v44 = vpop.f32.mrf.mxu3  ;;  %v4611_v30 = vadd.f32 %v4610_v46, %v4536_v48  ;;  %v4441_v46 = vadd.f32 %v9492_v1, %v4308_v29  ;;  %v4521_v48 = vadd.f32 %v8792_v39, %v4445_v13  ;;  %v4692_v39 = vadd.f32 %v8879_v53, %v4599_v26 }
 0x45a   : > { %5039 = vmatmul.f32.gmra.mxu2 %v8886_v43  ;;  %v4605_v59 = vadd.f32 %v4604_v33, %v4531_v3  ;;  %v4788_v1 = vmul.f32 0.01, %v8776_v31 }
 0x45b   : > { %5088 = vmatmul.f32.gmra.mxu3 %v8901_v36  ;;  %v4700_v23 = vadd.f32 %v4699_v38, %v4611_v30  ;;  %v4516_v34 = vadd.f32 %v8732_v45, %v4441_v46  ;;  %v4593_v33 = vadd.f32 %v8849_v21, %v4521_v48 }
 0x45c   : > { %v4696_v38 = vadd.f32 %v4695_v19, %v4605_v59  ;;  %v4753_v19 = vadd.f32 %v8892_v4, %v4692_v39 }
 0x45d   : > { %v4761_v61 = vadd.f32 %v4760_v44, %v4700_v23  ;;  %v4587_v63 = vadd.f32 %v8800_v16, %v4516_v34  ;;  %v4688_v30 = vadd.f32 %v8846_v58, %v4593_v33 }
 0x45e   : > { %v4757_v57 = vadd.f32 %v4756_v27, %v4696_v38  ;;  %v4794_v12 = vmul.f32 0.01, %v4753_v19  ;;  %vm4778_vm10 = vcmp.ge.f32.partialorder %v4753_v19, 0.0 }
 0x45f   : > { %4986 = vmatmul.f32.gmra.mxu1 %v8872_v28  ;;  %v4703_v60 = vpop.f32.mrf.mxu2  ;;  %v4545_v37 = vpop.f32.mrf.mxu0  ;;  %v4798_v50 = vmul.f32 0.01, %v4761_v61  ;;  %v4684_v21 = vadd.f32 %v8794_v35, %v4587_v63  ;;  %vm4782_vm8 = vcmp.ge.f32.partialorder %v4761_v61, 0.0  ;;  %v4749_v58 = vadd.f32 %v8862_v6, %v4688_v30 }
 0x460   : > { %5133 = vmatmul.f32.vlgmr.msrb.gmra.mxu0 %v8717_v14  ;;  %v4616_v5 = vpop.f32.mrf.mxu1  ;;  %v4546_v22 = vadd.f32 %v4545_v37, %v4465_v7  ;;  %v4796_v27 = vmul.f32 0.01, %v4757_v57  ;;  %vm4780_vm9 = vcmp.ge.f32.partialorder %v4757_v57, 0.0 }
 0x461   : > { %v4617_v49 = vadd.f32 %v4616_v5, %v4541_v25  ;;  %v4764_v17 = vpop.f32.mrf.mxu3  ;;  %v4814_v41 = vsel %vm4782_vm8, %v4761_v61, %v4798_v50  ;;  %v4745_v3 = vadd.f32 %v8815_v18, %v4684_v21  ;;  %v4792_v56 = vmul.f32 0.01, %v4749_v58 }
 0x462   : > { %v4812_v13 = vsel %vm4780_vm9, %v4757_v57, %v4796_v27  ;;  %v8958_v8 = vand.u32 4294901760, %v4814_v41  ;;  %vm4776_vm11 = vcmp.ge.f32.partialorder %v4749_v58, 0.0  ;;  %v4810_v25 = vsel %vm4778_vm10, %v4753_v19, %v4794_v12 }
 0x463   : > { %v4704_v10 = vadd.f32 %v4703_v60, %v4617_v49  ;;  %v4790_v6 = vmul.f32 0.01, %v4745_v3  ;;  %vm4774_vm13 = vcmp.ge.f32.partialorder %v4745_v3, 0.0  ;;  %v8965_v23 = vand.u32 4294901760, %v4812_v13 }
 0x464   : > { %v4808_v46 = vsel %vm4776_vm11, %v4749_v58, %v4792_v56  ;;  %v8971_v26 = vsub.f32 %v4814_v41, %v8958_v8  ;;  %v8974_v5 = vand.u32 4294901760, %v4810_v25  ;;  %vm5928_vm8 = vcmask 1043456  }
 0x465   : > { %v4765_v51 = vadd.f32 %v4764_v17, %v4704_v10  ;;  %v4806_v55 = vsel %vm4774_vm13, %v4745_v3, %v4790_v6  ;;  %v8982_v33 = vand.u32 4294901760, %v4808_v46  ;;  %v8985_v38 = vsub.f32 %v4812_v13, %v8965_v23 }
 0x466   : > { %v4804_v17 = vsel %vm4772_vm14, %v8776_v31, %v4788_v1  ;;  %v5269_v10 = vand.u32 4294901760, %v8971_v26  ;;  %v8992_v63 = vand.u32 4294901760, %v4806_v55  ;;  %v8996_v39 = vsub.f32 %v4810_v25, %v8974_v5 }
 0x467   : > { %vm4784_vm7 = vcmp.ge.f32.partialorder %v4765_v51, 0.0  ;;  %v4800_v45 = vmul.f32 0.01, %v4765_v51  ;;  %5174 = vmatmul.f32.vlgmr.msrb.gmra.mxu1 %v8717_v14  ;;  %v4707_v53 = vpop.f32.mrf.mxu2  ;;  %v9004_v7 = vand.u32 4294901760, %v4804_v17  ;;  %v5275_v30 = vand.u32 4294901760, %v8985_v38 }
 0x468   : > { %5137 = vmatmul.f32.gmra.mxu0 %v8774_v54  ;;  %v4622_v16 = vpop.f32.mrf.mxu1  ;;  %v5270_v50 = vsub.f32 %v8971_v26, %v5269_v10 }
 0x469   : > { %v4816_v32 = vsel %vm4784_vm7, %v4765_v51, %v4800_v45  ;;  %v4623_v44 = vadd.f32 %v4622_v16, %v4546_v22  ;;  %v4768_v29 = vpop.f32.mrf.mxu3  ;;  %v5286_v51 = vsub.f32 %v4808_v46, %v8982_v33  ;;  %v5292_v22 = vsub.f32 %v4806_v55, %v8992_v63 }
 0x46a   : > { %v8956_v35 = vand.u32 4294901760, %v4816_v32  ;;  %v5281_v45 = vand.u32 4294901760, %v8996_v39  ;;  %v5276_v19 = vsub.f32 %v8985_v38, %v5275_v30  ;;  %v5298_v16 = vsub.f32 %v4804_v17, %v9004_v7 }
 0x46b   : > { %v4708_v47 = vadd.f32 %v4707_v53, %v4623_v44  ;;  %v5287_v53 = vand.u32 4294901760, %v5286_v51  ;;  %v5293_v58 = vand.u32 4294901760, %v5292_v22 }
 0x46c   : > { %v8963_v18 = vsub.f32 %v4816_v32, %v8956_v35  ;;  %v5271_v32 = vand.u32 4294901760, %v5270_v50  ;;  %v5282_v44 = vsub.f32 %v8996_v39, %v5281_v45  ;;  %v5277_v27 = vand.u32 4294901760, %v5276_v19 }
 0x46d   : > { %v4769_v4 = vadd.f32 %v4768_v29, %v4708_v47  ;;  %v5288_v29 = vsub.f32 %v5286_v51, %v5287_v53  ;;  %v5299_v41 = vand.u32 4294901760, %v5298_v16  ;;  %v5294_v3 = vsub.f32 %v5292_v22, %v5293_v58 }
 0x46e   : > { %v5263_v34 = vand.u32 4294901760, %v8963_v18  ;;  %v5283_v47 = vand.u32 4294901760, %v5282_v44 }
 0x46f   : > { %vm4786_vm12 = vcmp.ge.f32.partialorder %v4769_v4, 0.0  ;;  %v4802_v59 = vmul.f32 0.01, %v4769_v4  ;;  %5178 = vmatmul.f32.gmra.mxu1 %v8774_v54  ;;  %v5289_v12 = vand.u32 4294901760, %v5288_v29  ;;  %v5295_v56 = vand.u32 4294901760, %v5294_v3 }
 0x470   : > { %5141 = vmatmul.f32.gmra.mxu0 %v8833_v15  ;;  %v5264_v37 = vsub.f32 %v8963_v18, %v5263_v34 }
 0x471   : > { %v4818_v60 = vsel %vm4786_vm12, %v4769_v4, %v4802_v59  ;;  %v5300_v4 = vsub.f32 %v5298_v16, %v5299_v41  ;;  %v9069_v59 = vpop.permute.xlu1 %4839 }
 0x472   : > { %v8968_v48 = vand.u32 4294901760, %v4818_v60  ;;  %v5265_v21 = vand.u32 4294901760, %v5264_v37 }
 0x473   : > { %v5301_v13 = vand.u32 4294901760, %v5300_v4 }
 0x474   : > { %v8977_v49 = vsub.f32 %v4818_v60, %v8968_v48  ;;  %5199 = vmatpush.msrb.mxu2 %v8968_v48  ;;  %5382 = vmatpush.msra.mxu1 %v8968_v48 }
 0x476   : > { %5201 = vmatpush.msrb.mxu2 %v8956_v35  ;;  %5330 = vmatpush.msra.mxu0 %v8977_v49  ;;  %v5257_v61 = vand.u32 4294901760, %v8977_v49 }
 0x477   : > { %5384 = vmatpush.msra.mxu1 %v8956_v35 }
 0x478   : > { %5145 = vmatmul.f32.gmra.mxu0 %v8872_v28  ;;  %5182 = vmatmul.f32.gmra.mxu1 %v8833_v15  ;;  %v5258_v31 = vsub.f32 %v8977_v49, %v5257_v61 }
 0x479   : > { %5203 = vmatpush.msrb.mxu2 %v8958_v8  ;;  %5333 = vmatpush.msra.mxu0 %v8963_v18 }
 0x47a   : > { %5386 = vmatpush.msra.mxu1 %v8958_v8  ;;  %v5259_v57 = vand.u32 4294901760, %v5258_v31 }
 0x47b   : > { %5205 = vmatpush.msrb.mxu2 %v8965_v23  ;;  %5336 = vmatpush.msra.mxu0 %v8971_v26 }
 0x47c   : > { %5388 = vmatpush.msra.mxu1 %v8965_v23  ;;  %5260 = vmatpush.msrb.mxu3 %v5259_v57 }
 0x47d   : > { %5207 = vmatpush.msrb.mxu2 %v8974_v5  ;;  %5339 = vmatpush.msra.mxu0 %v8985_v38 }
 0x47e   : > { %5390 = vmatpush.msra.mxu1 %v8974_v5  ;;  %5266 = vmatpush.msrb.mxu3 %v5265_v21 }
 0x47f   : > { %5209 = vmatpush.msrb.mxu2 %v8982_v33  ;;  %5342 = vmatpush.msra.mxu0 %v8996_v39  ;;  %v5544_v39 = vld [vmem:[%s9152_s9] sm:$0x7] }
 0x480   : > { %5392 = vmatpush.msra.mxu1 %v8982_v33  ;;  %5272 = vmatpush.msrb.mxu3 %v5271_v32  ;;  %v5553_v50 = vsel %vm5551_vm15, %v5544_v39, 0 }
 0x481   : > { %5186 = vmatmul.f32.gmra.mxu1 %v8872_v28  ;;  %5211 = vmatpush.msrb.mxu2 %v8992_v63 }
 0x482   : > { %5345 = vmatpush.msra.mxu0 %v5286_v51  ;;  %5394 = vmatpush.msra.mxu1 %v8992_v63 }
 0x483   : > { %5213 = vmatpush.msrb.mxu2 %v9004_v7  ;;  %5278 = vmatpush.msrb.mxu3 %v5277_v27 }
 0x484   : > { %5348 = vmatpush.msra.mxu0 %v5292_v22  ;;  %5396 = vmatpush.msra.mxu1 %v9004_v7 }
 0x485   : > { %5219 = vmatmul.f32.vlgmr.msrb.gmra.mxu2 %v8828_v40  ;;  %5284 = vmatpush.msrb.mxu3 %v5283_v47 }
 0x486   : > { %5433 = vmatpush.msra.mxu2 %v5257_v61  ;;  %5351 = vmatpush.msra.mxu0 %v5298_v16 }
 0x487   : > { %5290 = vmatpush.msrb.mxu3 %v5289_v12  ;;  %5354 = vmatmul.f32.vlgmr.msra.gmra.mxu0 %v8744_v11 }
 0x488   : > { %5437 = vmatpush.msra.mxu2 %v5263_v34 }
 0x489   : > { %5296 = vmatpush.msrb.mxu3 %v5295_v56  ;;  %5400 = vmatmul.f32.vlgmr.msra.gmra.mxu1 %v8772_v9 }
 0x48a   : > { %5441 = vmatpush.msra.mxu2 %v5269_v10 }
 0x48b   : > { %5302 = vmatpush.msrb.mxu3 %v5301_v13 }
 0x48c   : > { %5445 = vmatpush.msra.mxu2 %v5275_v30  ;;  %5304 = vmatmul.f32.vlgmr.msrb.gmra.mxu3 %v8717_v14 }
 0x48d   : > { %5227 = vmatmul.f32.gmra.mxu2 %v8867_v24  ;;  %5488 = vmatpush.msra.mxu3 %v8968_v48 }
 0x48e   : > { %5449 = vmatpush.msra.mxu2 %v5281_v45 }
 0x48f   : > { %5490 = vmatpush.msra.mxu3 %v8956_v35  ;;  %5359 = vmatmul.f32.gmra.mxu0 %v8809_v0  ;;  %v9067_v35 = vpop.permute.xlu2 %4834 }
 0x490   : > { %5453 = vmatpush.msra.mxu2 %v5287_v53  ;;  %v9080_v53 = vand.u32 4294901760, %v5553_v50 }
 0x491   : > { %5492 = vmatpush.msra.mxu3 %v8958_v8  ;;  %5406 = vmatmul.f32.gmra.mxu1 %v8831_v42 }
 0x492   : > { %5457 = vmatpush.msra.mxu2 %v5293_v58  ;;  %v9083_v47 = vsub.f32 %v5553_v50, %v9080_v53 }
 0x493   : > { %5494 = vmatpush.msra.mxu3 %v8965_v23 }
 0x494   : > { %5461 = vmatpush.msra.mxu2 %v5299_v41  ;;  %5308 = vmatmul.f32.gmra.mxu3 %v8774_v54 }
 0x495   : > { %5235 = vmatmul.f32.gmra.mxu2 %v8898_v62  ;;  %5496 = vmatpush.msra.mxu3 %v8974_v5 }
 0x497   : > { %5498 = vmatpush.msra.mxu3 %v8982_v33  ;;  %5364 = vmatmul.f32.gmra.mxu0 %v8855_v2 }
 0x499   : > { %5500 = vmatpush.msra.mxu3 %v8992_v63  ;;  %5412 = vmatmul.f32.gmra.mxu1 %v8870_v20 }
 0x49b   : > { %5502 = vmatpush.msra.mxu3 %v9004_v7 }
 0x49c   : > { %5312 = vmatmul.f32.gmra.mxu3 %v8833_v15 }
 0x49d   : > { %5243 = vmatmul.f32.gmra.mxu2 %v8915_v52 }
 0x49f   : > { %5369 = vmatmul.f32.gmra.mxu0 %v8886_v43 }
 0x4a1   : > { %5418 = vmatmul.f32.gmra.mxu1 %v8901_v36 }
 0x4a4   : > { %5316 = vmatmul.f32.gmra.mxu3 %v8872_v28 }
 0x4a5   : > { %5463 = vmatmul.f32.vlgmr.msra.gmra.mxu2 %v8717_v14 }
 0x4ac   : > { %5504 = vmatmul.f32.vlgmr.msra.gmra.mxu3 %v8717_v14 }
 0x4ad   : > { %5467 = vmatmul.f32.gmra.mxu2 %v8774_v54 }
 0x4b4   : > { %5508 = vmatmul.f32.gmra.mxu3 %v8774_v54  ;;  %v9065_v54 = vpop.permute.xlu0 %4844 }
 0x4b5   : > { %5471 = vmatmul.f32.gmra.mxu2 %v8833_v15 }
 0x4bc   : > { %5512 = vmatmul.f32.gmra.mxu3 %v8833_v15  ;;  %v9072_v6 = vpop.permute.xlu0 %4829 }
 0x4bd   : > { %5475 = vmatmul.f32.gmra.mxu2 %v8872_v28  ;;  %v4890_v11 = vpop.f32.mrf.mxu0 }
 0x4be   : > { %v4891_v18 = vadd.f32 %v4890_v11, %v9072_v6 }
 0x4c4   : > { %5516 = vmatmul.f32.gmra.mxu3 %v8872_v28  ;;  %v4975_v9 = vpop.f32.mrf.mxu1 }
 0x4c5   : > { %v4898_v24 = vpop.f32.mrf.mxu0  ;;  %v5025_v14 = vpop.f32.mrf.mxu2  ;;  %v4976_v46 = vadd.f32 %v4975_v9, %v4891_v18  ;;  %v9086_v9 = vand.u32 4294901760, %v9083_v47 }
 0x4c6   : > { %v5071_v20 = vpop.f32.mrf.mxu3  ;;  %v4899_v28 = vadd.f32 %v4898_v24, %v9067_v35 }
 0x4c7   : > { %v5026_v49 = vadd.f32 %v5025_v14, %v4976_v46  ;;  %v5578_v14 = vsub.f32 %v9083_v47, %v9086_v9 }
 0x4c9   : > { %v5072_v61 = vadd.f32 %v5071_v20, %v5026_v49 }
 0x4cc   : > { %v4979_v2 = vpop.f32.mrf.mxu1 }
 0x4cd   : > { %v4906_v0 = vpop.f32.mrf.mxu0  ;;  %v5030_v36 = vpop.f32.mrf.mxu2  ;;  %v4980_v23 = vadd.f32 %v4979_v2, %v4899_v28 }
 0x4ce   : > { %v5077_v52 = vpop.f32.mrf.mxu3  ;;  %v4907_v25 = vadd.f32 %v4906_v0, %v9069_v59 }
 0x4cf   : > { %v5031_v26 = vadd.f32 %v5030_v36, %v4980_v23 }
 0x4d1   : > { %v5078_v33 = vadd.f32 %v5077_v52, %v5031_v26 }
 0x4d4   : > { %v4983_v40 = vpop.f32.mrf.mxu1 }
 0x4d5   : > { %v4914_v42 = vpop.f32.mrf.mxu0  ;;  %v4984_v60 = vadd.f32 %v4983_v40, %v4907_v25  ;;  %v5035_v1 = vpop.f32.mrf.mxu2 }
 0x4d6   : > { %v5083_v55 = vpop.f32.mrf.mxu3  ;;  %v4915_v38 = vadd.f32 %v4914_v42, %v9065_v54 }
 0x4d7   : > { %v5036_v5 = vadd.f32 %v5035_v1, %v4984_v60 }
 0x4d9   : > { %v5084_v17 = vadd.f32 %v5083_v55, %v5036_v5 }
 0x4dc   : > { %v4987_v43 = vpop.f32.mrf.mxu1 }
 0x4dd   : > { %v5134_v62 = vpop.f32.mrf.mxu0  ;;  %v4988_v10 = vadd.f32 %v4987_v43, %v4915_v38  ;;  %v5040_v31 = vpop.f32.mrf.mxu2 }
 0x4de   : > { %v5135_v7 = vadd.f32 %v5134_v62, %v5072_v61  ;;  %v5089_v21 = vpop.f32.mrf.mxu3 }
 0x4df   : > { %v5041_v22 = vadd.f32 %v5040_v31, %v4988_v10 }
 0x4e1   : > { %v5090_v44 = vadd.f32 %v5089_v21, %v5041_v22 }
 0x4e4   : > { %v5175_v15 = vpop.f32.mrf.mxu1 }
 0x4e5   : > { %v5138_v8 = vpop.f32.mrf.mxu0  ;;  %v5176_v45 = vadd.f32 %v5175_v15, %v5135_v7 }
 0x4e6   : > { %v5139_v63 = vadd.f32 %v5138_v8, %v5078_v33  ;;  %v9090_v8 = vand.u32 4294901760, %v5578_v14 }
 0x4e7   : > { %v5528_v58 = vmul.f32 0.01, %v5176_v45  ;;  %vm5520_vm2 = vcmp.ge.f32.partialorder %v5176_v45, 0.0 }
 0x4e9   : > { %v5536_v4 = vsel %vm5520_vm2, %v5176_v45, %v5528_v58 }
 0x4ea   : > { %v5573_v24 = vand.u32 4294901760, %v5536_v4 }
 0x4ec   : > { %v5179_v48 = vpop.f32.mrf.mxu1  ;;  %v5615_v43 = vsub.f32 %v5536_v4, %v5573_v24 }
 0x4ed   : > { %v5142_v34 = vpop.f32.mrf.mxu0  ;;  %v5180_v51 = vadd.f32 %v5179_v48, %v5139_v63 }
 0x4ee   : > { %v5143_v37 = vadd.f32 %v5142_v34, %v5084_v17  ;;  %v5616_v18 = vand.u32 4294901760, %v5615_v43 }
 0x4ef   : > { %v5530_v16 = vmul.f32 0.01, %v5180_v51  ;;  %vm5522_vm1 = vcmp.ge.f32.partialorder %v5180_v51, 0.0 }
 0x4f0   : > { %v5617_v46 = vsub.f32 %v5615_v43, %v5616_v18 }
 0x4f1   : > { %v5538_v29 = vsel %vm5522_vm1, %v5180_v51, %v5530_v16 }
 0x4f2   : > { %v5571_v13 = vand.u32 4294901760, %v5538_v29  ;;  %v5618_v55 = vand.u32 4294901760, %v5617_v46 }
 0x4f4   : > { %v5609_v42 = vsub.f32 %v5538_v29, %v5571_v13 }
 0x4f5   : > { %v5183_v30 = vpop.f32.mrf.mxu1  ;;  %v5146_v32 = vpop.f32.mrf.mxu0 }
 0x4f6   : > { %v5184_v57 = vadd.f32 %v5183_v30, %v5143_v37  ;;  %v5147_v41 = vadd.f32 %v5146_v32, %v5090_v44  ;;  %v5610_v15 = vand.u32 4294901760, %v5609_v42 }
 0x4f8   : > { %vm5524_vm0 = vcmp.ge.f32.partialorder %v5184_v57, 0.0  ;;  %v5532_v19 = vmul.f32 0.01, %v5184_v57  ;;  %v5611_v60 = vsub.f32 %v5609_v42, %v5610_v15 }
 0x4fa   : > { %v5540_v27 = vsel %vm5524_vm0, %v5184_v57, %v5532_v19  ;;  %v5612_v5 = vand.u32 4294901760, %v5611_v60 }
 0x4fb   : > { %v5569_v3 = vand.u32 4294901760, %v5540_v27 }
 0x4fd   : > { %v5603_v2 = vsub.f32 %v5540_v27, %v5569_v3 }
 0x4fe   : > { %v5187_v12 = vpop.f32.mrf.mxu1 }
 0x4ff   : > { %v5188_v56 = vadd.f32 %v5187_v12, %v5147_v41  ;;  %v5604_v62 = vand.u32 4294901760, %v5603_v2 }
 0x501   : > { %vm5526_vm3 = vcmp.ge.f32.partialorder %v5188_v56, 0.0  ;;  %v5534_v11 = vmul.f32 0.01, %v5188_v56  ;;  %v5605_v25 = vsub.f32 %v5603_v2, %v5604_v62 }
 0x503   : > { %v5542_v0 = vsel %vm5526_vm3, %v5188_v56, %v5534_v11  ;;  %v5606_v1 = vand.u32 4294901760, %v5605_v25 }
 0x504   : > { %v5567_v40 = vand.u32 4294901760, %v5542_v0  ;;  %v5355_v33 = vpop.f32.mrf.mxu0 }
 0x506   : > { %v5597_v20 = vsub.f32 %v5542_v0, %v5567_v40  ;;  %5568 = vmatpush.msrb.mxu0 %v5567_v40  ;;  %5668 = vmatpush.msrb.mxu3 %v5567_v40  ;;  %v5401_v61 = vpop.f32.mrf.mxu1 }
 0x508   : > { %v5220_v36 = vpop.f32.mrf.mxu2  ;;  %5570 = vmatpush.msrb.mxu0 %v5569_v3  ;;  %5639 = vmatpush.msrb.mxu2 %v5597_v20  ;;  %v5598_v52 = vand.u32 4294901760, %v5597_v20 }
 0x509   : > { %5670 = vmatpush.msrb.mxu3 %v5569_v3  ;;  %v5221_v30 = vadd.f32 %v5220_v36, %v9072_v6 }
 0x50a   : > { %5572 = vmatpush.msrb.mxu0 %v5571_v13  ;;  %5642 = vmatpush.msrb.mxu2 %v5603_v2  ;;  %v5599_v28 = vsub.f32 %v5597_v20, %v5598_v52 }
 0x50b   : > { %5672 = vmatpush.msrb.mxu3 %v5571_v13 }
 0x50c   : > { %5574 = vmatpush.msrb.mxu0 %v5573_v24  ;;  %5645 = vmatpush.msrb.mxu2 %v5609_v42  ;;  %v5600_v23 = vand.u32 4294901760, %v5599_v28  ;;  %v5360_v39 = vpop.f32.mrf.mxu0 }
 0x50d   : > { %5674 = vmatpush.msrb.mxu3 %v5573_v24  ;;  %5580 = vmatmul.f32.vlgmr.msrb.gmra.mxu0 %v9090_v8 }
 0x50e   : > { %5697 = vmatpush.msra.mxu0 %v5598_v52  ;;  %5601 = vmatpush.msrb.mxu1 %v5600_v23  ;;  %v5407_v31 = vpop.f32.mrf.mxu1 }
 0x50f   : > { %5648 = vmatpush.msrb.mxu2 %v5615_v43  ;;  %v5305_v48 = vpop.f32.mrf.mxu3  ;;  %5678 = vmatmul.f32.vlgmr.msrb.gmra.mxu3 %v9086_v9 }
 0x510   : > { %5701 = vmatpush.msra.mxu0 %v5604_v62  ;;  %v5228_v26 = vpop.f32.mrf.mxu2  ;;  %5607 = vmatpush.msrb.mxu1 %v5606_v1  ;;  %v5306_v45 = vadd.f32 %v5305_v48, %v5221_v30 }
 0x511   : > { %5651 = vmatmul.f32.vlgmr.msrb.gmra.mxu2 %v9083_v47  ;;  %v5229_v7 = vadd.f32 %v5228_v26, %v9067_v35 }
 0x512   : > { %5705 = vmatpush.msra.mxu0 %v5610_v15  ;;  %5613 = vmatpush.msrb.mxu1 %v5612_v5  ;;  %v5356_v44 = vadd.f32 %v5355_v33, %v5306_v45 }
 0x514   : > { %5709 = vmatpush.msra.mxu0 %v5616_v18  ;;  %5619 = vmatpush.msrb.mxu1 %v5618_v55  ;;  %v5365_v22 = vpop.f32.mrf.mxu0 }
 0x515   : > { %5621 = vmatmul.f32.vlgmr.msrb.gmra.mxu1 %v9080_v53  ;;  %5711 = vmatmul.f32.vlgmr.msra.gmra.mxu0 %v9080_v53 }
 0x516   : > { %5728 = vmatpush.msra.mxu1 %v5567_v40  ;;  %v5413_v16 = vpop.f32.mrf.mxu1 }
 0x517   : > { %v5309_v49 = vpop.f32.mrf.mxu3 }
 0x518   : > { %5730 = vmatpush.msra.mxu1 %v5569_v3  ;;  %v5236_v34 = vpop.f32.mrf.mxu2  ;;  %v5310_v50 = vadd.f32 %v5309_v49, %v5229_v7  ;;  %v5402_v3 = vadd.f32 %v5401_v61, %v5356_v44 }
 0x519   : > { %v5237_v57 = vadd.f32 %v5236_v34, %v9069_v59 }
 0x51a   : > { %5732 = vmatpush.msra.mxu1 %v5571_v13  ;;  %v5361_v19 = vadd.f32 %v5360_v39, %v5310_v50 }
 0x51c   : > { %5734 = vmatpush.msra.mxu1 %v5573_v24  ;;  %v5408_v29 = vadd.f32 %v5407_v31, %v5361_v19  ;;  %v5370_v6 = vpop.f32.mrf.mxu0 }
 0x51d   : > { %5736 = vmatmul.f32.vlgmr.msra.gmra.mxu1 %v9080_v53 }
 0x51e   : > { %v5419_v40 = vpop.f32.mrf.mxu1 }
 0x51f   : > { %v5313_v38 = vpop.f32.mrf.mxu3 }
 0x520   : > { %v5244_v17 = vpop.f32.mrf.mxu2  ;;  %v5314_v21 = vadd.f32 %v5313_v38, %v5237_v57 }
 0x521   : > { %v5245_v41 = vadd.f32 %v5244_v17, %v9065_v54 }
 0x522   : > { %v5366_v58 = vadd.f32 %v5365_v22, %v5314_v21 }
 0x524   : > { %v5414_v35 = vadd.f32 %v5413_v16, %v5366_v58 }
 0x527   : > { %v5317_v10 = vpop.f32.mrf.mxu3 }
 0x528   : > { %v5464_v63 = vpop.f32.mrf.mxu2  ;;  %v5318_v12 = vadd.f32 %v5317_v10, %v5245_v41 }
 0x529   : > { %v5465_v56 = vadd.f32 %v5464_v63, %v5402_v3 }
 0x52a   : > { %v5371_v24 = vadd.f32 %v5370_v6, %v5318_v12 }
 0x52c   : > { %v5420_v43 = vadd.f32 %v5419_v40, %v5371_v24 }
 0x52f   : > { %v5505_v37 = vpop.f32.mrf.mxu3 }
 0x530   : > { %v5468_v51 = vpop.f32.mrf.mxu2  ;;  %v5506_v2 = vadd.f32 %v5505_v37, %v5465_v56 }
 0x531   : > { %v5469_v4 = vadd.f32 %v5468_v51, %v5408_v29 }
 0x532   : > { %v5529_v54 = vmul.f32 0.01, %v5506_v2  ;;  %vm5521_vm6 = vcmp.ge.f32.partialorder %v5506_v2, 0.0 }
 0x534   : > { %v5537_v25 = vsel %vm5521_vm6, %v5506_v2, %v5529_v54 }
 0x535   : > { %v5758_v1 = vand.u32 4294901760, %v5537_v25 }
 0x537   : > { %v5509_v32 = vpop.f32.mrf.mxu3  ;;  %v5800_v49 = vsub.f32 %v5537_v25, %v5758_v1 }
 0x538   : > { %v5472_v27 = vpop.f32.mrf.mxu2  ;;  %v5510_v13 = vadd.f32 %v5509_v32, %v5469_v4 }
 0x539   : > { %v5473_v59 = vadd.f32 %v5472_v27, %v5414_v35  ;;  %v5801_v10 = vand.u32 4294901760, %v5800_v49 }
 0x53a   : > { %v5531_v42 = vmul.f32 0.01, %v5510_v13  ;;  %vm5523_vm5 = vcmp.ge.f32.partialorder %v5510_v13, 0.0 }
 0x53b   : > { %v5802_v37 = vsub.f32 %v5800_v49, %v5801_v10 }
 0x53c   : > { %v5539_v36 = vsel %vm5523_vm5, %v5510_v13, %v5531_v42 }
 0x53d   : > { %v5756_v23 = vand.u32 4294901760, %v5539_v36  ;;  %v5803_v51 = vand.u32 4294901760, %v5802_v37 }
 0x53f   : > { %v5513_v11 = vpop.f32.mrf.mxu3  ;;  %v5794_v5 = vsub.f32 %v5539_v36, %v5756_v23 }
 0x540   : > { %v5514_v0 = vadd.f32 %v5513_v11, %v5473_v59  ;;  %v5476_v20 = vpop.f32.mrf.mxu2 }
 0x541   : > { %v5477_v52 = vadd.f32 %v5476_v20, %v5420_v43  ;;  %v5795_v38 = vand.u32 4294901760, %v5794_v5 }
 0x542   : > { %vm5525_vm4 = vcmp.ge.f32.partialorder %v5514_v0, 0.0  ;;  %v5533_v14 = vmul.f32 0.01, %v5514_v0 }
 0x543   : > { %v5796_v39 = vsub.f32 %v5794_v5, %v5795_v38 }
 0x544   : > { %v5541_v62 = vsel %vm5525_vm4, %v5514_v0, %v5533_v14 }
 0x545   : > { %v5754_v15 = vand.u32 4294901760, %v5541_v62  ;;  %v5797_v7 = vand.u32 4294901760, %v5796_v39 }
 0x547   : > { %v5517_v28 = vpop.f32.mrf.mxu3  ;;  %v5788_v46 = vsub.f32 %v5541_v62, %v5754_v15 }
 0x548   : > { %v5518_v18 = vadd.f32 %v5517_v28, %v5477_v52 }
 0x549   : > { %v5789_v34 = vand.u32 4294901760, %v5788_v46 }
 0x54a   : > { %vm5527_vm7 = vcmp.ge.f32.partialorder %v5518_v18, 0.0  ;;  %v5535_v60 = vmul.f32 0.01, %v5518_v18 }
 0x54b   : > { %v5790_v61 = vsub.f32 %v5788_v46, %v5789_v34 }
 0x54c   : > { %v5543_v48 = vsel %vm5527_vm7, %v5518_v18, %v5535_v60 }
 0x54d   : > { %v5752_v26 = vand.u32 4294901760, %v5543_v48  ;;  %v5791_v31 = vand.u32 4294901760, %v5790_v61 }
 0x54f   : > { %v5782_v55 = vsub.f32 %v5543_v48, %v5752_v26  ;;  %5753 = vmatpush.msra.mxu2 %v5752_v26  ;;  %5853 = vmatpush.msrb.mxu1 %v5752_v26 }
 0x551   : > { %5755 = vmatpush.msra.mxu2 %v5754_v15  ;;  %5824 = vmatpush.msrb.mxu0 %v5782_v55  ;;  %v5783_v33 = vand.u32 4294901760, %v5782_v55 }
 0x552   : > { %5855 = vmatpush.msrb.mxu1 %v5754_v15 }
 0x553   : > { %5757 = vmatpush.msra.mxu2 %v5756_v23  ;;  %5827 = vmatpush.msrb.mxu0 %v5788_v46  ;;  %v5784_v17 = vsub.f32 %v5782_v55, %v5783_v33 }
 0x554   : > { %5857 = vmatpush.msrb.mxu1 %v5756_v23 }
 0x555   : > { %5759 = vmatpush.msra.mxu2 %v5758_v1  ;;  %5830 = vmatpush.msrb.mxu0 %v5794_v5  ;;  %v5785_v63 = vand.u32 4294901760, %v5784_v17 }
 0x556   : > { %5859 = vmatpush.msrb.mxu1 %v5758_v1  ;;  %5765 = vmatmul.f32.vlgmr.msra.gmra.mxu2 %v9090_v8 }
 0x557   : > { %5882 = vmatpush.msrb.mxu2 %v5783_v33  ;;  %5786 = vmatpush.msra.mxu3 %v5785_v63 }
 0x558   : > { %5833 = vmatpush.msrb.mxu0 %v5800_v49  ;;  %5863 = vmatmul.f32.vlgmr.msrb.gmra.mxu1 %v9086_v9 }
 0x559   : > { %5886 = vmatpush.msrb.mxu2 %v5789_v34  ;;  %5792 = vmatpush.msra.mxu3 %v5791_v31 }
 0x55a   : > { %5836 = vmatmul.f32.vlgmr.msrb.gmra.mxu0 %v9083_v47  ;;  %v5549_v47 = vpop.permute.xlu1 %5548 }
 0x55b   : > { %5890 = vmatpush.msrb.mxu2 %v5795_v38  ;;  %5798 = vmatpush.msra.mxu3 %v5797_v7 }
 0x55d   : > { %5894 = vmatpush.msrb.mxu2 %v5801_v10  ;;  %5804 = vmatpush.msra.mxu3 %v5803_v51 }
 0x55e   : > { %5806 = vmatmul.f32.vlgmr.msra.gmra.mxu3 %v9080_v53  ;;  %5896 = vmatmul.f32.vlgmr.msrb.gmra.mxu2 %v9080_v53 }
 0x55f   : > { %5913 = vmatpush.msrb.mxu3 %v5752_v26 }
 0x561   : > { %5915 = vmatpush.msrb.mxu3 %v5754_v15 }
 0x563   : > { %5917 = vmatpush.msrb.mxu3 %v5756_v23 }
 0x565   : > { %5919 = vmatpush.msrb.mxu3 %v5758_v1 }
 0x566   : > { %5921 = vmatmul.f32.vlgmr.msrb.gmra.mxu3 %v9080_v53 }
 0x58a   : > { %v5581_v9 = vpop.f32.mrf.mxu0 }
 0x58b   : > { %v5582_v22 = vadd.f32 %v5581_v9, %v5549_v47 }
 0x592   : > { %v5622_v8 = vpop.f32.mrf.mxu1  ;;  %v5679_v57 = vpop.f32.mrf.mxu3 }
 0x593   : > { %v5712_v50 = vpop.f32.mrf.mxu0  ;;  %v5623_v21 = vadd.f32 %v5622_v8, %v5582_v22 }
 0x594   : > { %v5652_v30 = vpop.f32.mrf.mxu2 }
 0x595   : > { %v5653_v16 = vadd.f32 %v5652_v30, %v5623_v21 }
 0x597   : > { %v5680_v41 = vadd.f32 %v5679_v57, %v5653_v16 }
 0x599   : > { %v5713_v12 = vadd.f32 %v5712_v50, %v5680_v41 }
 0x59a   : > { %v5737_v45 = vpop.f32.mrf.mxu1 }
 0x59b   : > { %v5738_v59 = vadd.f32 %v5737_v45, %v5713_v12 }
 0x5d5   : > { %v5864_v29 = vpop.f32.mrf.mxu1 }
 0x5d7   : > { %v5837_v58 = vpop.f32.mrf.mxu0 }
 0x5d9   : > { %v5766_v19 = vpop.f32.mrf.mxu2 }
 0x5da   : > { %v5767_v32 = vadd.f32 %v5766_v19, %v5549_v47 }
 0x5e1   : > { %v5807_v44 = vpop.f32.mrf.mxu3  ;;  %v5897_v3 = vpop.f32.mrf.mxu2 }
 0x5e2   : > { %v5808_v27 = vadd.f32 %v5807_v44, %v5767_v32 }
 0x5e4   : > { %v5838_v53 = vadd.f32 %v5837_v58, %v5808_v27 }
 0x5e6   : > { %v5865_v35 = vadd.f32 %v5864_v29, %v5838_v53 }
 0x5e8   : > { %v5898_v4 = vadd.f32 %v5897_v3, %v5865_v35 }
 0x5e9   : > { %v5922_v6 = vpop.f32.mrf.mxu3 }
 0x5ea   : > { %v5923_v56 = vadd.f32 %v5922_v6, %v5898_v4 }
 0x5ec   : > { %v5927_v13 = vrot.slane %v5923_v56, 4 }
 0x5ee   : > { %v5929_v11 = vsel %vm5928_vm8, %v5738_v59, %v5927_v13 }
 0x5ef   : > { %5931 = vst [vmem:[%s414_s12] sm:$0x77] %v5929_v11 }
 0x5f0   : > { %6125 = shalt.err (!%p6122_p5)
}
 0x5f1   : > { %6042 = dma.vmem_to_hbm [thread:$0]  (%p6263_p6), %s5947_s13, 128, %s5949_s14, %s5933_s21  }
 0x5f2 PF: > { %s5960_s22 = sand.u32 1, %s6148_s17   ;;  %p6045_p7 = pnand %p6016_p9, %p6267_p8 }
 0x5f3   : > { %s5961_s12 = scalar_lea.sflag [#allocation4], %s5960_s22 }
 0x5f4   : > { %p6046_p10 = pneg %p6045_p7 }
 0x5f6   : > { %6143 = dma.done.wait (%p6046_p10), %s5961_s12, 128  }
 0x5f7   : > { %6145 = vsyncadd (%p6046_p10), %s5961_s12, 4294967168  ;;  %p21_p11 = scmp.ge.s32.totalorder %s6248_s23, 4   ;;  %s9493_s17 = smov %s6152_s18 }
 0x5f8   : > { %s9494_s18 = smov %s6156_s19  ;;  %s9495_s19 = smov %s6261_s26 }
 0x5f9   : > { %s9496_s20 = smov %s6248_s23  ;;  %23 = sbr.rel (!%p21_p11) target bundleno = 5 (0x5), region = 131 }
 0x5fe   :  { %5967 = vsyncpa [#allocation4], 1 }
 0x5ff   :  { %5969 = vsyncpa [#allocation4 + $0x1], 1 }

</bundles_post_ra>
